<compile_context>
chip_gen: v6e
topology: v6e:2x2x1
jax: 0.10.0
libtpu: 0.0.40
codegen_flags: <defaults>
</compile_context>

<pallas_src>
import jax
import jax.numpy as jnp
from jax.experimental import pallas as pl
from jax.experimental.pallas import tpu as pltpu

IN_FEATS = 28 * 28      # 784
K_PAD = 896             # 784 rounded up to 7*128
H1 = 512
H2 = 256
OUT = 10
OUT_PAD = 128           # 10 rounded up to one full lane group
TB = 256                # batch tile (multiple of MXU M on v5e/v6e/v7x)


def mlp_kernel(x_ref, w1_ref, b1_ref, w2_ref, b2_ref, w3_ref, b3_ref, o_ref):
    # x tile is bf16 (TB, 896); weights bf16; biases f32; accumulate in f32 on MXU.
    x = x_ref[...]

    h1 = jnp.dot(x, w1_ref[...], preferred_element_type=jnp.float32) + b1_ref[...]
    h1 = jnp.maximum(h1, 0.0).astype(jnp.bfloat16)

    h2 = jnp.dot(h1, w2_ref[...], preferred_element_type=jnp.float32) + b2_ref[...]
    h2 = jnp.maximum(h2, 0.0).astype(jnp.bfloat16)

    out = jnp.dot(h2, w3_ref[...], preferred_element_type=jnp.float32) + b3_ref[...]
    o_ref[...] = out


def prepare_params(params):
    """One-time conversion: bf16 weights (pre-transposed to (in, out)), padded to
    lane-friendly shapes; f32 biases as (1, N) rows."""
    w1, b1, w2, b2, w3, b3 = params

    w1p = jnp.zeros((K_PAD, H1), jnp.bfloat16).at[:IN_FEATS, :].set(
        w1.astype(jnp.bfloat16))
    w2p = w2.astype(jnp.bfloat16)
    w3p = jnp.zeros((H2, OUT_PAD), jnp.bfloat16).at[:, :OUT].set(
        w3.astype(jnp.bfloat16))

    b1r = b1.reshape(1, H1).astype(jnp.float32)
    b2r = b2.reshape(1, H2).astype(jnp.float32)
    b3r = jnp.zeros((1, OUT_PAD), jnp.float32).at[:, :OUT].set(
        b3.reshape(1, OUT).astype(jnp.float32))

    return (w1p, b1r, w2p, b2r, w3p, b3r)


def my_model_forward(x_nchw, prepared):
    """x_nchw: (B, 1, 28, 28) float32. Returns logits (B, 10) float32."""
    w1, b1, w2, b2, w3, b3 = prepared
    B = x_nchw.shape[0]

    # nn.Flatten() + cast to bf16 + pad batch to a multiple of TB and K to 896.
    x_flat = x_nchw.reshape(B, -1).astype(jnp.bfloat16)
    b_pad = pl.cdiv(B, TB) * TB
    x_padded = jnp.zeros((b_pad, K_PAD), jnp.bfloat16).at[:B, :IN_FEATS].set(x_flat)

    resident = lambda a: pl.BlockSpec(a.shape, lambda i: (0, 0))

    out_padded = pl.pallas_call(
        mlp_kernel,
        out_shape=jax.ShapeDtypeStruct((b_pad, OUT_PAD), jnp.float32),
        grid=(b_pad // TB,),
        in_specs=[
            pl.BlockSpec((TB, K_PAD), lambda i: (i, 0)),   # x tile: pipelined per step
            resident(w1), resident(b1),                    # weights/biases VMEM-resident
            resident(w2), resident(b2),
            resident(w3), resident(b3),
        ],
        out_specs=pl.BlockSpec((TB, OUT_PAD), lambda i: (i, 0)),
        compiler_params=pltpu.CompilerParams(
            dimension_semantics=("parallel",),   # megacore sharding on v7x
            vmem_limit_bytes=32 << 20,           # right-sized: safe on v7x's 64 MiB
        ),
    )(x_padded, w1, b1, w2, b2, w3, b3)

    return out_padded[:B, :OUT]


def init_params(key):
    """Deterministic init matching nn.Linear shapes; weights stored as (in, out)."""
    k1, k2, k3, k4, k5, k6 = jax.random.split(key, 6)

    def linear(kw, kb, fan_in, fan_out):
        bound = 1.0 / jnp.sqrt(fan_in)
        w = jax.random.uniform(kw, (fan_in, fan_out), jnp.float32, -bound, bound)
        b = jax.random.uniform(kb, (fan_out,), jnp.float32, -bound, bound)
        return w, b

    w1, b1 = linear(k1, k2, IN_FEATS, H1)
    w2, b2 = linear(k3, k4, H1, H2)
    w3, b3 = linear(k5, k6, H2, OUT)
    return (w1, b1, w2, b2, w3, b3)


if __name__ == "__main__":
    key = jax.random.PRNGKey(0)
    kx, kp = jax.random.split(key)

    # Small batch of normalized 28x28 grayscale "images" (NCHW, like ToTensor+Normalize).
    B = 2
    x = jax.random.normal(kx, (B, 1, 28, 28), jnp.float32)

    params = init_params(kp)
    prepared = prepare_params(params)

    logits = my_model_forward(x, prepared)
    logits = jax.block_until_ready(logits)

    # Pure-JAX reference mirroring the kernel's bf16 weight / f32 accumulate recipe.
    w1, b1, w2, b2, w3, b3 = params
    xf = x.reshape(B, -1).astype(jnp.bfloat16)
    ref = jnp.dot(xf, w1.astype(jnp.bfloat16),
                  preferred_element_type=jnp.float32) + b1
    ref = jnp.maximum(ref, 0.0).astype(jnp.bfloat16)
    ref = jnp.dot(ref, w2.astype(jnp.bfloat16),
                  preferred_element_type=jnp.float32) + b2
    ref = jnp.maximum(ref, 0.0).astype(jnp.bfloat16)
    ref = jnp.dot(ref, w3.astype(jnp.bfloat16),
                  preferred_element_type=jnp.float32) + b3

    assert logits.shape == (B, OUT)
    assert jnp.allclose(logits, ref, atol=2e-2, rtol=2e-2)

    print("KERNEL_OK")
</pallas_src>

<mosaic_0001>
module attributes {stable_mosaic.version = 11 : i64} {
  func.func @mlp_kernel(%arg0: i32, %arg1: memref<256x896xbf16, #tpu.memory_space<vmem>>, %arg2: memref<896x512xbf16, #tpu.memory_space<vmem>>, %arg3: memref<1x512xf32, #tpu.memory_space<vmem>>, %arg4: memref<512x256xbf16, #tpu.memory_space<vmem>>, %arg5: memref<1x256xf32, #tpu.memory_space<vmem>>, %arg6: memref<256x128xbf16, #tpu.memory_space<vmem>>, %arg7: memref<1x128xf32, #tpu.memory_space<vmem>>, %arg8: memref<256x128xf32, #tpu.memory_space<vmem>>) attributes {dimension_semantics = [#tpu.dimension_semantics<parallel>], iteration_bounds = array<i64: 1>, scalar_prefetch = 0 : i64, scratch_operands = 0 : i64, tpu.core_type = #tpu.core_type<tc>, window_params = [{transform_indices = @transform_0, window_bounds = array<i64: 256, 896>}, {pipeline_mode = #tpu.pipeline_mode<synchronous>, transform_indices = @transform_1, window_bounds = array<i64: 896, 512>}, {pipeline_mode = #tpu.pipeline_mode<synchronous>, transform_indices = @transform_2, window_bounds = array<i64: 1, 512>}, {pipeline_mode = #tpu.pipeline_mode<synchronous>, transform_indices = @transform_3, window_bounds = array<i64: 512, 256>}, {pipeline_mode = #tpu.pipeline_mode<synchronous>, transform_indices = @transform_4, window_bounds = array<i64: 1, 256>}, {pipeline_mode = #tpu.pipeline_mode<synchronous>, transform_indices = @transform_5, window_bounds = array<i64: 256, 128>}, {pipeline_mode = #tpu.pipeline_mode<synchronous>, transform_indices = @transform_6, window_bounds = array<i64: 1, 128>}, {transform_indices = @transform_7, window_bounds = array<i64: 256, 128>}]} {
    %c0 = arith.constant 0 : index
    %c0_0 = arith.constant 0 : index
    %0 = vector.load %arg1[%c0, %c0_0] : memref<256x896xbf16, #tpu.memory_space<vmem>>, vector<256x896xbf16>
    %c0_1 = arith.constant 0 : index
    %c0_2 = arith.constant 0 : index
    %1 = vector.load %arg2[%c0_1, %c0_2] : memref<896x512xbf16, #tpu.memory_space<vmem>>, vector<896x512xbf16>
    %cst = arith.constant dense<0.000000e+00> : vector<256x512xf32>
    %2 = tpu.matmul %0, %1, %cst {dimension_numbers = #tpu.dot_dimension_numbers<[1], [0], [0], [1], [0, 0, 1, 1], [], []>} : vector<256x896xbf16>, vector<896x512xbf16>, vector<256x512xf32> -> vector<256x512xf32>
    %c0_3 = arith.constant 0 : index
    %c0_4 = arith.constant 0 : index
    %3 = vector.load %arg3[%c0_3, %c0_4] : memref<1x512xf32, #tpu.memory_space<vmem>>, vector<1x512xf32>
    %4 = vector.broadcast %3 : vector<1x512xf32> to vector<256x512xf32>
    %5 = arith.addf %2, %4 : vector<256x512xf32>
    %cst_5 = arith.constant 0.000000e+00 : f32
    %6 = vector.broadcast %cst_5 : f32 to vector<256x512xf32>
    %7 = arith.maximumf %5, %6 : vector<256x512xf32>
    %8 = arith.truncf %7 : vector<256x512xf32> to vector<256x512xbf16>
    %c0_6 = arith.constant 0 : index
    %c0_7 = arith.constant 0 : index
    %9 = vector.load %arg4[%c0_6, %c0_7] : memref<512x256xbf16, #tpu.memory_space<vmem>>, vector<512x256xbf16>
    %cst_8 = arith.constant dense<0.000000e+00> : vector<256x256xf32>
    %10 = tpu.matmul %8, %9, %cst_8 {dimension_numbers = #tpu.dot_dimension_numbers<[1], [0], [0], [1], [0, 0, 1, 1], [], []>} : vector<256x512xbf16>, vector<512x256xbf16>, vector<256x256xf32> -> vector<256x256xf32>
    %c0_9 = arith.constant 0 : index
    %c0_10 = arith.constant 0 : index
    %11 = vector.load %arg5[%c0_9, %c0_10] : memref<1x256xf32, #tpu.memory_space<vmem>>, vector<1x256xf32>
    %12 = vector.broadcast %11 : vector<1x256xf32> to vector<256x256xf32>
    %13 = arith.addf %10, %12 : vector<256x256xf32>
    %cst_11 = arith.constant 0.000000e+00 : f32
    %14 = vector.broadcast %cst_11 : f32 to vector<256x256xf32>
    %15 = arith.maximumf %13, %14 : vector<256x256xf32>
    %16 = arith.truncf %15 : vector<256x256xf32> to vector<256x256xbf16>
    %c0_12 = arith.constant 0 : index
    %c0_13 = arith.constant 0 : index
    %17 = vector.load %arg6[%c0_12, %c0_13] : memref<256x128xbf16, #tpu.memory_space<vmem>>, vector<256x128xbf16>
    %cst_14 = arith.constant dense<0.000000e+00> : vector<256x128xf32>
    %18 = tpu.matmul %16, %17, %cst_14 {dimension_numbers = #tpu.dot_dimension_numbers<[1], [0], [0], [1], [0, 0, 1, 1], [], []>} : vector<256x256xbf16>, vector<256x128xbf16>, vector<256x128xf32> -> vector<256x128xf32>
    %c0_15 = arith.constant 0 : index
    %c0_16 = arith.constant 0 : index
    %19 = vector.load %arg7[%c0_15, %c0_16] : memref<1x128xf32, #tpu.memory_space<vmem>>, vector<1x128xf32>
    %20 = vector.broadcast %19 : vector<1x128xf32> to vector<256x128xf32>
    %21 = arith.addf %18, %20 : vector<256x128xf32>
    %c0_17 = arith.constant 0 : index
    %c0_18 = arith.constant 0 : index
    %22 = vector.load %arg8[%c0_17, %c0_18] : memref<256x128xf32, #tpu.memory_space<vmem>>, vector<256x128xf32>
    tpu.vector_store %arg8[%c0_17, %c0_18], %21 {strides = array<i32>} : memref<256x128xf32, #tpu.memory_space<vmem>>, vector<256x128xf32>,
    return
  }
  func.func @transform_0(%arg0: i32) -> (i32, i32) {
    %c0_i32 = arith.constant 0 : i32
    %c0_i32_0 = arith.constant 0 : i32
    return %arg0, %c0_i32 : i32, i32
  }
  func.func @transform_1(%arg0: i32) -> (i32, i32) {
    %c0_i32 = arith.constant 0 : i32
    %c0_i32_0 = arith.constant 0 : i32
    %c0_i32_1 = arith.constant 0 : i32
    return %c0_i32, %c0_i32_0 : i32, i32
  }
  func.func @transform_2(%arg0: i32) -> (i32, i32) {
    %c0_i32 = arith.constant 0 : i32
    %c0_i32_0 = arith.constant 0 : i32
    %c0_i32_1 = arith.constant 0 : i32
    return %c0_i32, %c0_i32_0 : i32, i32
  }
  func.func @transform_3(%arg0: i32) -> (i32, i32) {
    %c0_i32 = arith.constant 0 : i32
    %c0_i32_0 = arith.constant 0 : i32
    %c0_i32_1 = arith.constant 0 : i32
    return %c0_i32, %c0_i32_0 : i32, i32
  }
  func.func @transform_4(%arg0: i32) -> (i32, i32) {
    %c0_i32 = arith.constant 0 : i32
    %c0_i32_0 = arith.constant 0 : i32
    %c0_i32_1 = arith.constant 0 : i32
    return %c0_i32, %c0_i32_0 : i32, i32
  }
  func.func @transform_5(%arg0: i32) -> (i32, i32) {
    %c0_i32 = arith.constant 0 : i32
    %c0_i32_0 = arith.constant 0 : i32
    %c0_i32_1 = arith.constant 0 : i32
    return %c0_i32, %c0_i32_0 : i32, i32
  }
  func.func @transform_6(%arg0: i32) -> (i32, i32) {
    %c0_i32 = arith.constant 0 : i32
    %c0_i32_0 = arith.constant 0 : i32
    %c0_i32_1 = arith.constant 0 : i32
    return %c0_i32, %c0_i32_0 : i32, i32
  }
  func.func @transform_7(%arg0: i32) -> (i32, i32) {
    %c0_i32 = arith.constant 0 : i32
    %c0_i32_0 = arith.constant 0 : i32
    return %arg0, %c0_i32 : i32, i32
  }
}

</mosaic_0001>

<bundles_post_ra>
// kernel: tpu_custom_call.1
= control target key start
LH: loop header
LB: loop body
LE: loop exit
PB: predicated region body
PF: predicated region fallthrough
CT: control target
= control target key end

     0   :  { %12 = vsyncpa [#allocation3], 0  ;;  %s8089_s0 = inlined_call_operand.hbm [shape: bf16[256,896], index: 0, kind: input, shape index: {}]   ;;  %s8090_s1 = inlined_call_operand.hbm [shape: bf16[896,512], index: 1, kind: input, shape index: {}]   ;;  %s8091_s2 = inlined_call_operand.hbm [shape: f32[1,512], index: 2, kind: input, shape index: {}]   ;;  %s8092_s3 = inlined_call_operand.hbm [shape: bf16[512,256], index: 3, kind: input, shape index: {}]   ;;  %s8093_s4 = inlined_call_operand.vmem [shape: f32[1,256], index: 4, kind: input, shape index: {}]   ;;  %s8094_s5 = inlined_call_operand.hbm [shape: bf16[256,128], index: 5, kind: input, shape index: {}]   ;;  %s8095_s6 = inlined_call_operand.vmem [shape: f32[1,128], index: 6, kind: input, shape index: {}]   ;;  %s8096_s7 = inlined_call_operand.hbm [shape: f32[256,128], index: 7, kind: output, shape index: {}]  }
   0x1   :  { %13 = vsyncpa [#allocation6], 0 }
   0x2   :  { %14 = vsyncpa [#allocation9], 0 }
   0x3   :  { %15 = vsyncpa [#allocation4], 0  ;;  %s6550_s24 = smov [#allocation5]  }
   0x4   :  { %s33_s25 = sshll.u32 %s6550_s24, 4  ;;  %s34_s25 = int_to_ptr.vmem [resolvable:$true] %s33_s25 }
   0x5   :  { %s6430_s26 = scalar_lea.vmem %s34_s25, 28672  ;;  %p6435_p1 = scmp.lt.s32.totalorder %s34_s25, %s34_s25 }
   0x6   :  { %p6431_p0 = scmp.ne.s32.totalorder %s34_s25, %s6430_s26  ;;  %p6436_p2 = scmp.lt.s32.totalorder %s6430_s26, %s6430_s26 }
   0x8   :  { %p6437_p3 = por %p6436_p2, %p6435_p1 }
   0xa   :  { %p6438_p4 = pnand %p6437_p3, %p6431_p0 }
   0xc   :  { %6441 = shalt.err (!%p6438_p4)
}
   0xd   :  { %s6551_s27 = smov 256   ;;  %s6552_s28 = smov 16  }
   0xe   :  { %39 = dma.hbm_to_vmem [thread:$0]  %s8090_s1, 28672, %s34_s25, [#allocation6], %s6551_s27, %s6551_s27, %s6552_s28  }
   0xf   :  { %s6553_s8 = smov [#allocation8]  }
  0x10   :  { %s55_s9 = sshll.u32 %s6553_s8, 4  ;;  %s56_s9 = int_to_ptr.vmem [resolvable:$true] %s55_s9 }
  0x11   :  { %s6450_s10 = scalar_lea.vmem %s56_s9, 8192  ;;  %p6455_p6 = scmp.lt.s32.totalorder %s56_s9, %s56_s9 }
  0x12   :  { %p6451_p5 = scmp.ne.s32.totalorder %s56_s9, %s6450_s10  ;;  %p6456_p7 = scmp.lt.s32.totalorder %s6450_s10, %s6450_s10 }
  0x14   :  { %p6457_p8 = por %p6456_p7, %p6455_p6 }
  0x16   :  { %p6458_p9 = pnand %p6457_p8, %p6451_p5 }
  0x18   :  { %6461 = shalt.err (!%p6458_p9)
}
  0x19   :  { %s6554_s11 = smov 128   ;;  %s6555_s12 = smov 8  }
  0x1a   :  { %61 = dma.hbm_to_vmem [thread:$0]  %s8092_s3, 8192, %s56_s9, [#allocation9], %s6554_s11, %s6554_s11, %s6555_s12  }
  0x1b   :  { %s6556_s1 = smov [#allocation2]  }
  0x1c   :  { %s21_s15 = sshll.u32 %s6556_s1, 4  ;;  %s22_s15 = int_to_ptr.vmem [resolvable:$true] %s21_s15 }
  0x1d   :  { %s6470_s16 = scalar_lea.vmem %s22_s15, 14336  ;;  %p6475_p11 = scmp.lt.s32.totalorder %s22_s15, %s22_s15 }
  0x1e   :  { %p6471_p10 = scmp.ne.s32.totalorder %s22_s15, %s6470_s16  ;;  %p6476_p12 = scmp.lt.s32.totalorder %s6470_s16, %s6470_s16 }
  0x20   :  { %p6477_p13 = por %p6476_p12, %p6475_p11 }
  0x22   :  { %p6478_p0 = pnand %p6477_p13, %p6471_p10 }
  0x24   :  { %6481 = shalt.err (!%p6478_p0)
}
  0x25   :  { %s6557_s17 = smov 448   ;;  %s6558_s18 = smov 28  }
  0x26   :  { %27 = dma.hbm_to_vmem [thread:$0]  %s8089_s0, 14336, %s22_s15, [#allocation3], %s6557_s17, %s6557_s17, %s6558_s18  }
  0x27   :  { %s6559_s21 = smov [#allocation7]   ;;  %s6560_s3 = smov [#allocation10]  }
  0x28   :  { %s46_s22 = sshll.u32 %s6559_s21, 4  ;;  %s69_s23 = sshll.u32 %s6560_s3, 4  ;;  %s47_s22 = int_to_ptr.vmem [resolvable:$true] %s46_s22  ;;  %s70_s23 = int_to_ptr.vmem [resolvable:$true] %s69_s23 }
  0x29   :  { %s6490_s24 = scalar_lea.vmem %s47_s22, 64  ;;  %p6495_p2 = scmp.lt.s32.totalorder %s47_s22, %s47_s22 }
  0x2a   :  { %p6491_p1 = scmp.ne.s32.totalorder %s47_s22, %s6490_s24  ;;  %p6496_p3 = scmp.lt.s32.totalorder %s6490_s24, %s6490_s24 }
  0x2c   :  { %p6497_p4 = por %p6496_p3, %p6495_p2 }
  0x2e   :  { %p6498_p5 = pnand %p6497_p4, %p6491_p1 }
  0x30   :  { %6501 = shalt.err (!%p6498_p5)
}
  0x31   :  { %49 = dma.hbm_to_vmem [thread:$0]  %s8091_s2, 64, %s47_s22, [#allocation6]  }
  0x32   :  { %s6510_s27 = scalar_lea.vmem %s70_s23, 2048  ;;  %p6515_p7 = scmp.lt.s32.totalorder %s70_s23, %s70_s23 }
  0x33   :  { %p6511_p6 = scmp.ne.s32.totalorder %s70_s23, %s6510_s27  ;;  %p6516_p8 = scmp.lt.s32.totalorder %s6510_s27, %s6510_s27 }
  0x35   :  { %p6517_p9 = por %p6516_p8, %p6515_p7 }
  0x37   :  { %p6518_p10 = pnand %p6517_p9, %p6511_p6 }
  0x39   :  { %6521 = shalt.err (!%p6518_p10)
}
  0x3a   :  { %s6561_s0 = smov 64   ;;  %s6562_s28 = smov 4  }
  0x3b   :  { %75 = dma.hbm_to_vmem [thread:$0]  %s8094_s5, 2048, %s70_s23, [#allocation9], %s6561_s0, %s6561_s0, %s6562_s28  }
  0x3c   :  { %6542 = dma.done.wait [#allocation3], 14336  }
  0x3d   :  { %6543 = vsyncadd [#allocation3], 4294952960 }
  0x3e   :  { %6544 = dma.done.wait [#allocation6], 28736  }
  0x3f   :  { %6545 = vsyncadd [#allocation6], 4294938560 }
  0x40   :  { %6546 = dma.done.wait [#allocation9], 10240  }
  0x41   :  { %6547 = vsyncadd [#allocation9], 4294957056  ;;  %v5701_v0 = vld [vmem:[#allocation5 + $0xe4] ss:$16 sps:$4 sm:$0xff]   ;;  %v5703_v1 = vld [vmem:[#allocation5 + $0xe0] ss:$16 sps:$4 sm:$0xff]  }
  0x42   :  { %2164 = vmatprep.subr.bf16.mxu0 %v5701_v0  ;;  %5654 = vmatprep.subr.bf16.mxu1 %v5701_v0  ;;  %v5704_v2 = vld [vmem:[#allocation5 + $0xc4] ss:$16 sps:$4 sm:$0xff]   ;;  %v5706_v3 = vld [vmem:[#allocation5 + $0xc0] ss:$16 sps:$4 sm:$0xff]   ;;  %v5767_v42 = vld [vmem:[#allocation2 + $0x3c] ss:$28 sps:$4 sm:$0xff]  }
  0x43   :  { %2165 = vmatpush1.bf16.msra.mxu0 %v5703_v1  ;;  %5670 = vmatpush1.bf16.msra.mxu1 %v5703_v1  ;;  %v5707_v4 = vld [vmem:[#allocation5 + $0xa4] ss:$16 sps:$4 sm:$0xff]   ;;  %v5709_v5 = vld [vmem:[#allocation5 + $0xa0] ss:$16 sps:$4 sm:$0xff]   ;;  %v5769_v43 = vld [vmem:[#allocation2 + $0x1fc] ss:$28 sps:$4 sm:$0xff]  }
  0x44   :  { %2166 = vmatprep.subr.bf16.mxu0 %v5704_v2  ;;  %5655 = vmatprep.subr.bf16.mxu1 %v5704_v2  ;;  %v5710_v6 = vld [vmem:[#allocation5 + $0x84] ss:$16 sps:$4 sm:$0xff]   ;;  %v5712_v7 = vld [vmem:[#allocation5 + $0x80] ss:$16 sps:$4 sm:$0xff]   ;;  %v5803_v2 = vld [vmem:[#allocation2 + $0xac] ss:$28 sps:$4 sm:$0xff]  }
  0x45   :  { %v5713_v8 = vld [vmem:[#allocation5 + $0x64] ss:$16 sps:$4 sm:$0xff]   ;;  %v5715_v9 = vld [vmem:[#allocation5 + $0x60] ss:$16 sps:$4 sm:$0xff]  }
  0x46   :  { %v5716_v10 = vld [vmem:[#allocation5 + $0x44] ss:$16 sps:$4 sm:$0xff]   ;;  %v5718_v11 = vld [vmem:[#allocation5 + $0x40] ss:$16 sps:$4 sm:$0xff]  }
  0x47   :  { %2167 = vmatpush1.bf16.msra.mxu0 %v5706_v3  ;;  %5671 = vmatpush1.bf16.msra.mxu1 %v5706_v3  ;;  %v5719_v12 = vld [vmem:[#allocation5 + $0x24] ss:$16 sps:$4 sm:$0xff]   ;;  %v5721_v14 = vld [vmem:[#allocation5 + $0x20] ss:$16 sps:$4 sm:$0xff]   ;;  %v5805_v3 = vld [vmem:[#allocation2 + $0x26c] ss:$28 sps:$4 sm:$0xff]  }
  0x48   :  { %2168 = vmatprep.subr.bf16.mxu0 %v5707_v4  ;;  %5656 = vmatprep.subr.bf16.mxu1 %v5707_v4  ;;  %v5751_v13 = vld [vmem:[#allocation2 + $0x4] ss:$28 sps:$4 sm:$0xff]   ;;  %v5771_v47 = vld [vmem:[#allocation2 + $0x38] ss:$28 sps:$4 sm:$0xff]   ;;  %v5789_v59 = vld [vmem:[#allocation2 + $0x70] ss:$28 sps:$4 sm:$0xff]  }
  0x49   :  { %v5754_v15 = vld [vmem:[#allocation2 + $0x1c4] ss:$28 sps:$4 sm:$0xff]   ;;  %2196 = vmatprep.mubr.bf16.mxu0 %v5751_v13  ;;  %v5772_v49 = vld [vmem:[#allocation2 + $0x1f8] ss:$28 sps:$4 sm:$0xff]   ;;  %v5790_v61 = vld [vmem:[#allocation2 + $0x230] ss:$28 sps:$4 sm:$0xff]  }
  0x4a   :  { %v5722_v16 = vld [vmem:[#allocation5 + $0x4] ss:$16 sps:$4 sm:$0xff]   ;;  %2276 = vmatprep.mubr.bf16.mxu1 %v5754_v15  ;;  %v5724_v17 = vld [vmem:[#allocation5] ss:$16 sps:$4 sm:$0xff]  }
  0x4b   :  { %2169 = vmatpush1.bf16.msra.mxu0 %v5709_v5  ;;  %5672 = vmatpush1.bf16.msra.mxu1 %v5709_v5  ;;  %v5725_v18 = vld [vmem:[#allocation5 + $0x1e4] ss:$16 sps:$4 sm:$0xff]   ;;  %v5727_v19 = vld [vmem:[#allocation5 + $0x1e0] ss:$16 sps:$4 sm:$0xff]  }
  0x4c   :  { %2170 = vmatprep.subr.bf16.mxu0 %v5710_v6  ;;  %5657 = vmatprep.subr.bf16.mxu1 %v5710_v6  ;;  %v5728_v20 = vld [vmem:[#allocation5 + $0x1c4] ss:$16 sps:$4 sm:$0xff]   ;;  %v5730_v21 = vld [vmem:[#allocation5 + $0x1c0] ss:$16 sps:$4 sm:$0xff]  }
  0x4d   :  { %v5731_v22 = vld [vmem:[#allocation5 + $0x1a4] ss:$16 sps:$4 sm:$0xff]   ;;  %v5733_v23 = vld [vmem:[#allocation5 + $0x1a0] ss:$16 sps:$4 sm:$0xff]  }
  0x4e   :  { %v5734_v24 = vld [vmem:[#allocation5 + $0x184] ss:$16 sps:$4 sm:$0xff]   ;;  %v5736_v25 = vld [vmem:[#allocation5 + $0x180] ss:$16 sps:$4 sm:$0xff]  }
  0x4f   :  { %2171 = vmatpush1.bf16.msra.mxu0 %v5712_v7  ;;  %5673 = vmatpush1.bf16.msra.mxu1 %v5712_v7  ;;  %v5737_v26 = vld [vmem:[#allocation5 + $0x164] ss:$16 sps:$4 sm:$0xff]   ;;  %v5739_v27 = vld [vmem:[#allocation5 + $0x160] ss:$16 sps:$4 sm:$0xff]  }
  0x50   :  { %2172 = vmatprep.subr.bf16.mxu0 %v5713_v8  ;;  %5658 = vmatprep.subr.bf16.mxu1 %v5713_v8  ;;  %v5740_v28 = vld [vmem:[#allocation5 + $0x144] ss:$16 sps:$4 sm:$0xff]   ;;  %v5742_v29 = vld [vmem:[#allocation5 + $0x140] ss:$16 sps:$4 sm:$0xff]  }
  0x51   :  { %v5743_v30 = vld [vmem:[#allocation5 + $0x124] ss:$16 sps:$4 sm:$0xff]   ;;  %v5745_v31 = vld [vmem:[#allocation5 + $0x120] ss:$16 sps:$4 sm:$0xff]  }
  0x52   :  { %v5746_v32 = vld [vmem:[#allocation5 + $0x104] ss:$16 sps:$4 sm:$0xff]   ;;  %v5748_v33 = vld [vmem:[#allocation5 + $0x100] ss:$16 sps:$4 sm:$0xff]  }
  0x53   :  { %2173 = vmatpush1.bf16.msra.mxu0 %v5715_v9  ;;  %5674 = vmatpush1.bf16.msra.mxu1 %v5715_v9  ;;  %v5757_v34 = vld [vmem:[#allocation5 + $0x2e4] ss:$16 sps:$4 sm:$0xff]   ;;  %v5749_v35 = vld [vmem:[#allocation2] ss:$28 sps:$4 sm:$0xff]  }
  0x54   :  { %2174 = vmatprep.subr.bf16.mxu0 %v5716_v10  ;;  %5659 = vmatprep.subr.bf16.mxu1 %v5716_v10  ;;  %v5760_v36 = vld [vmem:[#allocation5 + $0x4e4] ss:$16 sps:$4 sm:$0xff]   ;;  %v5752_v37 = vld [vmem:[#allocation2 + $0x1c0] ss:$28 sps:$4 sm:$0xff]  }
  0x55   :  { %v5755_v38 = vld [vmem:[#allocation5 + $0x2e0] ss:$16 sps:$4 sm:$0xff]   ;;  %v5763_v40 = vld [vmem:[#allocation5 + $0x2c4] ss:$16 sps:$4 sm:$0xff]  }
  0x56   :  { %v5758_v39 = vld [vmem:[#allocation5 + $0x4e0] ss:$16 sps:$4 sm:$0xff]   ;;  %v5766_v41 = vld [vmem:[#allocation5 + $0x4c4] ss:$16 sps:$4 sm:$0xff]  }
  0x57   :  { %2175 = vmatpush1.bf16.msra.mxu0 %v5718_v11  ;;  %5675 = vmatpush1.bf16.msra.mxu1 %v5718_v11  ;;  %v5761_v44 = vld [vmem:[#allocation5 + $0x2c0] ss:$16 sps:$4 sm:$0xff]   ;;  %v5775_v46 = vld [vmem:[#allocation5 + $0x2a4] ss:$16 sps:$4 sm:$0xff]  }
  0x58   :  { %2176 = vmatprep.subr.bf16.mxu0 %v5719_v12  ;;  %5660 = vmatprep.subr.bf16.mxu1 %v5719_v12  ;;  %v5764_v45 = vld [vmem:[#allocation5 + $0x4c0] ss:$16 sps:$4 sm:$0xff]   ;;  %v5778_v48 = vld [vmem:[#allocation5 + $0x4a4] ss:$16 sps:$4 sm:$0xff]  }
  0x59   :  { %v5773_v50 = vld [vmem:[#allocation5 + $0x2a0] ss:$16 sps:$4 sm:$0xff]   ;;  %v5781_v52 = vld [vmem:[#allocation5 + $0x284] ss:$16 sps:$4 sm:$0xff]  }
  0x5a   :  { %v5776_v51 = vld [vmem:[#allocation5 + $0x4a0] ss:$16 sps:$4 sm:$0xff]   ;;  %v5784_v53 = vld [vmem:[#allocation5 + $0x484] ss:$16 sps:$4 sm:$0xff]  }
  0x5b   :  { %2177 = vmatpush1.bf16.msra.mxu0 %v5721_v14  ;;  %5676 = vmatpush1.bf16.msra.mxu1 %v5721_v14  ;;  %v5785_v54 = vld [vmem:[#allocation2 + $0x74] ss:$28 sps:$4 sm:$0xff]   ;;  %v5807_v7 = vld [vmem:[#allocation2 + $0xa8] ss:$28 sps:$4 sm:$0xff]  }
  0x5c   :  { %2178 = vmatprep.subr.bf16.mxu0 %v5722_v16  ;;  %5661 = vmatprep.subr.bf16.mxu1 %v5722_v16  ;;  %v5787_v55 = vld [vmem:[#allocation2 + $0x234] ss:$28 sps:$4 sm:$0xff]   ;;  %v5808_v9 = vld [vmem:[#allocation2 + $0x268] ss:$28 sps:$4 sm:$0xff]  }
  0x5d   :  { %v5779_v56 = vld [vmem:[#allocation5 + $0x280] ss:$16 sps:$4 sm:$0xff]   ;;  %v5793_v58 = vld [vmem:[#allocation5 + $0x264] ss:$16 sps:$4 sm:$0xff]  }
  0x5e   :  { %v5782_v57 = vld [vmem:[#allocation5 + $0x480] ss:$16 sps:$4 sm:$0xff]   ;;  %v5796_v60 = vld [vmem:[#allocation5 + $0x464] ss:$16 sps:$4 sm:$0xff]  }
  0x5f   :  { %2179 = vmatpush1.bf16.msra.mxu0 %v5724_v17  ;;  %5677 = vmatpush1.bf16.msra.mxu1 %v5724_v17  ;;  %v5791_v62 = vld [vmem:[#allocation5 + $0x260] ss:$16 sps:$4 sm:$0xff]   ;;  %v5799_v0 = vld [vmem:[#allocation5 + $0x244] ss:$16 sps:$4 sm:$0xff]  }
  0x60   :  { %2180 = vmatprep.subr.bf16.mxu0 %v5725_v18  ;;  %5662 = vmatprep.subr.bf16.mxu1 %v5725_v18  ;;  %v5794_v63 = vld [vmem:[#allocation5 + $0x460] ss:$16 sps:$4 sm:$0xff]   ;;  %v5802_v1 = vld [vmem:[#allocation5 + $0x444] ss:$16 sps:$4 sm:$0xff]  }
  0x61   :  { %v5797_v4 = vld [vmem:[#allocation5 + $0x240] ss:$16 sps:$4 sm:$0xff]   ;;  %v5811_v6 = vld [vmem:[#allocation5 + $0x224] ss:$16 sps:$4 sm:$0xff]  }
  0x62   :  { %v5800_v5 = vld [vmem:[#allocation5 + $0x440] ss:$16 sps:$4 sm:$0xff]   ;;  %v5814_v8 = vld [vmem:[#allocation5 + $0x424] ss:$16 sps:$4 sm:$0xff]  }
  0x63   :  { %2181 = vmatpush2.bf16.msra.mxu0 %v5727_v19  ;;  %5678 = vmatpush2.bf16.msra.mxu1 %v5727_v19  ;;  %v5809_v10 = vld [vmem:[#allocation5 + $0x220] ss:$16 sps:$4 sm:$0xff]   ;;  %v5817_v12 = vld [vmem:[#allocation5 + $0x204] ss:$16 sps:$4 sm:$0xff]  }
  0x64   :  { %2182 = vmatprep.subr.bf16.mxu0 %v5728_v20  ;;  %5663 = vmatprep.subr.bf16.mxu1 %v5728_v20  ;;  %v5812_v11 = vld [vmem:[#allocation5 + $0x420] ss:$16 sps:$4 sm:$0xff]   ;;  %v5820_v13 = vld [vmem:[#allocation5 + $0x404] ss:$16 sps:$4 sm:$0xff]  }
  0x65   :  { %v5821_v14 = vld [vmem:[#allocation2 + $0xe4] ss:$28 sps:$4 sm:$0xff]  }
  0x66   :  { %v5823_v15 = vld [vmem:[#allocation2 + $0x2a4] ss:$28 sps:$4 sm:$0xff]  }
  0x67   :  { %2183 = vmatpush2.bf16.msra.mxu0 %v5730_v21  ;;  %5679 = vmatpush2.bf16.msra.mxu1 %v5730_v21  ;;  %v5815_v16 = vld [vmem:[#allocation5 + $0x200] ss:$16 sps:$4 sm:$0xff]   ;;  %v5829_v18 = vld [vmem:[#allocation5 + $0x3e4] ss:$16 sps:$4 sm:$0xff]  }
  0x68   :  { %2184 = vmatprep.subr.bf16.mxu0 %v5731_v22  ;;  %5664 = vmatprep.subr.bf16.mxu1 %v5731_v22  ;;  %v5818_v17 = vld [vmem:[#allocation5 + $0x400] ss:$16 sps:$4 sm:$0xff]   ;;  %v5832_v20 = vld [vmem:[#allocation5 + $0x5e4] ss:$16 sps:$4 sm:$0xff]  }
  0x69   :  { %v5825_v19 = vld [vmem:[#allocation2 + $0xe0] ss:$28 sps:$4 sm:$0xff]  }
  0x6a   :  { %v5826_v21 = vld [vmem:[#allocation2 + $0x2a0] ss:$28 sps:$4 sm:$0xff]  }
  0x6b   :  { %2185 = vmatpush2.bf16.msra.mxu0 %v5733_v23  ;;  %5680 = vmatpush2.bf16.msra.mxu1 %v5733_v23  ;;  %v5827_v22 = vld [vmem:[#allocation5 + $0x3e0] ss:$16 sps:$4 sm:$0xff]  }
  0x6c   :  { %2186 = vmatprep.subr.bf16.mxu0 %v5734_v24  ;;  %5665 = vmatprep.subr.bf16.mxu1 %v5734_v24  ;;  %v5830_v23 = vld [vmem:[#allocation5 + $0x5e0] ss:$16 sps:$4 sm:$0xff]   ;;  %v5835_v24 = vld [vmem:[#allocation5 + $0x3c4] ss:$16 sps:$4 sm:$0xff]  }
  0x6f   :  { %2187 = vmatpush2.bf16.msra.mxu0 %v5736_v25  ;;  %5681 = vmatpush2.bf16.msra.mxu1 %v5736_v25  ;;  %v5838_v25 = vld [vmem:[#allocation5 + $0x5c4] ss:$16 sps:$4 sm:$0xff]  }
  0x70   :  { %2188 = vmatprep.subr.bf16.mxu0 %v5737_v26  ;;  %5666 = vmatprep.subr.bf16.mxu1 %v5737_v26  ;;  %v5839_v26 = vld [vmem:[#allocation2 + $0x11c] ss:$28 sps:$4 sm:$0xff]  }
  0x73   :  { %2189 = vmatpush2.bf16.msra.mxu0 %v5739_v27  ;;  %5682 = vmatpush2.bf16.msra.mxu1 %v5739_v27  ;;  %v5841_v27 = vld [vmem:[#allocation2 + $0x2dc] ss:$28 sps:$4 sm:$0xff]  }
  0x74   :  { %2190 = vmatprep.subr.bf16.mxu0 %v5740_v28  ;;  %5667 = vmatprep.subr.bf16.mxu1 %v5740_v28  ;;  %v5833_v28 = vld [vmem:[#allocation5 + $0x3c0] ss:$16 sps:$4 sm:$0xff]  }
  0x77   :  { %2191 = vmatpush2.bf16.msra.mxu0 %v5742_v29  ;;  %5683 = vmatpush2.bf16.msra.mxu1 %v5742_v29  ;;  %v5836_v29 = vld [vmem:[#allocation5 + $0x5c0] ss:$16 sps:$4 sm:$0xff]  }
  0x78   :  { %2192 = vmatprep.subr.bf16.mxu0 %v5743_v30  ;;  %5668 = vmatprep.subr.bf16.mxu1 %v5743_v30  ;;  %v5843_v30 = vld [vmem:[#allocation2 + $0x118] ss:$28 sps:$4 sm:$0xff]  }
  0x7b   :  { %2193 = vmatpush2.bf16.msra.mxu0 %v5745_v31  ;;  %5684 = vmatpush2.bf16.msra.mxu1 %v5745_v31  ;;  %v5847_v31 = vld [vmem:[#allocation5 + $0x3a4] ss:$16 sps:$4 sm:$0xff]  }
  0x7c   :  { %2194 = vmatprep.subr.bf16.mxu0 %v5746_v32  ;;  %5669 = vmatprep.subr.bf16.mxu1 %v5746_v32  ;;  %v5850_v32 = vld [vmem:[#allocation5 + $0x5a4] ss:$16 sps:$4 sm:$0xff]  }
  0x7f   :  { %2195 = vmatpush2.bf16.msra.mxu0 %v5748_v33  ;;  %5685 = vmatpush2.bf16.msra.mxu1 %v5748_v33  ;;  %v5844_v33 = vld [vmem:[#allocation2 + $0x2d8] ss:$28 sps:$4 sm:$0xff]  }
  0x80   :  { %2357 = vmatprep.subr.bf16.mxu1 %v5757_v34  ;;  %2550 = vmatprep.subr.bf16.mxu0 %v5760_v36  ;;  %v5845_v34 = vld [vmem:[#allocation5 + $0x3a0] ss:$16 sps:$4 sm:$0xff]   ;;  %v5853_v36 = vld [vmem:[#allocation5 + $0x384] ss:$16 sps:$4 sm:$0xff]  }
  0x82   :  { %2197 = vmatmul.mubr.bf16.vlgmr.msra.gmra.mxu0 %v5749_v35  ;;  %2277 = vmatmul.mubr.bf16.vlgmr.msra.gmra.mxu1 %v5752_v37  ;;  %v5848_v35 = vld [vmem:[#allocation5 + $0x5a0] ss:$16 sps:$4 sm:$0xff]   ;;  %v5856_v37 = vld [vmem:[#allocation5 + $0x584] ss:$16 sps:$4 sm:$0xff]  }
  0x83   :  { %2358 = vmatpush1.bf16.msra.mxu1 %v5755_v38  ;;  %2551 = vmatpush1.bf16.msra.mxu0 %v5758_v39  ;;  %v5857_v38 = vld [vmem:[#allocation2 + $0x154] ss:$28 sps:$4 sm:$0xff]  }
  0x84   :  { %2359 = vmatprep.subr.bf16.mxu1 %v5763_v40  ;;  %2552 = vmatprep.subr.bf16.mxu0 %v5766_v41  ;;  %v5859_v39 = vld [vmem:[#allocation2 + $0x314] ss:$28 sps:$4 sm:$0xff]  }
  0x85   :  { %2206 = vmatprep.mubr.bf16.mxu0 %v5767_v42  ;;  %2286 = vmatprep.mubr.bf16.mxu1 %v5769_v43  ;;  %v5851_v40 = vld [vmem:[#allocation5 + $0x380] ss:$16 sps:$4 sm:$0xff]   ;;  %v5865_v42 = vld [vmem:[#allocation5 + $0x364] ss:$16 sps:$4 sm:$0xff]  }
  0x86   :  { %v5854_v41 = vld [vmem:[#allocation5 + $0x580] ss:$16 sps:$4 sm:$0xff]  }
  0x87   :  { %2360 = vmatpush1.bf16.msra.mxu1 %v5761_v44  ;;  %2553 = vmatpush1.bf16.msra.mxu0 %v5764_v45  ;;  %v5861_v43 = vld [vmem:[#allocation2 + $0x150] ss:$28 sps:$4 sm:$0xff]   ;;  %v5868_v44 = vld [vmem:[#allocation5 + $0x564] ss:$16 sps:$4 sm:$0xff]  }
  0x88   :  { %2361 = vmatprep.subr.bf16.mxu1 %v5775_v46  ;;  %2554 = vmatprep.subr.bf16.mxu0 %v5778_v48  ;;  %v5862_v45 = vld [vmem:[#allocation2 + $0x310] ss:$28 sps:$4 sm:$0xff]   ;;  %v5871_v48 = vld [vmem:[#allocation5 + $0x344] ss:$16 sps:$4 sm:$0xff]  }
  0x89   :  { %v5863_v46 = vld [vmem:[#allocation5 + $0x360] ss:$16 sps:$4 sm:$0xff]  }
  0x8a   :  { %2207 = vmatmul.mubr.bf16.gmra.mxu0 %v5771_v47  ;;  %2287 = vmatmul.mubr.bf16.gmra.mxu1 %v5772_v49  ;;  %v5866_v47 = vld [vmem:[#allocation5 + $0x560] ss:$16 sps:$4 sm:$0xff]   ;;  %v5874_v49 = vld [vmem:[#allocation5 + $0x544] ss:$16 sps:$4 sm:$0xff]  }
  0x8b   :  { %2362 = vmatpush1.bf16.msra.mxu1 %v5773_v50  ;;  %2555 = vmatpush1.bf16.msra.mxu0 %v5776_v51  ;;  %v5875_v50 = vld [vmem:[#allocation2 + $0x18c] ss:$28 sps:$4 sm:$0xff]  }
  0x8c   :  { %2363 = vmatprep.subr.bf16.mxu1 %v5781_v52  ;;  %2556 = vmatprep.subr.bf16.mxu0 %v5784_v53  ;;  %v5877_v51 = vld [vmem:[#allocation2 + $0x34c] ss:$28 sps:$4 sm:$0xff]   ;;  %v5869_v52 = vld [vmem:[#allocation5 + $0x340] ss:$16 sps:$4 sm:$0xff]  }
  0x8d   :  { %2216 = vmatprep.mubr.bf16.mxu0 %v5785_v54  ;;  %2296 = vmatprep.mubr.bf16.mxu1 %v5787_v55  ;;  %v5872_v53 = vld [vmem:[#allocation5 + $0x540] ss:$16 sps:$4 sm:$0xff]   ;;  %v5883_v54 = vld [vmem:[#allocation5 + $0x324] ss:$16 sps:$4 sm:$0xff]  }
  0x8e   :  { %v5879_v55 = vld [vmem:[#allocation2 + $0x188] ss:$28 sps:$4 sm:$0xff]  }
  0x8f   :  { %2364 = vmatpush1.bf16.msra.mxu1 %v5779_v56  ;;  %2557 = vmatpush1.bf16.msra.mxu0 %v5782_v57  ;;  %v5886_v56 = vld [vmem:[#allocation5 + $0x524] ss:$16 sps:$4 sm:$0xff]  }
  0x90   :  { %2365 = vmatprep.subr.bf16.mxu1 %v5793_v58  ;;  %2558 = vmatprep.subr.bf16.mxu0 %v5796_v60  ;;  %v5880_v57 = vld [vmem:[#allocation2 + $0x348] ss:$28 sps:$4 sm:$0xff]   ;;  %v5881_v58 = vld [vmem:[#allocation5 + $0x320] ss:$16 sps:$4 sm:$0xff]  }
  0x91   :  { %v5889_v60 = vld [vmem:[#allocation5 + $0x304] ss:$16 sps:$4 sm:$0xff]  }
  0x92   :  { %2217 = vmatmul.mubr.bf16.gmra.mxu0 %v5789_v59  ;;  %2297 = vmatmul.mubr.bf16.gmra.mxu1 %v5790_v61  ;;  %v5884_v59 = vld [vmem:[#allocation5 + $0x520] ss:$16 sps:$4 sm:$0xff]   ;;  %v5892_v61 = vld [vmem:[#allocation5 + $0x504] ss:$16 sps:$4 sm:$0xff]  }
  0x93   :  { %2366 = vmatpush1.bf16.msra.mxu1 %v5791_v62  ;;  %2559 = vmatpush1.bf16.msra.mxu0 %v5794_v63  ;;  %v5895_v62 = vld [vmem:[#allocation2 + $0xc] ss:$28 sps:$4 sm:$0xff]   ;;  %v5898_v63 = vld [vmem:[#allocation2 + $0x14] ss:$28 sps:$4 sm:$0xff]  }
  0x94   :  { %2367 = vmatprep.subr.bf16.mxu1 %v5799_v0  ;;  %2560 = vmatprep.subr.bf16.mxu0 %v5802_v1  ;;  %v5887_v0 = vld [vmem:[#allocation5 + $0x300] ss:$16 sps:$4 sm:$0xff]  }
  0x95   :  { %2226 = vmatprep.mubr.bf16.mxu0 %v5803_v2  ;;  %2306 = vmatprep.mubr.bf16.mxu1 %v5805_v3  ;;  %v5890_v1 = vld [vmem:[#allocation5 + $0x500] ss:$16 sps:$4 sm:$0xff]   ;;  %v5901_v2 = vld [vmem:[#allocation5 + $0x6e4] ss:$16 sps:$4 sm:$0xff]   ;;  %v5964_v3 = vld [vmem:[#allocation5 + $0xec] ss:$16 sps:$4 sm:$0xff]  }
  0x97   :  { %2368 = vmatpush1.bf16.msra.mxu1 %v5797_v4  ;;  %2561 = vmatpush1.bf16.msra.mxu0 %v5800_v5  ;;  %v5893_v4 = vld [vmem:[#allocation2 + $0x8] ss:$28 sps:$4 sm:$0xff]   ;;  %v5896_v5 = vld [vmem:[#allocation2 + $0x10] ss:$28 sps:$4 sm:$0xff]  }
  0x98   :  { %2369 = vmatprep.subr.bf16.mxu1 %v5811_v6  ;;  %2562 = vmatprep.subr.bf16.mxu0 %v5814_v8  ;;  %v5899_v6 = vld [vmem:[#allocation5 + $0x6e0] ss:$16 sps:$4 sm:$0xff]   ;;  %v5904_v8 = vld [vmem:[#allocation2 + $0x4c] ss:$28 sps:$4 sm:$0xff]  }
  0x9a   :  { %2227 = vmatmul.mubr.bf16.gmra.mxu0 %v5807_v7  ;;  %2307 = vmatmul.mubr.bf16.gmra.mxu1 %v5808_v9  ;;  %v5902_v7 = vld [vmem:[#allocation2 + $0x44] ss:$28 sps:$4 sm:$0xff]  }
  0x9b   :  { %2370 = vmatpush1.bf16.msra.mxu1 %v5809_v10  ;;  %2563 = vmatpush1.bf16.msra.mxu0 %v5812_v11  ;;  %v5916_v9 = vld [vmem:[#allocation5 + $0x6c4] ss:$16 sps:$4 sm:$0xff]   ;;  %v5962_v10 = vld [vmem:[#allocation5 + $0xe8] ss:$16 sps:$4 sm:$0xff]   ;;  %v5967_v11 = vld [vmem:[#allocation5 + $0xcc] ss:$16 sps:$4 sm:$0xff]  }
  0x9c   :  { %2371 = vmatprep.subr.bf16.mxu1 %v5817_v12  ;;  %2564 = vmatprep.subr.bf16.mxu0 %v5820_v13  ;;  %v5914_v12 = vld [vmem:[#allocation5 + $0x6c0] ss:$16 sps:$4 sm:$0xff]  }
  0x9d   :  { %2236 = vmatprep.mubr.bf16.mxu0 %v5821_v14  ;;  %2316 = vmatprep.mubr.bf16.mxu1 %v5823_v15  ;;  %v5906_v13 = vld [vmem:[#allocation2 + $0x40] ss:$28 sps:$4 sm:$0xff]   ;;  %v5907_v14 = vld [vmem:[#allocation2 + $0x48] ss:$28 sps:$4 sm:$0xff]  }
  0x9e   :  { %v5931_v15 = vld [vmem:[#allocation5 + $0x6a4] ss:$16 sps:$4 sm:$0xff]  }
  0x9f   :  { %2372 = vmatpush1.bf16.msra.mxu1 %v5815_v16  ;;  %2565 = vmatpush1.bf16.msra.mxu0 %v5818_v17  ;;  %v5965_v16 = vld [vmem:[#allocation5 + $0xc8] ss:$16 sps:$4 sm:$0xff]  }
  0xa0   :  { %2373 = vmatprep.subr.bf16.mxu1 %v5829_v18  ;;  %2566 = vmatprep.subr.bf16.mxu0 %v5832_v20  ;;  %v5908_v17 = vld [vmem:[#allocation2 + $0x7c] ss:$28 sps:$4 sm:$0xff]   ;;  %v5910_v18 = vld [vmem:[#allocation2 + $0x84] ss:$28 sps:$4 sm:$0xff]  }
  0xa1   :  { %v5946_v20 = vld [vmem:[#allocation5 + $0x684] ss:$16 sps:$4 sm:$0xff]  }
  0xa2   :  { %2237 = vmatmul.mubr.bf16.gmra.mxu0 %v5825_v19  ;;  %2317 = vmatmul.mubr.bf16.gmra.mxu1 %v5826_v21  ;;  %v5929_v19 = vld [vmem:[#allocation5 + $0x6a0] ss:$16 sps:$4 sm:$0xff]   ;;  %v5976_v21 = vld [vmem:[#allocation5 + $0xac] ss:$16 sps:$4 sm:$0xff]  }
  0xa3   :  { %2374 = vmatpush2.bf16.msra.mxu1 %v5827_v22  ;;  %2567 = vmatpush2.bf16.msra.mxu0 %v5830_v23  ;;  %v5974_v22 = vld [vmem:[#allocation5 + $0xa8] ss:$16 sps:$4 sm:$0xff]   ;;  %v5979_v23 = vld [vmem:[#allocation5 + $0x8c] ss:$16 sps:$4 sm:$0xff]  }
  0xa4   :  { %2375 = vmatprep.subr.bf16.mxu1 %v5835_v24  ;;  %2568 = vmatprep.subr.bf16.mxu0 %v5838_v25  ;;  %v5944_v24 = vld [vmem:[#allocation5 + $0x680] ss:$16 sps:$4 sm:$0xff]   ;;  %v5912_v25 = vld [vmem:[#allocation2 + $0x78] ss:$28 sps:$4 sm:$0xff]  }
  0xa5   :  { %2246 = vmatprep.mubr.bf16.mxu0 %v5839_v26  ;;  %2326 = vmatprep.mubr.bf16.mxu1 %v5841_v27  ;;  %v5913_v26 = vld [vmem:[#allocation2 + $0x80] ss:$28 sps:$4 sm:$0xff]   ;;  %v5961_v27 = vld [vmem:[#allocation5 + $0x664] ss:$16 sps:$4 sm:$0xff]  }
  0xa7   :  { %2376 = vmatpush2.bf16.msra.mxu1 %v5833_v28  ;;  %2569 = vmatpush2.bf16.msra.mxu0 %v5836_v29  ;;  %v5977_v28 = vld [vmem:[#allocation5 + $0x88] ss:$16 sps:$4 sm:$0xff]   ;;  %v5917_v29 = vld [vmem:[#allocation2 + $0xb4] ss:$28 sps:$4 sm:$0xff]  }
  0xa8   :  { %2377 = vmatprep.subr.bf16.mxu1 %v5847_v31  ;;  %2570 = vmatprep.subr.bf16.mxu0 %v5850_v32  ;;  %v5959_v31 = vld [vmem:[#allocation5 + $0x660] ss:$16 sps:$4 sm:$0xff]   ;;  %v5988_v32 = vld [vmem:[#allocation5 + $0x644] ss:$16 sps:$4 sm:$0xff]  }
  0xaa   :  { %2247 = vmatmul.mubr.bf16.gmra.mxu0 %v5843_v30  ;;  %2327 = vmatmul.mubr.bf16.gmra.mxu1 %v5844_v33  ;;  %v5919_v30 = vld [vmem:[#allocation2 + $0xbc] ss:$28 sps:$4 sm:$0xff]  }
  0xab   :  { %2378 = vmatpush2.bf16.msra.mxu1 %v5845_v34  ;;  %2571 = vmatpush2.bf16.msra.mxu0 %v5848_v35  ;;  %v5991_v33 = vld [vmem:[#allocation5 + $0x6c] ss:$16 sps:$4 sm:$0xff]   ;;  %v5989_v34 = vld [vmem:[#allocation5 + $0x68] ss:$16 sps:$4 sm:$0xff]  }
  0xac   :  { %2379 = vmatprep.subr.bf16.mxu1 %v5853_v36  ;;  %2572 = vmatprep.subr.bf16.mxu0 %v5856_v37  ;;  %v5994_v35 = vld [vmem:[#allocation5 + $0x4c] ss:$16 sps:$4 sm:$0xff]   ;;  %v5986_v36 = vld [vmem:[#allocation5 + $0x640] ss:$16 sps:$4 sm:$0xff]  }
  0xad   :  { %2256 = vmatprep.mubr.bf16.mxu0 %v5857_v38  ;;  %2336 = vmatprep.mubr.bf16.mxu1 %v5859_v39  ;;  %v5921_v37 = vld [vmem:[#allocation2 + $0xb0] ss:$28 sps:$4 sm:$0xff]   ;;  %v5922_v38 = vld [vmem:[#allocation2 + $0xb8] ss:$28 sps:$4 sm:$0xff]  }
  0xae   :  { %v5992_v39 = vld [vmem:[#allocation5 + $0x48] ss:$16 sps:$4 sm:$0xff]  }
  0xaf   :  { %2380 = vmatpush2.bf16.msra.mxu1 %v5851_v40  ;;  %2573 = vmatpush2.bf16.msra.mxu0 %v5854_v41  ;;  %v6015_v40 = vld [vmem:[#allocation5 + $0x624] ss:$16 sps:$4 sm:$0xff]   ;;  %v5923_v41 = vld [vmem:[#allocation2 + $0xec] ss:$28 sps:$4 sm:$0xff]  }
  0xb0   :  { %2381 = vmatprep.subr.bf16.mxu1 %v5865_v42  ;;  %2574 = vmatprep.subr.bf16.mxu0 %v5868_v44  ;;  %v5925_v42 = vld [vmem:[#allocation2 + $0xf4] ss:$28 sps:$4 sm:$0xff]   ;;  %v6003_v44 = vld [vmem:[#allocation5 + $0x2c] ss:$16 sps:$4 sm:$0xff]  }
  0xb2   :  { %2257 = vmatmul.mubr.bf16.gmra.mxu0 %v5861_v43  ;;  %2337 = vmatmul.mubr.bf16.gmra.mxu1 %v5862_v45  ;;  %v6001_v43 = vld [vmem:[#allocation5 + $0x28] ss:$16 sps:$4 sm:$0xff]   ;;  %v6013_v45 = vld [vmem:[#allocation5 + $0x620] ss:$16 sps:$4 sm:$0xff]  }
  0xb3   :  { %2382 = vmatpush2.bf16.msra.mxu1 %v5863_v46  ;;  %2575 = vmatpush2.bf16.msra.mxu0 %v5866_v47  ;;  %v6042_v46 = vld [vmem:[#allocation5 + $0x604] ss:$16 sps:$4 sm:$0xff]   ;;  %v6006_v47 = vld [vmem:[#allocation5 + $0xc] ss:$16 sps:$4 sm:$0xff]  }
  0xb4   :  { %2383 = vmatprep.subr.bf16.mxu1 %v5871_v48  ;;  %2576 = vmatprep.subr.bf16.mxu0 %v5874_v49  ;;  %v6040_v48 = vld [vmem:[#allocation5 + $0x600] ss:$16 sps:$4 sm:$0xff]   ;;  %v6004_v49 = vld [vmem:[#allocation5 + $0x8] ss:$16 sps:$4 sm:$0xff]  }
  0xb5   :  { %2266 = vmatprep.mubr.bf16.mxu0 %v5875_v50  ;;  %2346 = vmatprep.mubr.bf16.mxu1 %v5877_v51  ;;  %v5927_v50 = vld [vmem:[#allocation2 + $0xe8] ss:$28 sps:$4 sm:$0xff]   ;;  %v5928_v51 = vld [vmem:[#allocation2 + $0xf0] ss:$28 sps:$4 sm:$0xff]  }
  0xb7   :  { %2384 = vmatpush2.bf16.msra.mxu1 %v5869_v52  ;;  %2577 = vmatpush2.bf16.msra.mxu0 %v5872_v53  ;;  %v5932_v52 = vld [vmem:[#allocation2 + $0x124] ss:$28 sps:$4 sm:$0xff]   ;;  %v5934_v53 = vld [vmem:[#allocation2 + $0x12c] ss:$28 sps:$4 sm:$0xff]  }
  0xb8   :  { %2385 = vmatprep.subr.bf16.mxu1 %v5883_v54  ;;  %2578 = vmatprep.subr.bf16.mxu0 %v5886_v56  ;;  %v6018_v54 = vld [vmem:[#allocation5 + $0x1ec] ss:$16 sps:$4 sm:$0xff]  }
  0xb9   :  { %v6021_v56 = vld [vmem:[#allocation5 + $0x1cc] ss:$16 sps:$4 sm:$0xff]  }
  0xba   :  { %2267 = vmatmul.mubr.bf16.gmra.mxu0 %v5879_v55  ;;  %2347 = vmatmul.mubr.bf16.gmra.mxu1 %v5880_v57  ;;  %v6016_v55 = vld [vmem:[#allocation5 + $0x1e8] ss:$16 sps:$4 sm:$0xff]   ;;  %v6064_v57 = vld [vmem:[#allocation5 + $0x2ec] ss:$16 sps:$4 sm:$0xff]  }
  0xbb   :  { %2386 = vmatpush2.bf16.msra.mxu1 %v5881_v58  ;;  %2579 = vmatpush2.bf16.msra.mxu0 %v5884_v59  ;;  %v5936_v58 = vld [vmem:[#allocation2 + $0x120] ss:$28 sps:$4 sm:$0xff]   ;;  %v5937_v59 = vld [vmem:[#allocation2 + $0x128] ss:$28 sps:$4 sm:$0xff]  }
  0xbc   :  { %2387 = vmatprep.subr.bf16.mxu1 %v5889_v60  ;;  %2580 = vmatprep.subr.bf16.mxu0 %v5892_v61  ;;  %v6019_v60 = vld [vmem:[#allocation5 + $0x1c8] ss:$16 sps:$4 sm:$0xff]  }
  0xbd   :  { %2389 = vmatprep.mubr.bf16.mxu1 %v5895_v62  ;;  %2582 = vmatprep.mubr.bf16.mxu0 %v5898_v63  ;;  %v5938_v61 = vld [vmem:[#allocation2 + $0x15c] ss:$28 sps:$4 sm:$0xff]   ;;  %v5940_v62 = vld [vmem:[#allocation2 + $0x164] ss:$28 sps:$4 sm:$0xff]  }
  0xbe   :  { %v6030_v63 = vld [vmem:[#allocation5 + $0x1ac] ss:$16 sps:$4 sm:$0xff]  }
  0xbf   :  { %2388 = vmatpush2.bf16.msra.mxu1 %v5887_v0  ;;  %2581 = vmatpush2.bf16.msra.mxu0 %v5890_v1  ;;  %v6028_v0 = vld [vmem:[#allocation5 + $0x1a8] ss:$16 sps:$4 sm:$0xff]   ;;  %v6033_v1 = vld [vmem:[#allocation5 + $0x18c] ss:$16 sps:$4 sm:$0xff]  }
  0xc0   :  { %2743 = vmatprep.subr.bf16.mxu1 %v5901_v2  ;;  %2936 = vmatprep.subr.bf16.mxu0 %v5964_v3  ;;  %v5942_v2 = vld [vmem:[#allocation2 + $0x158] ss:$28 sps:$4 sm:$0xff]   ;;  %v5943_v3 = vld [vmem:[#allocation2 + $0x160] ss:$28 sps:$4 sm:$0xff]  }
  0xc2   :  { %2390 = vmatmul.mubr.bf16.vlgmr.msra.gmra.mxu1 %v5893_v4  ;;  %2583 = vmatmul.mubr.bf16.vlgmr.msra.gmra.mxu0 %v5896_v5  ;;  %v5947_v4 = vld [vmem:[#allocation2 + $0x194] ss:$28 sps:$4 sm:$0xff]   ;;  %v5949_v5 = vld [vmem:[#allocation2 + $0x19c] ss:$28 sps:$4 sm:$0xff]  }
  0xc3   :  { %2744 = vmatpush1.bf16.msra.mxu1 %v5899_v6  ;;  %2399 = vmatprep.mubr.bf16.mxu1 %v5902_v7  ;;  %v6031_v6 = vld [vmem:[#allocation5 + $0x188] ss:$16 sps:$4 sm:$0xff]   ;;  %v6045_v7 = vld [vmem:[#allocation5 + $0x16c] ss:$16 sps:$4 sm:$0xff]  }
  0xc4   :  { %2592 = vmatprep.mubr.bf16.mxu0 %v5904_v8  ;;  %2745 = vmatprep.subr.bf16.mxu1 %v5916_v9  ;;  %v6043_v8 = vld [vmem:[#allocation5 + $0x168] ss:$16 sps:$4 sm:$0xff]   ;;  %v6048_v9 = vld [vmem:[#allocation5 + $0x14c] ss:$16 sps:$4 sm:$0xff]  }
  0xc5   :  { %2937 = vmatpush1.bf16.msra.mxu0 %v5962_v10  ;;  %v6046_v10 = vld [vmem:[#allocation5 + $0x148] ss:$16 sps:$4 sm:$0xff]  }
  0xc6   :  { %2938 = vmatprep.subr.bf16.mxu0 %v5967_v11  ;;  %v5951_v11 = vld [vmem:[#allocation2 + $0x190] ss:$28 sps:$4 sm:$0xff]  }
  0xc7   :  { %2746 = vmatpush1.bf16.msra.mxu1 %v5914_v12  ;;  %v5952_v12 = vld [vmem:[#allocation2 + $0x198] ss:$28 sps:$4 sm:$0xff]  }
  0xc8   :  { %2747 = vmatprep.subr.bf16.mxu1 %v5931_v15  ;;  %v6057_v15 = vld [vmem:[#allocation5 + $0x12c] ss:$16 sps:$4 sm:$0xff]  }
  0xc9   :  { %2939 = vmatpush1.bf16.msra.mxu0 %v5965_v16  ;;  %v6055_v16 = vld [vmem:[#allocation5 + $0x128] ss:$16 sps:$4 sm:$0xff]  }
  0xca   :  { %2400 = vmatmul.mubr.bf16.gmra.mxu1 %v5906_v13  ;;  %2593 = vmatmul.mubr.bf16.gmra.mxu0 %v5907_v14  ;;  %v5953_v13 = vld [vmem:[#allocation2 + $0x1cc] ss:$28 sps:$4 sm:$0xff]   ;;  %v5955_v14 = vld [vmem:[#allocation2 + $0x1d4] ss:$28 sps:$4 sm:$0xff]  }
  0xcb   :  { %2409 = vmatprep.mubr.bf16.mxu1 %v5908_v17  ;;  %2602 = vmatprep.mubr.bf16.mxu0 %v5910_v18  ;;  %v6060_v17 = vld [vmem:[#allocation5 + $0x10c] ss:$16 sps:$4 sm:$0xff]   ;;  %v6058_v18 = vld [vmem:[#allocation5 + $0x108] ss:$16 sps:$4 sm:$0xff]  }
  0xcc   :  { %2748 = vmatpush1.bf16.msra.mxu1 %v5929_v19  ;;  %2940 = vmatprep.subr.bf16.mxu0 %v5976_v21  ;;  %v5957_v19 = vld [vmem:[#allocation2 + $0x1c8] ss:$28 sps:$4 sm:$0xff]  }
  0xcd   :  { %2749 = vmatprep.subr.bf16.mxu1 %v5946_v20  ;;  %2941 = vmatpush1.bf16.msra.mxu0 %v5974_v22  ;;  %v5958_v20 = vld [vmem:[#allocation2 + $0x1d0] ss:$28 sps:$4 sm:$0xff]   ;;  %v5968_v21 = vld [vmem:[#allocation2 + $0x204] ss:$28 sps:$4 sm:$0xff]  }
  0xce   :  { %2942 = vmatprep.subr.bf16.mxu0 %v5979_v23  ;;  %v5970_v22 = vld [vmem:[#allocation2 + $0x20c] ss:$28 sps:$4 sm:$0xff]  }
  0xcf   :  { %v6099_v23 = vld [vmem:[#allocation5 + $0x4ec] ss:$16 sps:$4 sm:$0xff]  }
  0xd0   :  { %2750 = vmatpush1.bf16.msra.mxu1 %v5944_v24  ;;  %v5972_v24 = vld [vmem:[#allocation2 + $0x200] ss:$28 sps:$4 sm:$0xff]  }
  0xd1   :  { %2751 = vmatprep.subr.bf16.mxu1 %v5961_v27  ;;  %2943 = vmatpush1.bf16.msra.mxu0 %v5977_v28  ;;  %v5982_v27 = vld [vmem:[#allocation2 + $0x244] ss:$28 sps:$4 sm:$0xff]   ;;  %v5984_v28 = vld [vmem:[#allocation2 + $0x238] ss:$28 sps:$4 sm:$0xff]  }
  0xd2   :  { %2410 = vmatmul.mubr.bf16.gmra.mxu1 %v5912_v25  ;;  %2603 = vmatmul.mubr.bf16.gmra.mxu0 %v5913_v26  ;;  %v5973_v25 = vld [vmem:[#allocation2 + $0x208] ss:$28 sps:$4 sm:$0xff]   ;;  %v5980_v26 = vld [vmem:[#allocation2 + $0x23c] ss:$28 sps:$4 sm:$0xff]  }
  0xd3   :  { %2419 = vmatprep.mubr.bf16.mxu1 %v5917_v29  ;;  %2612 = vmatprep.mubr.bf16.mxu0 %v5919_v30  ;;  %v5985_v29 = vld [vmem:[#allocation2 + $0x240] ss:$28 sps:$4 sm:$0xff]   ;;  %v5995_v30 = vld [vmem:[#allocation2 + $0x274] ss:$28 sps:$4 sm:$0xff]  }
  0xd4   :  { %2752 = vmatpush1.bf16.msra.mxu1 %v5959_v31  ;;  %2944 = vmatprep.subr.bf16.mxu0 %v5991_v33  ;;  %v5997_v31 = vld [vmem:[#allocation2 + $0x27c] ss:$28 sps:$4 sm:$0xff]  }
  0xd5   :  { %2753 = vmatprep.subr.bf16.mxu1 %v5988_v32  ;;  %2945 = vmatpush1.bf16.msra.mxu0 %v5989_v34  ;;  %v5999_v32 = vld [vmem:[#allocation2 + $0x270] ss:$28 sps:$4 sm:$0xff]   ;;  %v6000_v33 = vld [vmem:[#allocation2 + $0x278] ss:$28 sps:$4 sm:$0xff]  }
  0xd6   :  { %2946 = vmatprep.subr.bf16.mxu0 %v5994_v35  ;;  %v6007_v34 = vld [vmem:[#allocation2 + $0x2ac] ss:$28 sps:$4 sm:$0xff]   ;;  %v6009_v35 = vld [vmem:[#allocation2 + $0x2b4] ss:$28 sps:$4 sm:$0xff]  }
  0xd8   :  { %2754 = vmatpush1.bf16.msra.mxu1 %v5986_v36  ;;  %v6011_v36 = vld [vmem:[#allocation2 + $0x2a8] ss:$28 sps:$4 sm:$0xff]  }
  0xd9   :  { %2947 = vmatpush1.bf16.msra.mxu0 %v5992_v39  ;;  %2755 = vmatprep.subr.bf16.mxu1 %v6015_v40  ;;  %v6024_v39 = vld [vmem:[#allocation2 + $0x2ec] ss:$28 sps:$4 sm:$0xff]   ;;  %v6026_v40 = vld [vmem:[#allocation2 + $0x2e0] ss:$28 sps:$4 sm:$0xff]  }
  0xda   :  { %2420 = vmatmul.mubr.bf16.gmra.mxu1 %v5921_v37  ;;  %2613 = vmatmul.mubr.bf16.gmra.mxu0 %v5922_v38  ;;  %v6012_v37 = vld [vmem:[#allocation2 + $0x2b0] ss:$28 sps:$4 sm:$0xff]   ;;  %v6022_v38 = vld [vmem:[#allocation2 + $0x2e4] ss:$28 sps:$4 sm:$0xff]  }
  0xdb   :  { %2429 = vmatprep.mubr.bf16.mxu1 %v5923_v41  ;;  %2622 = vmatprep.mubr.bf16.mxu0 %v5925_v42  ;;  %v6027_v41 = vld [vmem:[#allocation2 + $0x2e8] ss:$28 sps:$4 sm:$0xff]   ;;  %v6034_v42 = vld [vmem:[#allocation2 + $0x31c] ss:$28 sps:$4 sm:$0xff]  }
  0xdc   :  { %2948 = vmatprep.subr.bf16.mxu0 %v6003_v44  ;;  %2756 = vmatpush1.bf16.msra.mxu1 %v6013_v45  ;;  %v6038_v44 = vld [vmem:[#allocation2 + $0x318] ss:$28 sps:$4 sm:$0xff]   ;;  %v6039_v45 = vld [vmem:[#allocation2 + $0x320] ss:$28 sps:$4 sm:$0xff]  }
  0xdd   :  { %2949 = vmatpush1.bf16.msra.mxu0 %v6001_v43  ;;  %2757 = vmatprep.subr.bf16.mxu1 %v6042_v46  ;;  %v6036_v43 = vld [vmem:[#allocation2 + $0x324] ss:$28 sps:$4 sm:$0xff]   ;;  %v6049_v46 = vld [vmem:[#allocation2 + $0x354] ss:$28 sps:$4 sm:$0xff]  }
  0xde   :  { %2950 = vmatprep.subr.bf16.mxu0 %v6006_v47  ;;  %v6051_v47 = vld [vmem:[#allocation2 + $0x35c] ss:$28 sps:$4 sm:$0xff]  }
  0xe0   :  { %2758 = vmatpush1.bf16.msra.mxu1 %v6040_v48  ;;  %v448_v48 = vlaneseq }
  0xe1   :  { %2951 = vmatpush1.bf16.msra.mxu0 %v6004_v49  ;;  %3129 = vmatprep.subr.bf16.mxu1 %v6064_v57  ;;  %v6053_v49 = vld [vmem:[#allocation2 + $0x350] ss:$28 sps:$4 sm:$0xff]   ;;  %v6061_v57 = vld [vmem:[#allocation2 + $0x18] ss:$28 sps:$4 sm:$0xff]  }
  0xe2   :  { %2430 = vmatmul.mubr.bf16.gmra.mxu1 %v5927_v50  ;;  %2623 = vmatmul.mubr.bf16.gmra.mxu0 %v5928_v51  ;;  %v6054_v50 = vld [vmem:[#allocation2 + $0x358] ss:$28 sps:$4 sm:$0xff]   ;;  %v6623_v51 = vshrl.u32 %v448_v48, 7  ;;  %v6122_v48 = vld [vmem:[#allocation5 + $0x44c] ss:$16 sps:$4 sm:$0xff]  }
  0xe3   :  { %2439 = vmatprep.mubr.bf16.mxu1 %v5932_v52  ;;  %2632 = vmatprep.mubr.bf16.mxu0 %v5934_v53  ;;  %v8099_v53 = vmov 0  }
  0xe4   :  { %2952 = vmatprep.subr.bf16.mxu0 %v6018_v54  ;;  %8105 = vst [vmem:[#allocation16_spill] sm:$0xff] %v6623_v51  ;;  %v8097_v52 = vsub.s32 0, %v6623_v51  ;;  %v6309_v54 = vld [vmem:[#allocation2 + $0x4] ss:$28 sps:$4 sm:$0xff]  }
  0xe5   :  { %2953 = vmatpush2.bf16.msra.mxu0 %v6016_v55  ;;  %v446_v55 = vld [vmem:[#allocation7] sm:$0xf] }
  0xe6   :  { %2954 = vmatprep.subr.bf16.mxu0 %v6021_v56  ;;  %v8098_v56 = vsub.s32 1, %v6623_v51 }
  0xe9   :  { %2955 = vmatpush2.bf16.msra.mxu0 %v6019_v60  ;;  %v6068_v60 = vld [vmem:[#allocation5 + $0x2cc] ss:$16 sps:$4 sm:$0xff]  }
  0xea   :  { %2440 = vmatmul.mubr.bf16.gmra.mxu1 %v5936_v58  ;;  %2633 = vmatmul.mubr.bf16.gmra.mxu0 %v5937_v59  ;;  %v6062_v58 = vld [vmem:[#allocation5 + $0x2e8] ss:$16 sps:$4 sm:$0xff]   ;;  %v6630_v59 = vrot.slane %v446_v55, %v8097_v52  ;;  %v6159_v52 = vld [vmem:[#allocation5 + $0x56c] ss:$16 sps:$4 sm:$0xff]  }
  0xeb   :  { %2449 = vmatprep.mubr.bf16.mxu1 %v5938_v61  ;;  %2642 = vmatprep.mubr.bf16.mxu0 %v5940_v62  ;;  %v6634_v61 = vrot.slane %v446_v55, %v8098_v56  ;;  %v6097_v62 = vld [vmem:[#allocation5 + $0x4e8] ss:$16 sps:$4 sm:$0xff]  }
  0xec   :  { %2956 = vmatprep.subr.bf16.mxu0 %v6030_v63 }
  0xed   :  { %2957 = vmatpush2.bf16.msra.mxu0 %v6028_v0 }
  0xee   :  { %2958 = vmatprep.subr.bf16.mxu0 %v6033_v1  ;;  %v6310_v1 = vld [vmem:[#allocation2] ss:$28 sps:$4 sm:$0xff]  }
  0xf1   :  { %2959 = vmatpush2.bf16.msra.mxu0 %v6031_v6 }
  0xf2   :  { %2450 = vmatmul.mubr.bf16.gmra.mxu1 %v5942_v2  ;;  %2643 = vmatmul.mubr.bf16.gmra.mxu0 %v5943_v3  ;;  %v6102_v2 = vld [vmem:[#allocation5 + $0x4cc] ss:$16 sps:$4 sm:$0xff]  }
  0xf3   :  { %2459 = vmatprep.mubr.bf16.mxu1 %v5947_v4  ;;  %2652 = vmatprep.mubr.bf16.mxu0 %v5949_v5  ;;  %v6066_v4 = vld [vmem:[#allocation5 + $0x2c8] ss:$16 sps:$4 sm:$0xff]  }
  0xf4   :  { %2960 = vmatprep.subr.bf16.mxu0 %v6045_v7  ;;  %v6311_v7 = vld [vmem:[#allocation2 + $0x3c] ss:$28 sps:$4 sm:$0xff]  }
  0xf5   :  { %2961 = vmatpush2.bf16.msra.mxu0 %v6043_v8  ;;  %v6072_v8 = vld [vmem:[#allocation5 + $0x2ac] ss:$16 sps:$4 sm:$0xff]  }
  0xf6   :  { %2962 = vmatprep.subr.bf16.mxu0 %v6048_v9 }
  0xf9   :  { %2963 = vmatpush2.bf16.msra.mxu0 %v6046_v10  ;;  %v6100_v10 = vld [vmem:[#allocation5 + $0x4c8] ss:$16 sps:$4 sm:$0xff]  }
  0xfa   :  { %2460 = vmatmul.mubr.bf16.gmra.mxu1 %v5951_v11  ;;  %2653 = vmatmul.mubr.bf16.gmra.mxu0 %v5952_v12 }
  0xfb   :  { %2469 = vmatprep.mubr.bf16.mxu1 %v5953_v13  ;;  %2662 = vmatprep.mubr.bf16.mxu0 %v5955_v14  ;;  %v6065_v13 = vld [vmem:[#allocation2 + $0x50] ss:$28 sps:$4 sm:$0xff]  }
  0xfc   :  { %2964 = vmatprep.subr.bf16.mxu0 %v6057_v15 }
  0xfd   :  { %2965 = vmatpush2.bf16.msra.mxu0 %v6055_v16 }
  0xfe   :  { %2966 = vmatprep.subr.bf16.mxu0 %v6060_v17  ;;  %v6070_v17 = vld [vmem:[#allocation5 + $0x2a8] ss:$16 sps:$4 sm:$0xff]  }
 0x101   :  { %2967 = vmatpush2.bf16.msra.mxu0 %v6058_v18  ;;  %v6109_v18 = vld [vmem:[#allocation5 + $0x4ac] ss:$16 sps:$4 sm:$0xff]  }
 0x102   :  { %2470 = vmatmul.mubr.bf16.gmra.mxu1 %v5957_v19  ;;  %2663 = vmatmul.mubr.bf16.gmra.mxu0 %v5958_v20  ;;  %v6076_v20 = vld [vmem:[#allocation5 + $0x28c] ss:$16 sps:$4 sm:$0xff]  }
 0x103   :  { %2479 = vmatprep.mubr.bf16.mxu1 %v5968_v21  ;;  %2672 = vmatprep.mubr.bf16.mxu0 %v5970_v22  ;;  %v6107_v21 = vld [vmem:[#allocation5 + $0x4a8] ss:$16 sps:$4 sm:$0xff]  }
 0x104   :  { %3322 = vmatprep.subr.bf16.mxu0 %v6099_v23 }
 0x10a   :  { %2480 = vmatmul.mubr.bf16.gmra.mxu1 %v5972_v24  ;;  %2673 = vmatmul.mubr.bf16.gmra.mxu0 %v5973_v25  ;;  %v6312_v24 = vld [vmem:[#allocation2 + $0x38] ss:$28 sps:$4 sm:$0xff]   ;;  %v6112_v25 = vld [vmem:[#allocation5 + $0x48c] ss:$16 sps:$4 sm:$0xff]  }
 0x10b   :  { %2489 = vmatprep.mubr.bf16.mxu1 %v5980_v26  ;;  %2682 = vmatprep.mubr.bf16.mxu0 %v5982_v27  ;;  %v6313_v27 = vld [vmem:[#allocation2 + $0x74] ss:$28 sps:$4 sm:$0xff]  }
 0x112   :  { %2490 = vmatmul.mubr.bf16.gmra.mxu1 %v5984_v28  ;;  %2683 = vmatmul.mubr.bf16.gmra.mxu0 %v5985_v29 }
 0x113   :  { %2499 = vmatprep.mubr.bf16.mxu1 %v5995_v30  ;;  %2692 = vmatprep.mubr.bf16.mxu0 %v5997_v31  ;;  %v6074_v30 = vld [vmem:[#allocation5 + $0x288] ss:$16 sps:$4 sm:$0xff]  }
 0x11a   :  { %2500 = vmatmul.mubr.bf16.gmra.mxu1 %v5999_v32  ;;  %2693 = vmatmul.mubr.bf16.gmra.mxu0 %v6000_v33  ;;  %v6080_v32 = vld [vmem:[#allocation5 + $0x26c] ss:$16 sps:$4 sm:$0xff]   ;;  %v6110_v33 = vld [vmem:[#allocation5 + $0x488] ss:$16 sps:$4 sm:$0xff]  }
 0x11b   :  { %2509 = vmatprep.mubr.bf16.mxu1 %v6007_v34  ;;  %2702 = vmatprep.mubr.bf16.mxu0 %v6009_v35 }
 0x122   :  { %2510 = vmatmul.mubr.bf16.gmra.mxu1 %v6011_v36  ;;  %2703 = vmatmul.mubr.bf16.gmra.mxu0 %v6012_v37  ;;  %v6069_v36 = vld [vmem:[#allocation2 + $0x88] ss:$28 sps:$4 sm:$0xff]  }
 0x123   :  { %2519 = vmatprep.mubr.bf16.mxu1 %v6022_v38  ;;  %2712 = vmatprep.mubr.bf16.mxu0 %v6024_v39 }
 0x12a   :  { %2520 = vmatmul.mubr.bf16.gmra.mxu1 %v6026_v40  ;;  %2713 = vmatmul.mubr.bf16.gmra.mxu0 %v6027_v41  ;;  %v6078_v40 = vld [vmem:[#allocation5 + $0x268] ss:$16 sps:$4 sm:$0xff]   ;;  %v6119_v41 = vld [vmem:[#allocation5 + $0x46c] ss:$16 sps:$4 sm:$0xff]  }
 0x12b   :  { %2529 = vmatprep.mubr.bf16.mxu1 %v6034_v42  ;;  %2722 = vmatprep.mubr.bf16.mxu0 %v6036_v43  ;;  %v6084_v43 = vld [vmem:[#allocation5 + $0x24c] ss:$16 sps:$4 sm:$0xff]  }
 0x132   :  { %2530 = vmatmul.mubr.bf16.gmra.mxu1 %v6038_v44  ;;  %2723 = vmatmul.mubr.bf16.gmra.mxu0 %v6039_v45  ;;  %v6117_v44 = vld [vmem:[#allocation5 + $0x468] ss:$16 sps:$4 sm:$0xff]  }
 0x133   :  { %2539 = vmatprep.mubr.bf16.mxu1 %v6049_v46  ;;  %2732 = vmatprep.mubr.bf16.mxu0 %v6051_v47  ;;  %v6314_v47 = vld [vmem:[#allocation2 + $0x70] ss:$28 sps:$4 sm:$0xff]  }
 0x13a   :  { %2540 = vmatmul.mubr.bf16.gmra.mxu1 %v6053_v49  ;;  %2733 = vmatmul.mubr.bf16.gmra.mxu0 %v6054_v50  ;;  %v6315_v50 = vld [vmem:[#allocation2 + $0xac] ss:$28 sps:$4 sm:$0xff]  }
 0x13b   :  { %2775 = vmatprep.mubr.bf16.mxu1 %v8099_v53  ;;  %2968 = vmatprep.mubr.bf16.mxu0 %v6309_v54 }
 0x142   :  { %v6636_v63 = vpop.f32.mrf.mxu0  ;;  %v2278_v0 = vpop.f32.mrf.mxu1  ;;  %2776 = vmatmul.mubr.bf16.vlgmr.msra.gmra.mxu1 %v6061_v57  ;;  %2969 = vmatmul.mubr.bf16.vlgmr.msra.gmra.mxu0 %v6310_v1  ;;  %v6082_v57 = vld [vmem:[#allocation5 + $0x248] ss:$16 sps:$4 sm:$0xff]  }
 0x143   :  { %v6639_v3 = vadd.f32 %v2278_v0, %v6630_v59  ;;  %3130 = vmatpush1.bf16.msra.mxu1 %v6062_v58  ;;  %2785 = vmatprep.mubr.bf16.mxu1 %v8099_v53 }
 0x144   :  { %v6642_v5 = vpop.f32.mrf.mxu0  ;;  %v2280_v6 = vpop.f32.mrf.mxu1  ;;  %2978 = vmatprep.mubr.bf16.mxu0 %v6311_v7  ;;  %3131 = vmatprep.subr.bf16.mxu1 %v6068_v60  ;;  %v6088_v60 = vld [vmem:[#allocation5 + $0x22c] ss:$16 sps:$4 sm:$0xff]  }
 0x145   :  { %v6645_v9 = vadd.f32 %v2280_v6, %v6634_v61  ;;  %3323 = vmatpush1.bf16.msra.mxu0 %v6097_v62  ;;  %v6120_v62 = vld [vmem:[#allocation5 + $0x448] ss:$16 sps:$4 sm:$0xff]  }
 0x146   :  { %v6647_v11 = vpop.f32.mrf.mxu0  ;;  %v2282_v12 = vpop.f32.mrf.mxu1  ;;  %3324 = vmatprep.subr.bf16.mxu0 %v6102_v2  ;;  %v6073_v2 = vld [vmem:[#allocation2 + $0xc0] ss:$28 sps:$4 sm:$0xff]  }
 0x147   :  { %v6650_v14 = vadd.f32 %v2282_v12, %v6630_v59  ;;  %3132 = vmatpush1.bf16.msra.mxu1 %v6066_v4 }
 0x148   :  { %v6652_v15 = vpop.f32.mrf.mxu0  ;;  %v2284_v16 = vpop.f32.mrf.mxu1  ;;  %3133 = vmatprep.subr.bf16.mxu1 %v6072_v8  ;;  %v6086_v8 = vld [vmem:[#allocation5 + $0x228] ss:$16 sps:$4 sm:$0xff]  }
 0x149   :  { %v6655_v19 = vadd.f32 %v2284_v16, %v6634_v61  ;;  %3325 = vmatpush1.bf16.msra.mxu0 %v6100_v10  ;;  %v6129_v10 = vld [vmem:[#allocation5 + $0x42c] ss:$16 sps:$4 sm:$0xff]   ;;  %v6127_v16 = vld [vmem:[#allocation5 + $0x428] ss:$16 sps:$4 sm:$0xff]  }
 0x14a   :  { %v6657_v22 = vpop.f32.mrf.mxu0  ;;  %v2288_v23 = vpop.f32.mrf.mxu1  ;;  %2786 = vmatmul.mubr.bf16.gmra.mxu1 %v6065_v13  ;;  %2979 = vmatmul.mubr.bf16.gmra.mxu0 %v6312_v24  ;;  %v6092_v13 = vld [vmem:[#allocation5 + $0x20c] ss:$16 sps:$4 sm:$0xff]   ;;  %v6317_v24 = vld [vmem:[#allocation2 + $0xe4] ss:$28 sps:$4 sm:$0xff]  }
 0x14b   :  { %v6660_v26 = vadd.f32 %v2288_v23, %v6630_v59  ;;  %2795 = vmatprep.mubr.bf16.mxu1 %v8099_v53  ;;  %2988 = vmatprep.mubr.bf16.mxu0 %v6313_v27 }
 0x14c   :  { %v6663_v28 = vpop.f32.mrf.mxu0  ;;  %v2290_v29 = vpop.f32.mrf.mxu1  ;;  %3134 = vmatpush1.bf16.msra.mxu1 %v6070_v17  ;;  %3326 = vmatprep.subr.bf16.mxu0 %v6109_v18 }
 0x14d   :  { %v6666_v31 = vadd.f32 %v2290_v29, %v6634_v61  ;;  %3135 = vmatprep.subr.bf16.mxu1 %v6076_v20  ;;  %3327 = vmatpush1.bf16.msra.mxu0 %v6107_v21  ;;  %v6316_v20 = vld [vmem:[#allocation2 + $0xa8] ss:$28 sps:$4 sm:$0xff]   ;;  %v6132_v21 = vld [vmem:[#allocation5 + $0x40c] ss:$16 sps:$4 sm:$0xff]  }
 0x14e   :  { %v6668_v34 = vpop.f32.mrf.mxu0  ;;  %v2292_v35 = vpop.f32.mrf.mxu1  ;;  %3328 = vmatprep.subr.bf16.mxu0 %v6112_v25  ;;  %v6090_v29 = vld [vmem:[#allocation5 + $0x208] ss:$16 sps:$4 sm:$0xff]  }
 0x14f   :  { %v6671_v37 = vadd.f32 %v2292_v35, %v6630_v59 }
 0x150   :  { %v6673_v38 = vpop.f32.mrf.mxu0  ;;  %v2294_v39 = vpop.f32.mrf.mxu1  ;;  %3136 = vmatpush1.bf16.msra.mxu1 %v6074_v30 }
 0x151   :  { %v6676_v42 = vadd.f32 %v2294_v39, %v6634_v61  ;;  %3137 = vmatprep.subr.bf16.mxu1 %v6080_v32  ;;  %3329 = vmatpush1.bf16.msra.mxu0 %v6110_v33  ;;  %v6096_v32 = vld [vmem:[#allocation5 + $0x3ec] ss:$16 sps:$4 sm:$0xff]   ;;  %v6130_v33 = vld [vmem:[#allocation5 + $0x408] ss:$16 sps:$4 sm:$0xff]  }
 0x152   :  { %v6678_v45 = vpop.f32.mrf.mxu0  ;;  %v2298_v46 = vpop.f32.mrf.mxu1  ;;  %2796 = vmatmul.mubr.bf16.gmra.mxu1 %v6069_v36  ;;  %2989 = vmatmul.mubr.bf16.gmra.mxu0 %v6314_v47  ;;  %v6077_v39 = vld [vmem:[#allocation2 + $0xf8] ss:$28 sps:$4 sm:$0xff]  }
 0x153   :  { %v6681_v49 = vadd.f32 %v2298_v46, %v6630_v59  ;;  %2805 = vmatprep.mubr.bf16.mxu1 %v8099_v53  ;;  %2998 = vmatprep.mubr.bf16.mxu0 %v6315_v50  ;;  %v6139_v46 = vld [vmem:[#allocation5 + $0x5ec] ss:$16 sps:$4 sm:$0xff]   ;;  %v6137_v50 = vld [vmem:[#allocation5 + $0x5e8] ss:$16 sps:$4 sm:$0xff]  }
 0x154   :  { %v6684_v54 = vpop.f32.mrf.mxu0  ;;  %v2300_v55 = vpop.f32.mrf.mxu1  ;;  %3138 = vmatpush1.bf16.msra.mxu1 %v6078_v40  ;;  %3330 = vmatprep.subr.bf16.mxu0 %v6119_v41 }
 0x155   :  { %v6687_v58 = vadd.f32 %v2300_v55, %v6634_v61  ;;  %3139 = vmatprep.subr.bf16.mxu1 %v6084_v43  ;;  %3331 = vmatpush1.bf16.msra.mxu0 %v6117_v44  ;;  %v6094_v44 = vld [vmem:[#allocation5 + $0x3e8] ss:$16 sps:$4 sm:$0xff]  }
 0x156   :  { %v6689_v0 = vpop.f32.mrf.mxu0  ;;  %v2302_v1 = vpop.f32.mrf.mxu1  ;;  %3332 = vmatprep.subr.bf16.mxu0 %v6122_v48  ;;  %v6106_v48 = vld [vmem:[#allocation5 + $0x3cc] ss:$16 sps:$4 sm:$0xff]  }
 0x157   :  { %v6692_v4 = vadd.f32 %v2302_v1, %v6630_v59 }
 0x158   :  { %v6694_v6 = vpop.f32.mrf.mxu0  ;;  %v2304_v7 = vpop.f32.mrf.mxu1  ;;  %3140 = vmatpush1.bf16.msra.mxu1 %v6082_v57 }
 0x159   :  { %v6697_v12 = vadd.f32 %v2304_v7, %v6634_v61  ;;  %3141 = vmatprep.subr.bf16.mxu1 %v6088_v60  ;;  %3333 = vmatpush1.bf16.msra.mxu0 %v6120_v62  ;;  %v6318_v60 = vld [vmem:[#allocation2 + $0xe0] ss:$28 sps:$4 sm:$0xff]  }
 0x15a   :  { %v6699_v17 = vpop.f32.mrf.mxu0  ;;  %v2308_v18 = vpop.f32.mrf.mxu1  ;;  %2806 = vmatmul.mubr.bf16.gmra.mxu1 %v6073_v2  ;;  %2999 = vmatmul.mubr.bf16.gmra.mxu0 %v6316_v20  ;;  %v6142_v62 = vld [vmem:[#allocation5 + $0x5cc] ss:$16 sps:$4 sm:$0xff]  }
 0x15b   :  { %v6702_v23 = vadd.f32 %v2308_v18, %v6630_v59  ;;  %2815 = vmatprep.mubr.bf16.mxu1 %v8099_v53  ;;  %3008 = vmatprep.mubr.bf16.mxu0 %v6317_v24  ;;  %v6319_v2 = vld [vmem:[#allocation2 + $0x11c] ss:$28 sps:$4 sm:$0xff]   ;;  %v6081_v24 = vld [vmem:[#allocation2 + $0x130] ss:$28 sps:$4 sm:$0xff]  }
 0x15c   :  { %v6705_v25 = vpop.f32.mrf.mxu0  ;;  %v2310_v27 = vpop.f32.mrf.mxu1  ;;  %3142 = vmatpush1.bf16.msra.mxu1 %v6086_v8  ;;  %3334 = vmatprep.subr.bf16.mxu0 %v6129_v10  ;;  %v6104_v10 = vld [vmem:[#allocation5 + $0x3c8] ss:$16 sps:$4 sm:$0xff]  }
 0x15d   :  { %v6708_v30 = vadd.f32 %v2310_v27, %v6634_v61  ;;  %3143 = vmatprep.subr.bf16.mxu1 %v6092_v13  ;;  %3335 = vmatpush1.bf16.msra.mxu0 %v6127_v16  ;;  %v6116_v16 = vld [vmem:[#allocation5 + $0x3ac] ss:$16 sps:$4 sm:$0xff]   ;;  %v6140_v18 = vld [vmem:[#allocation5 + $0x5c8] ss:$16 sps:$4 sm:$0xff]  }
 0x15e   :  { %v6710_v35 = vpop.f32.mrf.mxu0  ;;  %v2312_v36 = vpop.f32.mrf.mxu1  ;;  %3336 = vmatprep.subr.bf16.mxu0 %v6132_v21 }
 0x15f   :  { %8106 = vst [vmem:[#allocation17_spill] sm:$0xff] %v6708_v30  ;;  %v6713_v40 = vadd.f32 %v2312_v36, %v6630_v59  ;;  %v6149_v36 = vld [vmem:[#allocation5 + $0x5ac] ss:$16 sps:$4 sm:$0xff]  }
 0x160   :  { %v6715_v41 = vpop.f32.mrf.mxu0  ;;  %v2314_v43 = vpop.f32.mrf.mxu1  ;;  %3144 = vmatpush1.bf16.msra.mxu1 %v6090_v29 }
 0x161   :  { %8107 = vst [vmem:[#allocation18_spill] sm:$0xff] %v6713_v40  ;;  %v6718_v47 = vadd.f32 %v2314_v43, %v6634_v61  ;;  %3145 = vmatprep.subr.bf16.mxu1 %v6096_v32  ;;  %3337 = vmatpush1.bf16.msra.mxu0 %v6130_v33  ;;  %v6114_v33 = vld [vmem:[#allocation5 + $0x3a8] ss:$16 sps:$4 sm:$0xff]   ;;  %v6126_v43 = vld [vmem:[#allocation5 + $0x38c] ss:$16 sps:$4 sm:$0xff]  }
 0x162   :  { %v6720_v55 = vpop.f32.mrf.mxu0  ;;  %v2318_v57 = vpop.f32.mrf.mxu1  ;;  %2816 = vmatmul.mubr.bf16.gmra.mxu1 %v6077_v39  ;;  %3009 = vmatmul.mubr.bf16.gmra.mxu0 %v6318_v60 }
 0x163   :  { %8108 = vst [vmem:[#allocation19_spill] sm:$0xff] %v6718_v47  ;;  %v6723_v1 = vadd.f32 %v2318_v57, %v6630_v59  ;;  %2825 = vmatprep.mubr.bf16.mxu1 %v8099_v53  ;;  %3018 = vmatprep.mubr.bf16.mxu0 %v6319_v2  ;;  %v6152_v57 = vld [vmem:[#allocation5 + $0x58c] ss:$16 sps:$4 sm:$0xff]  }
 0x164   :  { %v6726_v7 = vpop.f32.mrf.mxu0  ;;  %v2320_v8 = vpop.f32.mrf.mxu1  ;;  %3146 = vmatpush2.bf16.msra.mxu1 %v6094_v44  ;;  %3338 = vmatprep.subr.bf16.mxu0 %v6139_v46  ;;  %v6147_v44 = vld [vmem:[#allocation5 + $0x5a8] ss:$16 sps:$4 sm:$0xff]  }
 0x165   :  { %8109 = vst [vmem:[#allocation20_spill] sm:$0xff] %v6723_v1  ;;  %v6729_v13 = vadd.f32 %v2320_v8, %v6634_v61  ;;  %3147 = vmatprep.subr.bf16.mxu1 %v6106_v48  ;;  %3339 = vmatpush2.bf16.msra.mxu0 %v6137_v50  ;;  %v6320_v50 = vld [vmem:[#allocation2 + $0x118] ss:$28 sps:$4 sm:$0xff]  }
 0x166   :  { %v6731_v20 = vpop.f32.mrf.mxu0  ;;  %v2322_v21 = vpop.f32.mrf.mxu1  ;;  %3340 = vmatprep.subr.bf16.mxu0 %v6142_v62  ;;  %v6321_v62 = vld [vmem:[#allocation2 + $0x154] ss:$28 sps:$4 sm:$0xff]  }
 0x167   :  { %8110 = vst [vmem:[#allocation21_spill] sm:$0xff] %v6729_v13  ;;  %v6734_v27 = vadd.f32 %v2322_v21, %v6630_v59  ;;  %v6150_v21 = vld [vmem:[#allocation5 + $0x588] ss:$16 sps:$4 sm:$0xff]  }
 0x168   :  { %v6736_v29 = vpop.f32.mrf.mxu0  ;;  %v2324_v32 = vpop.f32.mrf.mxu1  ;;  %3148 = vmatpush2.bf16.msra.mxu1 %v6104_v10  ;;  %v6124_v10 = vld [vmem:[#allocation5 + $0x388] ss:$16 sps:$4 sm:$0xff]  }
 0x169   :  { %8111 = vst [vmem:[#allocation22_spill] sm:$0xff] %v6734_v27  ;;  %v6739_v39 = vadd.f32 %v2324_v32, %v6634_v61  ;;  %3149 = vmatprep.subr.bf16.mxu1 %v6116_v16  ;;  %3341 = vmatpush2.bf16.msra.mxu0 %v6140_v18  ;;  %v6136_v18 = vld [vmem:[#allocation5 + $0x36c] ss:$16 sps:$4 sm:$0xff]  }
 0x16a   :  { %v6741_v46 = vpop.f32.mrf.mxu0  ;;  %v2328_v48 = vpop.f32.mrf.mxu1  ;;  %2826 = vmatmul.mubr.bf16.gmra.mxu1 %v6081_v24  ;;  %3019 = vmatmul.mubr.bf16.gmra.mxu0 %v6320_v50 }
 0x16b   :  { %8112 = vst [vmem:[#allocation23_spill] sm:$0xff] %v6739_v39  ;;  %v6744_v60 = vadd.f32 %v2328_v48, %v6630_v59  ;;  %2835 = vmatprep.mubr.bf16.mxu1 %v8099_v53  ;;  %3028 = vmatprep.mubr.bf16.mxu0 %v6321_v62  ;;  %v6085_v48 = vld [vmem:[#allocation2 + $0x168] ss:$28 sps:$4 sm:$0xff]   ;;  %v6169_v39 = vld [vmem:[#allocation5 + $0x52c] ss:$16 sps:$4 sm:$0xff]  }
 0x16c   :  { %v6747_v2 = vpop.f32.mrf.mxu0  ;;  %v2330_v8 = vpop.f32.mrf.mxu1  ;;  %3150 = vmatpush2.bf16.msra.mxu1 %v6114_v33  ;;  %3342 = vmatprep.subr.bf16.mxu0 %v6149_v36  ;;  %v6134_v36 = vld [vmem:[#allocation5 + $0x368] ss:$16 sps:$4 sm:$0xff]  }
 0x16d   :  { %8113 = vst [vmem:[#allocation24_spill] sm:$0xff] %v6744_v60  ;;  %v6750_v16 = vadd.f32 %v2330_v8, %v6634_v61  ;;  %3151 = vmatprep.subr.bf16.mxu1 %v6126_v43  ;;  %3343 = vmatpush2.bf16.msra.mxu0 %v6147_v44  ;;  %v6146_v43 = vld [vmem:[#allocation5 + $0x34c] ss:$16 sps:$4 sm:$0xff]   ;;  %v6157_v44 = vld [vmem:[#allocation5 + $0x568] ss:$16 sps:$4 sm:$0xff]  }
 0x16e   :  { %v6752_v24 = vpop.f32.mrf.mxu0  ;;  %v2332_v32 = vpop.f32.mrf.mxu1  ;;  %3344 = vmatprep.subr.bf16.mxu0 %v6152_v57  ;;  %v6322_v57 = vld [vmem:[#allocation2 + $0x150] ss:$28 sps:$4 sm:$0xff]  }
 0x16f   :  { %8114 = vst [vmem:[#allocation25_spill] sm:$0xff] %v6750_v16  ;;  %v6755_v50 = vadd.f32 %v2332_v32, %v6630_v59  ;;  %v6162_v32 = vld [vmem:[#allocation5 + $0x54c] ss:$16 sps:$4 sm:$0xff]  }
 0x170   :  { %v6757_v62 = vpop.f32.mrf.mxu0  ;;  %v2334_v33 = vpop.f32.mrf.mxu1  ;;  %3152 = vmatpush2.bf16.msra.mxu1 %v6124_v10  ;;  %v8118_v10 = vmov 0  }
 0x171   :  { %8115 = vst [vmem:[#allocation26_spill] sm:$0xff] %v6755_v50  ;;  %v6760_v8 = vadd.f32 %v2334_v33, %v6634_v61  ;;  %3153 = vmatprep.subr.bf16.mxu1 %v6136_v18  ;;  %3345 = vmatpush2.bf16.msra.mxu0 %v6150_v21  ;;  %v6323_v50 = vld [vmem:[#allocation2 + $0x18c] ss:$28 sps:$4 sm:$0xff]  }
 0x172   :  { %v6762_v56 = vpop.f32.mrf.mxu0  ;;  %v2338_v53 = vpop.f32.mrf.mxu1  ;;  %2836 = vmatmul.mubr.bf16.gmra.mxu1 %v6085_v48  ;;  %3029 = vmatmul.mubr.bf16.gmra.mxu0 %v6322_v57  ;;  %v6144_v21 = vld [vmem:[#allocation5 + $0x348] ss:$16 sps:$4 sm:$0xff]   ;;  %v6156_v48 = vld [vmem:[#allocation5 + $0x32c] ss:$16 sps:$4 sm:$0xff]  }
 0x173   :  { %8116 = vst [vmem:[#allocation27_spill] sm:$0xff] %v6760_v8  ;;  %v6765_v51 = vadd.f32 %v2338_v53, %v6630_v59  ;;  %2845 = vmatprep.mubr.bf16.mxu1 %v8118_v10  ;;  %3038 = vmatprep.mubr.bf16.mxu0 %v6323_v50  ;;  %v6160_v57 = vld [vmem:[#allocation5 + $0x548] ss:$16 sps:$4 sm:$0xff]  }
 0x174   :  { %v6768_v33 = vpop.f32.mrf.mxu0  ;;  %v2340_v18 = vpop.f32.mrf.mxu1  ;;  %3154 = vmatpush2.bf16.msra.mxu1 %v6134_v36  ;;  %3346 = vmatprep.subr.bf16.mxu0 %v6159_v52  ;;  %v6154_v52 = vld [vmem:[#allocation5 + $0x328] ss:$16 sps:$4 sm:$0xff]  }
 0x175   :  { %8117 = vst [vmem:[#allocation28_spill] sm:$0xff] %v6765_v51  ;;  %v6771_v8 = vadd.f32 %v2340_v18, %v6634_v61  ;;  %3155 = vmatprep.subr.bf16.mxu1 %v6146_v43  ;;  %3347 = vmatpush2.bf16.msra.mxu0 %v6157_v44  ;;  %v6089_v51 = vld [vmem:[#allocation2 + $0x1a0] ss:$28 sps:$4 sm:$0xff]   ;;  %v6167_v44 = vld [vmem:[#allocation5 + $0x528] ss:$16 sps:$4 sm:$0xff]  }
 0x176   :  { %v6773_v16 = vpop.f32.mrf.mxu0  ;;  %v2342_v53 = vpop.f32.mrf.mxu1  ;;  %3348 = vmatprep.subr.bf16.mxu0 %v6162_v32  ;;  %v6166_v43 = vld [vmem:[#allocation5 + $0x30c] ss:$16 sps:$4 sm:$0xff]   ;;  %v6324_v32 = vld [vmem:[#allocation2 + $0x188] ss:$28 sps:$4 sm:$0xff]  }
 0x177   :  { %8119 = vst [vmem:[#allocation29_spill] sm:$0xff] %v6771_v8  ;;  %v6776_v50 = vadd.f32 %v2342_v53, %v6630_v59  ;;  %v6172_v53 = vld [vmem:[#allocation5 + $0x50c] ss:$16 sps:$4 sm:$0xff]  }
 0x178   :  { %v6778_v60 = vpop.f32.mrf.mxu0  ;;  %v2344_v36 = vpop.f32.mrf.mxu1  ;;  %3156 = vmatpush2.bf16.msra.mxu1 %v6144_v21  ;;  %v6325_v21 = vld [vmem:[#allocation2 + $0x1c4] ss:$28 sps:$4 sm:$0xff]  }
 0x179   :  { %8120 = vst [vmem:[#allocation30_spill] sm:$0xff] %v6776_v50  ;;  %v6781_v18 = vadd.f32 %v2344_v36, %v6634_v61  ;;  %3157 = vmatprep.subr.bf16.mxu1 %v6156_v48  ;;  %3349 = vmatpush2.bf16.msra.mxu0 %v6160_v57  ;;  %v6164_v57 = vld [vmem:[#allocation5 + $0x308] ss:$16 sps:$4 sm:$0xff]  }
 0x17a   :  { %v6783_v8 = vpop.f32.mrf.mxu0  ;;  %v2348_v27 = vpop.f32.mrf.mxu1  ;;  %2846 = vmatmul.mubr.bf16.gmra.mxu1 %v6089_v51  ;;  %3039 = vmatmul.mubr.bf16.gmra.mxu0 %v6324_v32  ;;  %v6170_v51 = vld [vmem:[#allocation5 + $0x508] ss:$16 sps:$4 sm:$0xff]   ;;  %v6175_v32 = vld [vmem:[#allocation5 + $0x6ec] ss:$16 sps:$4 sm:$0xff]  }
 0x17b   :  { %8121 = vst [vmem:[#allocation31_spill] sm:$0xff] %v6781_v18  ;;  %v6786_v50 = vadd.f32 %v2348_v27, %v6630_v59  ;;  %2855 = vmatprep.mubr.bf16.mxu1 %v8118_v10  ;;  %3048 = vmatprep.mubr.bf16.mxu0 %v6325_v21  ;;  %v2199_v21 = vadd.f32 %v6636_v63, %v6630_v59  ;;  %v6326_v63 = vld [vmem:[#allocation2 + $0x1c0] ss:$28 sps:$4 sm:$0xff]  }
 0x17c   :  { %v6789_v36 = vpop.f32.mrf.mxu0  ;;  %v2350_v48 = vpop.f32.mrf.mxu1  ;;  %3158 = vmatpush2.bf16.msra.mxu1 %v6154_v52  ;;  %3350 = vmatprep.subr.bf16.mxu0 %v6169_v39 }
 0x17d   :  { %8122 = vst [vmem:[#allocation32_spill] sm:$0xff] %v6786_v50  ;;  %v6792_v18 = vadd.f32 %v2350_v48, %v6634_v61  ;;  %3159 = vmatprep.subr.bf16.mxu1 %v6166_v43  ;;  %3351 = vmatpush2.bf16.msra.mxu0 %v6167_v44  ;;  %v6093_v50 = vld [vmem:[#allocation2 + $0x1d8] ss:$28 sps:$4 sm:$0xff]   ;;  %v2201_v43 = vadd.f32 %v6642_v5, %v6634_v61 }
 0x17e   :  { %v6794_v13 = vpop.f32.mrf.mxu0  ;;  %v2352_v27 = vpop.f32.mrf.mxu1  ;;  %3352 = vmatprep.subr.bf16.mxu0 %v6172_v53  ;;  %v6190_v48 = vld [vmem:[#allocation8 + $0x74] ss:$8 sps:$4 sm:$0xff]  }
 0x17f   :  { %8123 = vst [vmem:[#allocation33_spill] sm:$0xff] %v6792_v18  ;;  %v6799_v1 = vadd.f32 %v2352_v27, %v6630_v59  ;;  %v2203_v27 = vadd.f32 %v6647_v11, %v6630_v59  ;;  %v2209_v11 = vadd.f32 %v6657_v22, %v6630_v59 }
 0x180   :  { %v6801_v52 = vpop.f32.mrf.mxu0  ;;  %v2354_v39 = vpop.f32.mrf.mxu1  ;;  %3160 = vmatpush2.bf16.msra.mxu1 %v6164_v57  ;;  %v6327_v57 = vld [vmem:[#allocation2 + $0x1fc] ss:$28 sps:$4 sm:$0xff]  }
 0x181   :  { %8124 = vst [vmem:[#allocation34_spill] sm:$0xff] %v6799_v1  ;;  %v6806_v44 = vadd.f32 %v2354_v39, %v6634_v61  ;;  %3353 = vmatpush2.bf16.msra.mxu0 %v6170_v51  ;;  %3515 = vmatprep.subr.bf16.mxu1 %v6175_v32  ;;  %v2205_v51 = vadd.f32 %v6652_v15, %v6634_v61 }
 0x182   :  { %v2391_v53 = vpop.f32.mrf.mxu1  ;;  %v2584_v18 = vpop.f32.mrf.mxu0  ;;  %2856 = vmatmul.mubr.bf16.gmra.mxu1 %v6093_v50  ;;  %3049 = vmatmul.mubr.bf16.gmra.mxu0 %v6326_v63  ;;  %v6103_v63 = vld [vmem:[#allocation2 + $0x210] ss:$28 sps:$4 sm:$0xff]  }
 0x183   :  { %8125 = vst [vmem:[#allocation35_spill] sm:$0xff] %v6806_v44  ;;  %v2392_v1 = vadd.f32 %v2391_v53, %v2199_v21  ;;  %2865 = vmatprep.mubr.bf16.mxu1 %v8118_v10  ;;  %3058 = vmatprep.mubr.bf16.mxu0 %v6327_v57 }
 0x184   :  { %v2393_v47 = vpop.f32.mrf.mxu1  ;;  %v2586_v5 = vpop.f32.mrf.mxu0  ;;  %4296 = vmatprep.subr.bf16.mxu0 %v6190_v48  ;;  %v2211_v48 = vadd.f32 %v6663_v28, %v6634_v61 }
 0x185   :  { %v6813_v32 = vadd.f32 %v2584_v18, %v2392_v1  ;;  %v2394_v39 = vadd.f32 %v2393_v47, %v2201_v43  ;;  %v6328_v47 = vld [vmem:[#allocation2 + $0x1f8] ss:$28 sps:$4 sm:$0xff]   ;;  %v2213_v43 = vadd.f32 %v6668_v34, %v6630_v59  ;;  %v2219_v34 = vadd.f32 %v6678_v45, %v6630_v59 }
 0x186   :  { %v2395_v50 = vpop.f32.mrf.mxu1  ;;  %v2588_v44 = vpop.f32.mrf.mxu0 }
 0x187   :  { %v6817_v21 = vadd.f32 %v2586_v5, %v2394_v39  ;;  %v2396_v53 = vadd.f32 %v2395_v50, %v2203_v27  ;;  %v6329_v27 = vld [vmem:[#allocation2 + $0x234] ss:$28 sps:$4 sm:$0xff]  }
 0x188   :  { %v2397_v40 = vpop.f32.mrf.mxu1  ;;  %v2590_v57 = vpop.f32.mrf.mxu0 }
 0x189   :  { %v6821_v30 = vadd.f32 %v2588_v44, %v2396_v53  ;;  %v2398_v15 = vadd.f32 %v2397_v40, %v2205_v51  ;;  %v2215_v40 = vadd.f32 %v6673_v38, %v6634_v61  ;;  %v6113_v53 = vld [vmem:[#allocation2 + $0x248] ss:$28 sps:$4 sm:$0xff]  }
 0x18a   :  { %v2401_v1 = vpop.f32.mrf.mxu1  ;;  %v2594_v18 = vpop.f32.mrf.mxu0  ;;  %2866 = vmatmul.mubr.bf16.gmra.mxu1 %v6103_v63  ;;  %3059 = vmatmul.mubr.bf16.gmra.mxu0 %v6328_v47  ;;  %v2221_v47 = vadd.f32 %v6684_v54, %v6634_v61 }
 0x18b   :  { %v6825_v22 = vadd.f32 %v2590_v57, %v2398_v15  ;;  %v2402_v5 = vadd.f32 %v2401_v1, %v2209_v11  ;;  %2875 = vmatprep.mubr.bf16.mxu1 %v8118_v10  ;;  %3068 = vmatprep.mubr.bf16.mxu0 %v6329_v27 }
 0x18c   :  { %v2403_v39 = vpop.f32.mrf.mxu1  ;;  %v2596_v28 = vpop.f32.mrf.mxu0 }
 0x18d   :  { %v6830_v44 = vadd.f32 %v2594_v18, %v2402_v5  ;;  %v2404_v51 = vadd.f32 %v2403_v39, %v2211_v48  ;;  %v6330_v48 = vld [vmem:[#allocation2 + $0x230] ss:$28 sps:$4 sm:$0xff]   ;;  %v2223_v39 = vadd.f32 %v6689_v0, %v6630_v59  ;;  %v2229_v0 = vadd.f32 %v6699_v17, %v6630_v59 }
 0x18e   :  { %v2405_v50 = vpop.f32.mrf.mxu1  ;;  %v2598_v63 = vpop.f32.mrf.mxu0 }
 0x18f   :  { %v6834_v57 = vadd.f32 %v2596_v28, %v2404_v51  ;;  %v2406_v11 = vadd.f32 %v2405_v50, %v2213_v43  ;;  %v6331_v43 = vld [vmem:[#allocation2 + $0x26c] ss:$28 sps:$4 sm:$0xff]  }
 0x190   :  { %v2407_v15 = vpop.f32.mrf.mxu1  ;;  %v2600_v1 = vpop.f32.mrf.mxu0 }
 0x191   :  { %v6838_v27 = vadd.f32 %v2598_v63, %v2406_v11  ;;  %v2408_v38 = vadd.f32 %v2407_v15, %v2215_v40  ;;  %v2225_v40 = vadd.f32 %v6694_v6, %v6634_v61  ;;  %v6123_v15 = vld [vmem:[#allocation2 + $0x280] ss:$28 sps:$4 sm:$0xff]  }
 0x192   :  { %v2411_v18 = vpop.f32.mrf.mxu1  ;;  %v2604_v5 = vpop.f32.mrf.mxu0  ;;  %2876 = vmatmul.mubr.bf16.gmra.mxu1 %v6113_v53  ;;  %3069 = vmatmul.mubr.bf16.gmra.mxu0 %v6330_v48  ;;  %v2231_v48 = vadd.f32 %v6705_v25, %v6634_v61 }
 0x193   :  { %v6842_v45 = vadd.f32 %v2600_v1, %v2408_v38  ;;  %v2412_v28 = vadd.f32 %v2411_v18, %v2219_v34  ;;  %2885 = vmatprep.mubr.bf16.mxu1 %v8118_v10  ;;  %3078 = vmatprep.mubr.bf16.mxu0 %v6331_v43 }
 0x194   :  { %v2413_v51 = vpop.f32.mrf.mxu1  ;;  %v2606_v54 = vpop.f32.mrf.mxu0 }
 0x195   :  { %v6847_v50 = vadd.f32 %v2604_v5, %v2412_v28  ;;  %v2414_v63 = vadd.f32 %v2413_v51, %v2221_v47  ;;  %v6332_v47 = vld [vmem:[#allocation2 + $0x268] ss:$28 sps:$4 sm:$0xff]   ;;  %v2233_v51 = vadd.f32 %v6710_v35, %v6630_v59  ;;  %v2239_v35 = vadd.f32 %v6720_v55, %v6630_v59 }
 0x196   :  { %v2415_v53 = vpop.f32.mrf.mxu1  ;;  %v2608_v11 = vpop.f32.mrf.mxu0 }
 0x197   :  { %v6851_v1 = vadd.f32 %v2606_v54, %v2414_v63  ;;  %v2416_v34 = vadd.f32 %v2415_v53, %v2223_v39  ;;  %v6333_v39 = vld [vmem:[#allocation2 + $0x2a4] ss:$28 sps:$4 sm:$0xff]  }
 0x198   :  { %v2417_v38 = vpop.f32.mrf.mxu1  ;;  %v2610_v18 = vpop.f32.mrf.mxu0 }
 0x199   :  { %v6855_v43 = vadd.f32 %v2608_v11, %v2416_v34  ;;  %v2418_v6 = vadd.f32 %v2417_v38, %v2225_v40  ;;  %v2235_v40 = vadd.f32 %v6715_v41, %v6634_v61  ;;  %v6133_v38 = vld [vmem:[#allocation2 + $0x2b8] ss:$28 sps:$4 sm:$0xff]  }
 0x19a   :  { %v2421_v5 = vpop.f32.mrf.mxu1  ;;  %v2614_v28 = vpop.f32.mrf.mxu0  ;;  %2886 = vmatmul.mubr.bf16.gmra.mxu1 %v6123_v15  ;;  %3079 = vmatmul.mubr.bf16.gmra.mxu0 %v6332_v47  ;;  %v2241_v47 = vadd.f32 %v6726_v7, %v6634_v61 }
 0x19b   :  { %v6859_v17 = vadd.f32 %v2610_v18, %v2418_v6  ;;  %v2422_v54 = vadd.f32 %v2421_v5, %v2229_v0  ;;  %2895 = vmatprep.mubr.bf16.mxu1 %v8118_v10  ;;  %3088 = vmatprep.mubr.bf16.mxu0 %v6333_v39 }
 0x19c   :  { %v2423_v63 = vpop.f32.mrf.mxu1  ;;  %v2616_v25 = vpop.f32.mrf.mxu0 }
 0x19d   :  { %v6864_v53 = vadd.f32 %v2614_v28, %v2422_v54  ;;  %v2424_v11 = vadd.f32 %v2423_v63, %v2231_v48  ;;  %v6334_v48 = vld [vmem:[#allocation2 + $0x2a0] ss:$28 sps:$4 sm:$0xff]   ;;  %v2243_v63 = vadd.f32 %v6731_v20, %v6630_v59  ;;  %v2249_v20 = vadd.f32 %v6741_v46, %v6630_v59 }
 0x19e   :  { %v2425_v15 = vpop.f32.mrf.mxu1  ;;  %v2618_v34 = vpop.f32.mrf.mxu0 }
 0x19f   :  { %v6868_v18 = vadd.f32 %v2616_v25, %v2424_v11  ;;  %v2426_v0 = vadd.f32 %v2425_v15, %v2233_v51  ;;  %v6335_v51 = vld [vmem:[#allocation2 + $0x2dc] ss:$28 sps:$4 sm:$0xff]  }
 0x1a0   :  { %v2427_v6 = vpop.f32.mrf.mxu1  ;;  %v2620_v5 = vpop.f32.mrf.mxu0 }
 0x1a1   :  { %v6872_v39 = vadd.f32 %v2618_v34, %v2426_v0  ;;  %v2428_v41 = vadd.f32 %v2427_v6, %v2235_v40  ;;  %v2245_v40 = vadd.f32 %v6736_v29, %v6634_v61  ;;  %v6143_v6 = vld [vmem:[#allocation2 + $0x2f0] ss:$28 sps:$4 sm:$0xff]  }
 0x1a2   :  { %v2431_v28 = vpop.f32.mrf.mxu1  ;;  %v2624_v54 = vpop.f32.mrf.mxu0  ;;  %2896 = vmatmul.mubr.bf16.gmra.mxu1 %v6133_v38  ;;  %3089 = vmatmul.mubr.bf16.gmra.mxu0 %v6334_v48  ;;  %v2251_v48 = vadd.f32 %v6747_v2, %v6634_v61 }
 0x1a3   :  { %v6876_v55 = vadd.f32 %v2620_v5, %v2428_v41  ;;  %v2432_v25 = vadd.f32 %v2431_v28, %v2239_v35  ;;  %2905 = vmatprep.mubr.bf16.mxu1 %v8118_v10  ;;  %3098 = vmatprep.mubr.bf16.mxu0 %v6335_v51 }
 0x1a4   :  { %v2433_v11 = vpop.f32.mrf.mxu1  ;;  %v2626_v7 = vpop.f32.mrf.mxu0 }
 0x1a5   :  { %v6881_v15 = vadd.f32 %v2624_v54, %v2432_v25  ;;  %v2434_v34 = vadd.f32 %v2433_v11, %v2241_v47  ;;  %v6336_v47 = vld [vmem:[#allocation2 + $0x2d8] ss:$28 sps:$4 sm:$0xff]   ;;  %v2253_v11 = vadd.f32 %v6752_v24, %v6630_v59  ;;  %v2259_v24 = vadd.f32 %v6762_v56, %v6630_v59 }
 0x1a6   :  { %v2435_v38 = vpop.f32.mrf.mxu1  ;;  %v2628_v0 = vpop.f32.mrf.mxu0 }
 0x1a7   :  { %v6885_v5 = vadd.f32 %v2626_v7, %v2434_v34  ;;  %v2436_v35 = vadd.f32 %v2435_v38, %v2243_v63  ;;  %v6337_v63 = vld [vmem:[#allocation2 + $0x314] ss:$28 sps:$4 sm:$0xff]  }
 0x1a8   :  { %v2437_v41 = vpop.f32.mrf.mxu1  ;;  %v2630_v28 = vpop.f32.mrf.mxu0 }
 0x1a9   :  { %v6889_v51 = vadd.f32 %v2628_v0, %v2436_v35  ;;  %v2438_v29 = vadd.f32 %v2437_v41, %v2245_v40  ;;  %v2255_v40 = vadd.f32 %v6757_v62, %v6634_v61  ;;  %v6153_v41 = vld [vmem:[#allocation2 + $0x328] ss:$28 sps:$4 sm:$0xff]  }
 0x1aa   :  { %v2441_v54 = vpop.f32.mrf.mxu1  ;;  %v2634_v25 = vpop.f32.mrf.mxu0  ;;  %2906 = vmatmul.mubr.bf16.gmra.mxu1 %v6143_v6  ;;  %3099 = vmatmul.mubr.bf16.gmra.mxu0 %v6336_v47  ;;  %v2261_v47 = vadd.f32 %v6768_v33, %v6634_v61 }
 0x1ab   :  { %v6893_v46 = vadd.f32 %v2630_v28, %v2438_v29  ;;  %v2442_v7 = vadd.f32 %v2441_v54, %v2249_v20  ;;  %2915 = vmatprep.mubr.bf16.mxu1 %v8118_v10  ;;  %3108 = vmatprep.mubr.bf16.mxu0 %v6337_v63 }
 0x1ac   :  { %v2443_v34 = vpop.f32.mrf.mxu1  ;;  %v2636_v2 = vpop.f32.mrf.mxu0 }
 0x1ad   :  { %v6898_v38 = vadd.f32 %v2634_v25, %v2442_v7  ;;  %v2444_v0 = vadd.f32 %v2443_v34, %v2251_v48  ;;  %v6338_v48 = vld [vmem:[#allocation2 + $0x310] ss:$28 sps:$4 sm:$0xff]   ;;  %v2263_v34 = vadd.f32 %v6773_v16, %v6630_v59  ;;  %v2269_v16 = vadd.f32 %v6783_v8, %v6630_v59 }
 0x1ae   :  { %v2445_v6 = vpop.f32.mrf.mxu1  ;;  %v2638_v35 = vpop.f32.mrf.mxu0 }
 0x1af   :  { %v6902_v28 = vadd.f32 %v2636_v2, %v2444_v0  ;;  %v2446_v20 = vadd.f32 %v2445_v6, %v2253_v11  ;;  %v6339_v11 = vld [vmem:[#allocation2 + $0x34c] ss:$28 sps:$4 sm:$0xff]  }
 0x1b0   :  { %v2447_v29 = vpop.f32.mrf.mxu1  ;;  %v2640_v54 = vpop.f32.mrf.mxu0 }
 0x1b1   :  { %v6906_v63 = vadd.f32 %v2638_v35, %v2446_v20  ;;  %v2448_v62 = vadd.f32 %v2447_v29, %v2255_v40  ;;  %v2265_v40 = vadd.f32 %v6778_v60, %v6634_v61  ;;  %v6163_v29 = vld [vmem:[#allocation2 + $0x360] ss:$28 sps:$4 sm:$0xff]  }
 0x1b2   :  { %v2451_v25 = vpop.f32.mrf.mxu1  ;;  %v2644_v7 = vpop.f32.mrf.mxu0  ;;  %2916 = vmatmul.mubr.bf16.gmra.mxu1 %v6153_v41  ;;  %3109 = vmatmul.mubr.bf16.gmra.mxu0 %v6338_v48  ;;  %v2271_v48 = vadd.f32 %v6789_v36, %v6634_v61 }
 0x1b3   :  { %v6910_v56 = vadd.f32 %v2640_v54, %v2448_v62  ;;  %v2452_v2 = vadd.f32 %v2451_v25, %v2259_v24  ;;  %2925 = vmatprep.mubr.bf16.mxu1 %v8118_v10  ;;  %3118 = vmatprep.mubr.bf16.mxu0 %v6339_v11 }
 0x1b4   :  { %v2453_v0 = vpop.f32.mrf.mxu1  ;;  %v2646_v33 = vpop.f32.mrf.mxu0 }
 0x1b5   :  { %v6915_v6 = vadd.f32 %v2644_v7, %v2452_v2  ;;  %v2454_v35 = vadd.f32 %v2453_v0, %v2261_v47  ;;  %v6340_v47 = vld [vmem:[#allocation2 + $0x348] ss:$28 sps:$4 sm:$0xff]   ;;  %v2273_v0 = vadd.f32 %v6794_v13, %v6630_v59 }
 0x1b6   :  { %v2455_v41 = vpop.f32.mrf.mxu1  ;;  %v2648_v20 = vpop.f32.mrf.mxu0  ;;  %v6173_v13 = vld [vmem:[#allocation5 + $0x6e8] ss:$16 sps:$4 sm:$0xff]  }
 0x1b7   :  { %v6919_v54 = vadd.f32 %v2646_v33, %v2454_v35  ;;  %v2456_v24 = vadd.f32 %v2455_v41, %v2263_v34  ;;  %v6341_v34 = vld [vmem:[#allocation2 + $0xc] ss:$28 sps:$4 sm:$0xff]   ;;  %v6342_v35 = vld [vmem:[#allocation2 + $0x14] ss:$28 sps:$4 sm:$0xff]  }
 0x1b8   :  { %v2457_v62 = vpop.f32.mrf.mxu1  ;;  %v2650_v25 = vpop.f32.mrf.mxu0 }
 0x1b9   :  { %v6923_v11 = vadd.f32 %v2648_v20, %v2456_v24  ;;  %v2458_v60 = vadd.f32 %v2457_v62, %v2265_v40  ;;  %v2275_v40 = vadd.f32 %v6801_v52, %v6634_v61  ;;  %v6344_v61 = vld [vmem:[#allocation2 + $0x10] ss:$28 sps:$4 sm:$0xff]  }
 0x1ba   :  { %v2461_v7 = vpop.f32.mrf.mxu1  ;;  %v2654_v2 = vpop.f32.mrf.mxu0  ;;  %2926 = vmatmul.mubr.bf16.gmra.mxu1 %v6163_v29  ;;  %3119 = vmatmul.mubr.bf16.gmra.mxu0 %v6340_v47  ;;  %v6193_v52 = vld [vmem:[#allocation8 + $0x64] ss:$8 sps:$4 sm:$0xff]  }
 0x1bb   :  { %8126 = vst [vmem:[#allocation36_spill] sm:$0xff] %v6923_v11  ;;  %v6927_v8 = vadd.f32 %v2650_v25, %v2458_v60  ;;  %v2462_v33 = vadd.f32 %v2461_v7, %v2269_v16  ;;  %3161 = vmatprep.mubr.bf16.mxu1 %v6341_v34  ;;  %3354 = vmatprep.mubr.bf16.mxu0 %v6342_v35  ;;  %v6178_v60 = vld [vmem:[#allocation5 + $0x6cc] ss:$16 sps:$4 sm:$0xff]   ;;  %v6343_v11 = vld [vmem:[#allocation2 + $0x8] ss:$28 sps:$4 sm:$0xff]  }
 0x1bc   :  { %v2463_v41 = vpop.f32.mrf.mxu1  ;;  %v2656_v36 = vpop.f32.mrf.mxu0  ;;  %v6188_v35 = vld [vmem:[#allocation8 + $0x70] ss:$8 sps:$4 sm:$0xff]  }
 0x1bd   :  { %8127 = vst [vmem:[#allocation37_spill] sm:$0xff] %v6927_v8  ;;  %v6931_v20 = vadd.f32 %v2654_v2, %v2462_v33  ;;  %v2464_v29 = vadd.f32 %v2463_v41, %v2271_v48  ;;  %v6176_v33 = vld [vmem:[#allocation5 + $0x6c8] ss:$16 sps:$4 sm:$0xff]  }
 0x1be   :  { %v2465_v24 = vpop.f32.mrf.mxu1  ;;  %v2658_v62 = vpop.f32.mrf.mxu0 }
 0x1bf   :  { %v6933_v47 = vadd.f32 %v2656_v36, %v2464_v29  ;;  %v2466_v59 = vadd.f32 %v2465_v24, %v2273_v0  ;;  %v6345_v0 = vld [vmem:[#allocation2 + $0x44] ss:$28 sps:$4 sm:$0xff]   ;;  %v6346_v29 = vld [vmem:[#allocation2 + $0x4c] ss:$28 sps:$4 sm:$0xff]  }
 0x1c0   :  { %v2467_v25 = vpop.f32.mrf.mxu1  ;;  %v2660_v16 = vpop.f32.mrf.mxu0 }
 0x1c1   :  { %v6935_v7 = vadd.f32 %v2658_v62, %v2466_v59  ;;  %v2468_v34 = vadd.f32 %v2467_v25, %v2275_v40  ;;  %v6181_v40 = vld [vmem:[#allocation5 + $0x6ac] ss:$16 sps:$4 sm:$0xff]  }
 0x1c2   :  { %v2471_v10 = vpop.f32.mrf.mxu1  ;;  %v2664_v8 = vpop.f32.mrf.mxu0  ;;  %3162 = vmatmul.mubr.bf16.vlgmr.msra.gmra.mxu1 %v6343_v11  ;;  %3355 = vmatmul.mubr.bf16.vlgmr.msra.gmra.mxu0 %v6344_v61  ;;  %v6191_v62 = vld [vmem:[#allocation8 + $0x60] ss:$8 sps:$4 sm:$0xff]  }
 0x1c3   :  { %v6937_v48 = vadd.f32 %v2660_v16, %v2468_v34  ;;  %v2472_v2 = vadd.f32 %v2471_v10, %v6639_v3  ;;  %3516 = vmatpush1.bf16.msra.mxu1 %v6173_v13  ;;  %3171 = vmatprep.mubr.bf16.mxu1 %v6345_v0  ;;  %v6179_v34 = vld [vmem:[#allocation5 + $0x6a8] ss:$16 sps:$4 sm:$0xff]  }
 0x1c4   :  { %v2473_v41 = vpop.f32.mrf.mxu1  ;;  %v2666_v36 = vpop.f32.mrf.mxu0  ;;  %3364 = vmatprep.mubr.bf16.mxu0 %v6346_v29  ;;  %3517 = vmatprep.subr.bf16.mxu1 %v6178_v60  ;;  %v6196_v60 = vld [vmem:[#allocation8 + $0x54] ss:$8 sps:$4 sm:$0xff]  }
 0x1c5   :  { %v6940_v24 = vadd.f32 %v2664_v8, %v2472_v2  ;;  %v2474_v11 = vadd.f32 %v2473_v41, %v6645_v9  ;;  %4297 = vmatpush1.bf16.msra.mxu0 %v6188_v35  ;;  %v6184_v9 = vld [vmem:[#allocation5 + $0x68c] ss:$16 sps:$4 sm:$0xff]   ;;  %v6348_v41 = vld [vmem:[#allocation2 + $0x48] ss:$28 sps:$4 sm:$0xff]  }
 0x1c6   :  { %v2475_v59 = vpop.f32.mrf.mxu1  ;;  %v2668_v25 = vpop.f32.mrf.mxu0  ;;  %4298 = vmatprep.subr.bf16.mxu0 %v6193_v52  ;;  %v6194_v35 = vld [vmem:[#allocation8 + $0x50] ss:$8 sps:$4 sm:$0xff]  }
 0x1c7   :  { %v6943_v3 = vadd.f32 %v2666_v36, %v2474_v11  ;;  %v2476_v10 = vadd.f32 %v2475_v59, %v6650_v14  ;;  %3518 = vmatpush1.bf16.msra.mxu1 %v6176_v33  ;;  %v6347_v52 = vld [vmem:[#allocation2 + $0x40] ss:$28 sps:$4 sm:$0xff]   ;;  %v6199_v14 = vld [vmem:[#allocation8 + $0x44] ss:$8 sps:$4 sm:$0xff]  }
 0x1c8   :  { %v2477_v13 = vpop.f32.mrf.mxu1  ;;  %v2670_v16 = vpop.f32.mrf.mxu0  ;;  %3519 = vmatprep.subr.bf16.mxu1 %v6181_v40  ;;  %v6349_v29 = vld [vmem:[#allocation2 + $0x7c] ss:$28 sps:$4 sm:$0xff]   ;;  %v6350_v40 = vld [vmem:[#allocation2 + $0x84] ss:$28 sps:$4 sm:$0xff]  }
 0x1c9   :  { %v6946_v61 = vadd.f32 %v2668_v25, %v2476_v10  ;;  %v2478_v8 = vadd.f32 %v2477_v13, %v6655_v19  ;;  %4299 = vmatpush1.bf16.msra.mxu0 %v6191_v62  ;;  %v6182_v62 = vld [vmem:[#allocation5 + $0x688] ss:$16 sps:$4 sm:$0xff]   ;;  %v6187_v10 = vld [vmem:[#allocation5 + $0x66c] ss:$16 sps:$4 sm:$0xff]  }
 0x1ca   :  { %v2481_v2 = vpop.f32.mrf.mxu1  ;;  %v2674_v0 = vpop.f32.mrf.mxu0  ;;  %3172 = vmatmul.mubr.bf16.gmra.mxu1 %v6347_v52  ;;  %3365 = vmatmul.mubr.bf16.gmra.mxu0 %v6348_v41  ;;  %v6197_v13 = vld [vmem:[#allocation8 + $0x40] ss:$8 sps:$4 sm:$0xff]  }
 0x1cb   :  { %v6949_v33 = vadd.f32 %v2670_v16, %v2478_v8  ;;  %v2482_v36 = vadd.f32 %v2481_v2, %v6660_v26  ;;  %3181 = vmatprep.mubr.bf16.mxu1 %v6349_v29  ;;  %3374 = vmatprep.mubr.bf16.mxu0 %v6350_v40  ;;  %v6352_v40 = vld [vmem:[#allocation2 + $0x80] ss:$28 sps:$4 sm:$0xff]  }
 0x1cc   :  { %v2483_v11 = vpop.f32.mrf.mxu1  ;;  %v2676_v19 = vpop.f32.mrf.mxu0  ;;  %3520 = vmatpush1.bf16.msra.mxu1 %v6179_v34  ;;  %4300 = vmatprep.subr.bf16.mxu0 %v6196_v60  ;;  %v6185_v34 = vld [vmem:[#allocation5 + $0x668] ss:$16 sps:$4 sm:$0xff]  }
 0x1cd   :  { %v6952_v59 = vadd.f32 %v2674_v0, %v2482_v36  ;;  %v2484_v25 = vadd.f32 %v2483_v11, %v6666_v31  ;;  %3521 = vmatprep.subr.bf16.mxu1 %v6184_v9  ;;  %4301 = vmatpush1.bf16.msra.mxu0 %v6194_v35  ;;  %v6205_v60 = vld [vmem:[#allocation8 + $0x34] ss:$8 sps:$4 sm:$0xff]   ;;  %v6202_v9 = vld [vmem:[#allocation5 + $0x64c] ss:$16 sps:$4 sm:$0xff]  }
 0x1ce   :  { %v2485_v16 = vpop.f32.mrf.mxu1  ;;  %v2678_v8 = vpop.f32.mrf.mxu0  ;;  %4302 = vmatprep.subr.bf16.mxu0 %v6199_v14  ;;  %v6203_v35 = vld [vmem:[#allocation8 + $0x30] ss:$8 sps:$4 sm:$0xff]  }
 0x1cf   :  { %v6955_v26 = vadd.f32 %v2676_v19, %v2484_v25  ;;  %v2486_v2 = vadd.f32 %v2485_v16, %v6671_v37  ;;  %v6351_v14 = vld [vmem:[#allocation2 + $0x78] ss:$28 sps:$4 sm:$0xff]   ;;  %v6208_v37 = vld [vmem:[#allocation8 + $0x24] ss:$8 sps:$4 sm:$0xff]  }
 0x1d0   :  { %v2487_v52 = vpop.f32.mrf.mxu1  ;;  %v2680_v41 = vpop.f32.mrf.mxu0  ;;  %3522 = vmatpush1.bf16.msra.mxu1 %v6182_v62  ;;  %v6353_v62 = vld [vmem:[#allocation2 + $0xb4] ss:$28 sps:$4 sm:$0xff]   ;;  %v6354_v25 = vld [vmem:[#allocation2 + $0xbc] ss:$28 sps:$4 sm:$0xff]  }
 0x1d1   :  { %v6958_v0 = vadd.f32 %v2678_v8, %v2486_v2  ;;  %v2488_v31 = vadd.f32 %v2487_v52, %v6676_v42  ;;  %3523 = vmatprep.subr.bf16.mxu1 %v6187_v10  ;;  %4303 = vmatpush1.bf16.msra.mxu0 %v6197_v13  ;;  %v6200_v13 = vld [vmem:[#allocation5 + $0x648] ss:$16 sps:$4 sm:$0xff]   ;;  %v6206_v2 = vld [vmem:[#allocation8 + $0x20] ss:$8 sps:$4 sm:$0xff]  }
 0x1d2   :  { %v2491_v36 = vpop.f32.mrf.mxu1  ;;  %v2684_v29 = vpop.f32.mrf.mxu0  ;;  %3182 = vmatmul.mubr.bf16.gmra.mxu1 %v6351_v14  ;;  %3375 = vmatmul.mubr.bf16.gmra.mxu0 %v6352_v40  ;;  %v6217_v52 = vld [vmem:[#allocation5 + $0x62c] ss:$16 sps:$4 sm:$0xff]  }
 0x1d3   :  { %v6961_v11 = vadd.f32 %v2680_v41, %v2488_v31  ;;  %v2492_v19 = vadd.f32 %v2491_v36, %v6681_v49  ;;  %3191 = vmatprep.mubr.bf16.mxu1 %v6353_v62  ;;  %3384 = vmatprep.mubr.bf16.mxu0 %v6354_v25  ;;  %v6356_v25 = vld [vmem:[#allocation2 + $0xb8] ss:$28 sps:$4 sm:$0xff]  }
 0x1d4   :  { %v2493_v42 = vpop.f32.mrf.mxu1  ;;  %v2686_v10 = vpop.f32.mrf.mxu0  ;;  %3524 = vmatpush1.bf16.msra.mxu1 %v6185_v34  ;;  %4304 = vmatprep.subr.bf16.mxu0 %v6205_v60  ;;  %v6211_v34 = vld [vmem:[#allocation8 + $0x14] ss:$8 sps:$4 sm:$0xff]  }
 0x1d5   :  { %v6964_v16 = vadd.f32 %v2684_v29, %v2492_v19  ;;  %v2494_v8 = vadd.f32 %v2493_v42, %v6687_v58  ;;  %3525 = vmatprep.subr.bf16.mxu1 %v6202_v9  ;;  %4305 = vmatpush1.bf16.msra.mxu0 %v6203_v35  ;;  %v6215_v60 = vld [vmem:[#allocation5 + $0x628] ss:$16 sps:$4 sm:$0xff]   ;;  %v6209_v9 = vld [vmem:[#allocation8 + $0x10] ss:$8 sps:$4 sm:$0xff]  }
 0x1d6   :  { %v2495_v41 = vpop.f32.mrf.mxu1  ;;  %v2688_v31 = vpop.f32.mrf.mxu0  ;;  %4306 = vmatprep.subr.bf16.mxu0 %v6208_v37  ;;  %v6232_v35 = vld [vmem:[#allocation5 + $0x60c] ss:$16 sps:$4 sm:$0xff]  }
 0x1d7   :  { %v6967_v49 = vadd.f32 %v2686_v10, %v2494_v8  ;;  %v2496_v36 = vadd.f32 %v2495_v41, %v6692_v4  ;;  %v6355_v37 = vld [vmem:[#allocation2 + $0xb0] ss:$28 sps:$4 sm:$0xff]  }
 0x1d8   :  { %v2497_v14 = vpop.f32.mrf.mxu1  ;;  %v2690_v40 = vpop.f32.mrf.mxu0  ;;  %3526 = vmatpush1.bf16.msra.mxu1 %v6200_v13  ;;  %v6214_v4 = vld [vmem:[#allocation8 + $0x4] ss:$8 sps:$4 sm:$0xff]  }
 0x1d9   :  { %v6970_v29 = vadd.f32 %v2688_v31, %v2496_v36  ;;  %v2498_v58 = vadd.f32 %v2497_v14, %v6697_v12  ;;  %4307 = vmatpush1.bf16.msra.mxu0 %v6206_v2  ;;  %3527 = vmatprep.subr.bf16.mxu1 %v6217_v52  ;;  %v6357_v13 = vld [vmem:[#allocation2 + $0xec] ss:$28 sps:$4 sm:$0xff]   ;;  %v6358_v8 = vld [vmem:[#allocation2 + $0xf4] ss:$28 sps:$4 sm:$0xff]  }
 0x1da   :  { %v2501_v19 = vpop.f32.mrf.mxu1  ;;  %v2694_v62 = vpop.f32.mrf.mxu0  ;;  %3192 = vmatmul.mubr.bf16.gmra.mxu1 %v6355_v37  ;;  %3385 = vmatmul.mubr.bf16.gmra.mxu0 %v6356_v25  ;;  %v6230_v52 = vld [vmem:[#allocation5 + $0x608] ss:$16 sps:$4 sm:$0xff]   ;;  %v8128_v31 = vld [vmem:[#allocation17_spill] sm:$0xff] }
 0x1db   :  { %v6973_v42 = vadd.f32 %v2690_v40, %v2498_v58  ;;  %v2502_v10 = vadd.f32 %v2501_v19, %v6702_v23  ;;  %3201 = vmatprep.mubr.bf16.mxu1 %v6357_v13  ;;  %3394 = vmatprep.mubr.bf16.mxu0 %v6358_v8  ;;  %v6212_v14 = vld [vmem:[#allocation8] ss:$8 sps:$4 sm:$0xff]   ;;  %v8130_v19 = vld [vmem:[#allocation18_spill] sm:$0xff] }
 0x1dc   :  { %v2503_v12 = vpop.f32.mrf.mxu1  ;;  %v2696_v2 = vpop.f32.mrf.mxu0  ;;  %4308 = vmatprep.subr.bf16.mxu0 %v6211_v34  ;;  %3528 = vmatpush1.bf16.msra.mxu1 %v6215_v60  ;;  %v6220_v8 = vld [vmem:[#allocation8 + $0xf4] ss:$8 sps:$4 sm:$0xff]  }
 0x1dd   :  { %v6976_v41 = vadd.f32 %v2694_v62, %v2502_v10  ;;  %v2504_v36 = vadd.f32 %v2503_v12, %v8128_v31  ;;  %4309 = vmatpush1.bf16.msra.mxu0 %v6209_v9  ;;  %3529 = vmatprep.subr.bf16.mxu1 %v6232_v35  ;;  %v8132_v60 = vld [vmem:[#allocation19_spill] sm:$0xff]  ;;  %v6359_v35 = vld [vmem:[#allocation2 + $0xe8] ss:$28 sps:$4 sm:$0xff]   ;;  %v6360_v31 = vld [vmem:[#allocation2 + $0xf0] ss:$28 sps:$4 sm:$0xff]  }
 0x1de   :  { %v2505_v40 = vpop.f32.mrf.mxu1  ;;  %v2698_v58 = vpop.f32.mrf.mxu0  ;;  %4310 = vmatprep.subr.bf16.mxu0 %v6214_v4  ;;  %v6218_v10 = vld [vmem:[#allocation8 + $0xf0] ss:$8 sps:$4 sm:$0xff]   ;;  %v6223_v4 = vld [vmem:[#allocation8 + $0xe4] ss:$8 sps:$4 sm:$0xff]  }
 0x1df   :  { %v6979_v23 = vadd.f32 %v2696_v2, %v2504_v36  ;;  %v2506_v37 = vadd.f32 %v2505_v40, %v8130_v19  ;;  %v8134_v36 = vld [vmem:[#allocation20_spill] sm:$0xff] }
 0x1e0   :  { %v2507_v25 = vpop.f32.mrf.mxu1  ;;  %v2700_v13 = vpop.f32.mrf.mxu0  ;;  %3530 = vmatpush1.bf16.msra.mxu1 %v6230_v52  ;;  %v6361_v19 = vld [vmem:[#allocation2 + $0x124] ss:$28 sps:$4 sm:$0xff]   ;;  %v6362_v52 = vld [vmem:[#allocation2 + $0x12c] ss:$28 sps:$4 sm:$0xff]  }
 0x1e1   :  { %8129 = vst [vmem:[#allocation17_spill] sm:$0xff] %v6979_v23  ;;  %v6982_v34 = vadd.f32 %v2698_v58, %v2506_v37  ;;  %v2508_v62 = vadd.f32 %v2507_v25, %v8132_v60  ;;  %4311 = vmatpush1.bf16.msra.mxu0 %v6212_v14  ;;  %v8136_v25 = vld [vmem:[#allocation21_spill] sm:$0xff]  ;;  %v8140_v23 = vld [vmem:[#allocation23_spill] sm:$0xff] }
 0x1e2   :  { %v2511_v9 = vpop.f32.mrf.mxu1  ;;  %v2704_v12 = vpop.f32.mrf.mxu0  ;;  %3202 = vmatmul.mubr.bf16.gmra.mxu1 %v6359_v35  ;;  %3395 = vmatmul.mubr.bf16.gmra.mxu0 %v6360_v31  ;;  %v6221_v35 = vld [vmem:[#allocation8 + $0xe0] ss:$8 sps:$4 sm:$0xff]  }
 0x1e3   :  { %8131 = vst [vmem:[#allocation18_spill] sm:$0xff] %v6982_v34  ;;  %v6985_v2 = vadd.f32 %v2700_v13, %v2508_v62  ;;  %v2512_v40 = vadd.f32 %v2511_v9, %v8134_v36  ;;  %3211 = vmatprep.mubr.bf16.mxu1 %v6361_v19  ;;  %3404 = vmatprep.mubr.bf16.mxu0 %v6362_v52  ;;  %v8138_v62 = vld [vmem:[#allocation22_spill] sm:$0xff] }
 0x1e4   :  { %v2513_v58 = vpop.f32.mrf.mxu1  ;;  %v2706_v37 = vpop.f32.mrf.mxu0  ;;  %4312 = vmatprep.subr.bf16.mxu0 %v6220_v8 }
 0x1e5   :  { %8133 = vst [vmem:[#allocation19_spill] sm:$0xff] %v6985_v2  ;;  %v6988_v14 = vadd.f32 %v2704_v12, %v2512_v40  ;;  %v2514_v60 = vadd.f32 %v2513_v58, %v8136_v25  ;;  %4313 = vmatpush2.bf16.msra.mxu0 %v6218_v10  ;;  %v6226_v2 = vld [vmem:[#allocation8 + $0xd4] ss:$8 sps:$4 sm:$0xff]   ;;  %v6224_v12 = vld [vmem:[#allocation8 + $0xd0] ss:$8 sps:$4 sm:$0xff]  }
 0x1e6   :  { %v2515_v34 = vpop.f32.mrf.mxu1  ;;  %v2708_v31 = vpop.f32.mrf.mxu0  ;;  %4314 = vmatprep.subr.bf16.mxu0 %v6223_v4  ;;  %v6363_v10 = vld [vmem:[#allocation2 + $0x120] ss:$28 sps:$4 sm:$0xff]   ;;  %v6364_v25 = vld [vmem:[#allocation2 + $0x128] ss:$28 sps:$4 sm:$0xff]  }
 0x1e7   :  { %8135 = vst [vmem:[#allocation20_spill] sm:$0xff] %v6988_v14  ;;  %v6991_v13 = vadd.f32 %v2706_v37, %v2514_v60  ;;  %v2516_v9 = vadd.f32 %v2515_v34, %v8138_v62  ;;  %v6229_v4 = vld [vmem:[#allocation8 + $0xc4] ss:$8 sps:$4 sm:$0xff]   ;;  %v6365_v62 = vld [vmem:[#allocation2 + $0x15c] ss:$28 sps:$4 sm:$0xff]  }
 0x1e8   :  { %v2517_v36 = vpop.f32.mrf.mxu1  ;;  %v2710_v19 = vpop.f32.mrf.mxu0  ;;  %v8142_v60 = vld [vmem:[#allocation24_spill] sm:$0xff]  ;;  %v8148_v14 = vld [vmem:[#allocation27_spill] sm:$0xff] }
 0x1e9   :  { %8137 = vst [vmem:[#allocation21_spill] sm:$0xff] %v6991_v13  ;;  %v6994_v52 = vadd.f32 %v2708_v31, %v2516_v9  ;;  %v2518_v8 = vadd.f32 %v2517_v36, %v8140_v23  ;;  %4315 = vmatpush2.bf16.msra.mxu0 %v6221_v35  ;;  %v6366_v13 = vld [vmem:[#allocation2 + $0x164] ss:$28 sps:$4 sm:$0xff]   ;;  %v8144_v35 = vld [vmem:[#allocation25_spill] sm:$0xff] }
 0x1ea   :  { %v2521_v40 = vpop.f32.mrf.mxu1  ;;  %v2714_v58 = vpop.f32.mrf.mxu0  ;;  %3212 = vmatmul.mubr.bf16.gmra.mxu1 %v6363_v10  ;;  %3405 = vmatmul.mubr.bf16.gmra.mxu0 %v6364_v25  ;;  %v6227_v10 = vld [vmem:[#allocation8 + $0xc0] ss:$8 sps:$4 sm:$0xff]  }
 0x1eb   :  { %8139 = vst [vmem:[#allocation22_spill] sm:$0xff] %v6994_v52  ;;  %v6997_v37 = vadd.f32 %v2710_v19, %v2518_v8  ;;  %v2522_v34 = vadd.f32 %v2521_v40, %v8142_v60  ;;  %3221 = vmatprep.mubr.bf16.mxu1 %v6365_v62  ;;  %3414 = vmatprep.mubr.bf16.mxu0 %v6366_v13  ;;  %v8146_v8 = vld [vmem:[#allocation26_spill] sm:$0xff] }
 0x1ec   :  { %v2523_v31 = vpop.f32.mrf.mxu1  ;;  %v2716_v9 = vpop.f32.mrf.mxu0  ;;  %4316 = vmatprep.subr.bf16.mxu0 %v6226_v2 }
 0x1ed   :  { %8141 = vst [vmem:[#allocation23_spill] sm:$0xff] %v6997_v37  ;;  %v7000_v23 = vadd.f32 %v2714_v58, %v2522_v34  ;;  %v2524_v36 = vadd.f32 %v2523_v31, %v8144_v35  ;;  %4317 = vmatpush2.bf16.msra.mxu0 %v6224_v12  ;;  %v6235_v37 = vld [vmem:[#allocation8 + $0xb4] ss:$8 sps:$4 sm:$0xff]   ;;  %v6233_v58 = vld [vmem:[#allocation8 + $0xb0] ss:$8 sps:$4 sm:$0xff]  }
 0x1ee   :  { %v2525_v52 = vpop.f32.mrf.mxu1  ;;  %v2718_v25 = vpop.f32.mrf.mxu0  ;;  %4318 = vmatprep.subr.bf16.mxu0 %v6229_v4  ;;  %v6367_v12 = vld [vmem:[#allocation2 + $0x158] ss:$28 sps:$4 sm:$0xff]   ;;  %v6368_v35 = vld [vmem:[#allocation2 + $0x160] ss:$28 sps:$4 sm:$0xff]   ;;  %v6238_v4 = vld [vmem:[#allocation8 + $0xa4] ss:$8 sps:$4 sm:$0xff]  }
 0x1ef   :  { %8143 = vst [vmem:[#allocation24_spill] sm:$0xff] %v7000_v23  ;;  %v7003_v19 = vadd.f32 %v2716_v9, %v2524_v36  ;;  %v2526_v40 = vadd.f32 %v2525_v52, %v8146_v8  ;;  %v8150_v36 = vld [vmem:[#allocation28_spill] sm:$0xff]  ;;  %v6369_v8 = vld [vmem:[#allocation2 + $0x194] ss:$28 sps:$4 sm:$0xff]   ;;  %v8156_v23 = vld [vmem:[#allocation31_spill] sm:$0xff] }
 0x1f0   :  { %v2527_v60 = vpop.f32.mrf.mxu1  ;;  %v2720_v62 = vpop.f32.mrf.mxu0 }
 0x1f1   :  { %8145 = vst [vmem:[#allocation25_spill] sm:$0xff] %v7003_v19  ;;  %v7006_v13 = vadd.f32 %v2718_v25, %v2526_v40  ;;  %v2528_v2 = vadd.f32 %v2527_v60, %v8148_v14  ;;  %4319 = vmatpush2.bf16.msra.mxu0 %v6227_v10  ;;  %v6370_v19 = vld [vmem:[#allocation2 + $0x19c] ss:$28 sps:$4 sm:$0xff]   ;;  %v8152_v10 = vld [vmem:[#allocation29_spill] sm:$0xff] }
 0x1f2   :  { %v2531_v34 = vpop.f32.mrf.mxu1  ;;  %v2724_v31 = vpop.f32.mrf.mxu0  ;;  %3222 = vmatmul.mubr.bf16.gmra.mxu1 %v6367_v12  ;;  %3415 = vmatmul.mubr.bf16.gmra.mxu0 %v6368_v35  ;;  %v6236_v12 = vld [vmem:[#allocation8 + $0xa0] ss:$8 sps:$4 sm:$0xff]  }
 0x1f3   :  { %8147 = vst [vmem:[#allocation26_spill] sm:$0xff] %v7006_v13  ;;  %v7009_v9 = vadd.f32 %v2720_v62, %v2528_v2  ;;  %v2532_v52 = vadd.f32 %v2531_v34, %v8150_v36  ;;  %3231 = vmatprep.mubr.bf16.mxu1 %v6369_v8  ;;  %3424 = vmatprep.mubr.bf16.mxu0 %v6370_v19  ;;  %v8154_v2 = vld [vmem:[#allocation30_spill] sm:$0xff] }
 0x1f4   :  { %v2533_v25 = vpop.f32.mrf.mxu1  ;;  %v2726_v40 = vpop.f32.mrf.mxu0  ;;  %4320 = vmatprep.subr.bf16.mxu0 %v6235_v37 }
 0x1f5   :  { %8149 = vst [vmem:[#allocation27_spill] sm:$0xff] %v7009_v9  ;;  %v7012_v14 = vadd.f32 %v2724_v31, %v2532_v52  ;;  %v2534_v60 = vadd.f32 %v2533_v25, %v8152_v10  ;;  %4321 = vmatpush2.bf16.msra.mxu0 %v6233_v58  ;;  %v6241_v9 = vld [vmem:[#allocation8 + $0x94] ss:$8 sps:$4 sm:$0xff]   ;;  %v6239_v31 = vld [vmem:[#allocation8 + $0x90] ss:$8 sps:$4 sm:$0xff]  }
 0x1f6   :  { %v2535_v13 = vpop.f32.mrf.mxu1  ;;  %v2728_v35 = vpop.f32.mrf.mxu0  ;;  %4322 = vmatprep.subr.bf16.mxu0 %v6238_v4  ;;  %v6371_v58 = vld [vmem:[#allocation2 + $0x190] ss:$28 sps:$4 sm:$0xff]   ;;  %v6372_v10 = vld [vmem:[#allocation2 + $0x198] ss:$28 sps:$4 sm:$0xff]  }
 0x1f7   :  { %8151 = vst [vmem:[#allocation28_spill] sm:$0xff] %v7012_v14  ;;  %v7015_v62 = vadd.f32 %v2726_v40, %v2534_v60  ;;  %v2536_v34 = vadd.f32 %v2535_v13, %v8154_v2  ;;  %v6244_v4 = vld [vmem:[#allocation8 + $0x84] ss:$8 sps:$4 sm:$0xff]  }
 0x1f8   :  { %v2537_v36 = vpop.f32.mrf.mxu1  ;;  %v2730_v8 = vpop.f32.mrf.mxu0  ;;  %v8158_v60 = vld [vmem:[#allocation32_spill] sm:$0xff] }
 0x1f9   :  { %8153 = vst [vmem:[#allocation29_spill] sm:$0xff] %v7015_v62  ;;  %v7018_v19 = vadd.f32 %v2728_v35, %v2536_v34  ;;  %v2538_v37 = vadd.f32 %v2537_v36, %v8156_v23  ;;  %4323 = vmatpush2.bf16.msra.mxu0 %v6236_v12  ;;  %v6373_v2 = vld [vmem:[#allocation2 + $0x1cc] ss:$28 sps:$4 sm:$0xff]   ;;  %v6374_v62 = vld [vmem:[#allocation2 + $0x1d4] ss:$28 sps:$4 sm:$0xff]  }
 0x1fa   :  { %v2541_v52 = vpop.f32.mrf.mxu1  ;;  %v2734_v25 = vpop.f32.mrf.mxu0  ;;  %3232 = vmatmul.mubr.bf16.gmra.mxu1 %v6371_v58  ;;  %3425 = vmatmul.mubr.bf16.gmra.mxu0 %v6372_v10  ;;  %v8159_v12 = vld [vmem:[#allocation33_spill] sm:$0xff] }
 0x1fb   :  { %8155 = vst [vmem:[#allocation30_spill] sm:$0xff] %v7018_v19  ;;  %v7021_v40 = vadd.f32 %v2730_v8, %v2538_v37  ;;  %v2542_v13 = vadd.f32 %v2541_v52, %v8158_v60  ;;  %3241 = vmatprep.mubr.bf16.mxu1 %v6373_v2  ;;  %3434 = vmatprep.mubr.bf16.mxu0 %v6374_v62  ;;  %v6242_v58 = vld [vmem:[#allocation8 + $0x80] ss:$8 sps:$4 sm:$0xff]   ;;  %v8160_v37 = vld [vmem:[#allocation34_spill] sm:$0xff]  ;;  %v8161_v62 = vld [vmem:[#allocation35_spill] sm:$0xff] }
 0x1fc   :  { %v2543_v35 = vpop.f32.mrf.mxu1  ;;  %v2736_v34 = vpop.f32.mrf.mxu0  ;;  %4324 = vmatprep.subr.bf16.mxu0 %v6241_v9 }
 0x1fd   :  { %8157 = vst [vmem:[#allocation31_spill] sm:$0xff] %v7021_v40  ;;  %v7024_v23 = vadd.f32 %v2734_v25, %v2542_v13  ;;  %v2544_v36 = vadd.f32 %v2543_v35, %v8159_v12  ;;  %4325 = vmatpush2.bf16.msra.mxu0 %v6239_v31  ;;  %v6375_v13 = vld [vmem:[#allocation2 + $0x1c8] ss:$28 sps:$4 sm:$0xff]   ;;  %v6376_v31 = vld [vmem:[#allocation2 + $0x1d0] ss:$28 sps:$4 sm:$0xff]  }
 0x1fe   :  { %v2545_v19 = vpop.f32.mrf.mxu1  ;;  %v2738_v10 = vpop.f32.mrf.mxu0  ;;  %4326 = vmatprep.subr.bf16.mxu0 %v6244_v4  ;;  %v6377_v4 = vld [vmem:[#allocation2 + $0x204] ss:$28 sps:$4 sm:$0xff]  }
 0x1ff   :  { %v7027_v8 = vadd.f32 %v2736_v34, %v2544_v36  ;;  %v2546_v52 = vadd.f32 %v2545_v19, %v8160_v37  ;;  %v6378_v34 = vld [vmem:[#allocation2 + $0x20c] ss:$28 sps:$4 sm:$0xff]  }
 0x200   :  { %v2547_v60 = vpop.f32.mrf.mxu1  ;;  %v2740_v2 = vpop.f32.mrf.mxu0 }
 0x201   :  { %v7030_v40 = vadd.f32 %v2738_v10, %v2546_v52  ;;  %v2548_v14 = vadd.f32 %v2547_v60, %v8161_v62  ;;  %4327 = vmatpush2.bf16.msra.mxu0 %v6242_v58 }
 0x202   :  { %v2777_v9 = vpop.f32.mrf.mxu1  ;;  %v7033_v25 = vpop.f32.mrf.mxu0  ;;  %3242 = vmatmul.mubr.bf16.gmra.mxu1 %v6375_v13  ;;  %3435 = vmatmul.mubr.bf16.gmra.mxu0 %v6376_v31 }
 0x203   :  { %v7035_v35 = vadd.f32 %v2740_v2, %v2548_v14  ;;  %3251 = vmatprep.mubr.bf16.mxu1 %v6377_v4  ;;  %3444 = vmatprep.mubr.bf16.mxu0 %v6378_v34  ;;  %v2778_v36 = vadd.f32 %v2777_v9, %v6813_v32  ;;  %v6379_v34 = vld [vmem:[#allocation2 + $0x200] ss:$28 sps:$4 sm:$0xff]   ;;  %v6380_v32 = vld [vmem:[#allocation2 + $0x208] ss:$28 sps:$4 sm:$0xff]  }
 0x204   :  { %v2779_v19 = vpop.f32.mrf.mxu1  ;;  %v7037_v12 = vpop.f32.mrf.mxu0 }
 0x205   :  { %v2780_v37 = vadd.f32 %v2779_v19, %v6817_v21  ;;  %v3708_v14 = vmax.f32 %v2778_v36, 0.0  ;;  %v6381_v19 = vld [vmem:[#allocation2 + $0x23c] ss:$28 sps:$4 sm:$0xff]  }
 0x206   :  { %v2781_v10 = vpop.f32.mrf.mxu1  ;;  %v7040_v58 = vpop.f32.mrf.mxu0 }
 0x207   :  { %8162 = vst [vmem:[#allocation32_spill] sm:$0xff] %v7040_v58  ;;  %v2782_v52 = vadd.f32 %v2781_v10, %v6821_v30  ;;  %v3709_v9 = vmax.f32 %v2780_v37, 0.0  ;;  %v6382_v30 = vld [vmem:[#allocation2 + $0x244] ss:$28 sps:$4 sm:$0xff]  }
 0x208   :  { %v2783_v60 = vpop.f32.mrf.mxu1  ;;  %v7044_v62 = vpop.f32.mrf.mxu0 }
 0x209   :  { %v3712_v2 = vmax.f32 %v2782_v52, 0.0  ;;  %v2784_v13 = vadd.f32 %v2783_v60, %v6825_v22 }
 0x20a   :  { %v2787_v31 = vpop.f32.mrf.mxu1  ;;  %v7047_v4 = vpop.f32.mrf.mxu0  ;;  %3252 = vmatmul.mubr.bf16.gmra.mxu1 %v6379_v34  ;;  %3445 = vmatmul.mubr.bf16.gmra.mxu0 %v6380_v32 }
 0x20b   :  { %8163 = vst [vmem:[#allocation33_spill] sm:$0xff] %v7047_v4  ;;  %v7049_v58 = vpack.c.bf16 %v3712_v2, %v3708_v14  ;;  %v3713_v21 = vmax.f32 %v2784_v13, 0.0  ;;  %3261 = vmatprep.mubr.bf16.mxu1 %v6381_v19  ;;  %3454 = vmatprep.mubr.bf16.mxu0 %v6382_v30  ;;  %v2788_v22 = vadd.f32 %v2787_v31, %v6830_v44  ;;  %v6383_v44 = vld [vmem:[#allocation2 + $0x238] ss:$28 sps:$4 sm:$0xff]   ;;  %v6384_v31 = vld [vmem:[#allocation2 + $0x240] ss:$28 sps:$4 sm:$0xff]  }
 0x20c   :  { %v2789_v10 = vpop.f32.mrf.mxu1  ;;  %v7051_v36 = vpop.f32.mrf.mxu0 }
 0x20d   :  { %8164 = vst [vmem:[#allocation34_spill] sm:$0xff] %v7051_v36  ;;  %v7054_v52 = vpack.c.bf16 %v3713_v21, %v3709_v9  ;;  %v2790_v34 = vadd.f32 %v2789_v10, %v6834_v57  ;;  %v3716_v13 = vmax.f32 %v2788_v22, 0.0  ;;  %v6385_v10 = vld [vmem:[#allocation2 + $0x274] ss:$28 sps:$4 sm:$0xff]  }
 0x20e   :  { %v2791_v60 = vpop.f32.mrf.mxu1  ;;  %v7056_v4 = vpop.f32.mrf.mxu0 }
 0x20f   :  { %v2792_v37 = vadd.f32 %v2791_v60, %v6838_v27  ;;  %v3717_v9 = vmax.f32 %v2790_v34, 0.0  ;;  %v6386_v27 = vld [vmem:[#allocation2 + $0x27c] ss:$28 sps:$4 sm:$0xff]  }
 0x210   :  { %v2793_v14 = vpop.f32.mrf.mxu1  ;;  %v7060_v2 = vpop.f32.mrf.mxu0  ;;  %v6247_v60 = vld [vmem:[#allocation8 + $0x174] ss:$8 sps:$4 sm:$0xff]  }
 0x211   :  { %8165 = vst [vmem:[#allocation35_spill] sm:$0xff] %v7060_v2  ;;  %v3720_v32 = vmax.f32 %v2792_v37, 0.0  ;;  %v2794_v19 = vadd.f32 %v2793_v14, %v6842_v45  ;;  %4489 = vmatprep.subr.bf16.mxu1 %v6247_v60  ;;  %v6389_v60 = vld [vmem:[#allocation2 + $0x2ac] ss:$28 sps:$4 sm:$0xff]  }
 0x212   :  { %v2797_v30 = vpop.f32.mrf.mxu1  ;;  %v7063_v36 = vpop.f32.mrf.mxu0  ;;  %3262 = vmatmul.mubr.bf16.gmra.mxu1 %v6383_v44  ;;  %3455 = vmatmul.mubr.bf16.gmra.mxu0 %v6384_v31 }
 0x213   :  { %8166 = vst [vmem:[#allocation38_spill] sm:$0xff] %v7063_v36  ;;  %v7065_v21 = vpack.c.bf16 %v3720_v32, %v3716_v13  ;;  %v3721_v57 = vmax.f32 %v2794_v19, 0.0  ;;  %3271 = vmatprep.mubr.bf16.mxu1 %v6385_v10  ;;  %3464 = vmatprep.mubr.bf16.mxu0 %v6386_v27  ;;  %v2798_v45 = vadd.f32 %v2797_v30, %v6847_v50  ;;  %v6387_v50 = vld [vmem:[#allocation2 + $0x270] ss:$28 sps:$4 sm:$0xff]   ;;  %v6388_v30 = vld [vmem:[#allocation2 + $0x278] ss:$28 sps:$4 sm:$0xff]  }
 0x214   :  { %v2799_v22 = vpop.f32.mrf.mxu1  ;;  %v7067_v37 = vpop.f32.mrf.mxu0 }
 0x215   :  { %8167 = vst [vmem:[#allocation39_spill] sm:$0xff] %v7067_v37  ;;  %v7070_v14 = vpack.c.bf16 %v3721_v57, %v3717_v9  ;;  %v2800_v34 = vadd.f32 %v2799_v22, %v6851_v1  ;;  %v3724_v31 = vmax.f32 %v2798_v45, 0.0 }
 0x216   :  { %v2801_v44 = vpop.f32.mrf.mxu1  ;;  %v7072_v36 = vpop.f32.mrf.mxu0 }
 0x217   :  { %v2802_v13 = vadd.f32 %v2801_v44, %v6855_v43  ;;  %v3725_v9 = vmax.f32 %v2800_v34, 0.0  ;;  %v6390_v43 = vld [vmem:[#allocation2 + $0x2b4] ss:$28 sps:$4 sm:$0xff]  }
 0x218   :  { %v2803_v32 = vpop.f32.mrf.mxu1  ;;  %v7076_v19 = vpop.f32.mrf.mxu0 }
 0x219   :  { %v3728_v10 = vmax.f32 %v2802_v13, 0.0  ;;  %v2804_v27 = vadd.f32 %v2803_v32, %v6859_v17 }
 0x21a   :  { %v2807_v37 = vpop.f32.mrf.mxu1  ;;  %v7079_v2 = vpop.f32.mrf.mxu0  ;;  %3272 = vmatmul.mubr.bf16.gmra.mxu1 %v6387_v50  ;;  %3465 = vmatmul.mubr.bf16.gmra.mxu0 %v6388_v30 }
 0x21b   :  { %v7081_v57 = vpack.c.bf16 %v3728_v10, %v3724_v31  ;;  %v3729_v1 = vmax.f32 %v2804_v27, 0.0  ;;  %3281 = vmatprep.mubr.bf16.mxu1 %v6389_v60  ;;  %3474 = vmatprep.mubr.bf16.mxu0 %v6390_v43  ;;  %v2808_v17 = vadd.f32 %v2807_v37, %v6864_v53  ;;  %v6391_v53 = vld [vmem:[#allocation2 + $0x2a8] ss:$28 sps:$4 sm:$0xff]   ;;  %v6392_v37 = vld [vmem:[#allocation2 + $0x2b0] ss:$28 sps:$4 sm:$0xff]  }
 0x21c   :  { %v2809_v22 = vpop.f32.mrf.mxu1  ;;  %v7083_v45 = vpop.f32.mrf.mxu0 }
 0x21d   :  { %8168 = vst [vmem:[#allocation40_spill] sm:$0xff] %v7083_v45  ;;  %v7086_v44 = vpack.c.bf16 %v3729_v1, %v3725_v9  ;;  %v2810_v50 = vadd.f32 %v2809_v22, %v6868_v18  ;;  %v3732_v27 = vmax.f32 %v2808_v17, 0.0  ;;  %v6393_v22 = vld [vmem:[#allocation2 + $0x2e4] ss:$28 sps:$4 sm:$0xff]  }
 0x21e   :  { %v2811_v13 = vpop.f32.mrf.mxu1  ;;  %v7088_v32 = vpop.f32.mrf.mxu0 }
 0x21f   :  { %v2812_v34 = vadd.f32 %v2811_v13, %v6872_v39  ;;  %v3733_v9 = vmax.f32 %v2810_v50, 0.0  ;;  %v6394_v39 = vld [vmem:[#allocation2 + $0x2ec] ss:$28 sps:$4 sm:$0xff]  }
 0x220   :  { %v2813_v31 = vpop.f32.mrf.mxu1  ;;  %v7092_v10 = vpop.f32.mrf.mxu0 }
 0x221   :  { %v3736_v30 = vmax.f32 %v2812_v34, 0.0  ;;  %v2814_v60 = vadd.f32 %v2813_v31, %v6876_v55 }
 0x222   :  { %v2817_v43 = vpop.f32.mrf.mxu1  ;;  %v7095_v45 = vpop.f32.mrf.mxu0  ;;  %3282 = vmatmul.mubr.bf16.gmra.mxu1 %v6391_v53  ;;  %3475 = vmatmul.mubr.bf16.gmra.mxu0 %v6392_v37 }
 0x223   :  { %8169 = vst [vmem:[#allocation41_spill] sm:$0xff] %v7095_v45  ;;  %v7097_v1 = vpack.c.bf16 %v3736_v30, %v3732_v27  ;;  %v3737_v18 = vmax.f32 %v2814_v60, 0.0  ;;  %3291 = vmatprep.mubr.bf16.mxu1 %v6393_v22  ;;  %3484 = vmatprep.mubr.bf16.mxu0 %v6394_v39  ;;  %v2818_v55 = vadd.f32 %v2817_v43, %v6881_v15  ;;  %v6395_v15 = vld [vmem:[#allocation2 + $0x2e0] ss:$28 sps:$4 sm:$0xff]   ;;  %v6396_v43 = vld [vmem:[#allocation2 + $0x2e8] ss:$28 sps:$4 sm:$0xff]  }
 0x224   :  { %v2819_v13 = vpop.f32.mrf.mxu1  ;;  %v7099_v17 = vpop.f32.mrf.mxu0 }
 0x225   :  { %8170 = vst [vmem:[#allocation42_spill] sm:$0xff] %v7099_v17  ;;  %v7102_v34 = vpack.c.bf16 %v3737_v18, %v3733_v9  ;;  %v2820_v53 = vadd.f32 %v2819_v13, %v6885_v5  ;;  %v3740_v60 = vmax.f32 %v2818_v55, 0.0  ;;  %v6397_v13 = vld [vmem:[#allocation2 + $0x31c] ss:$28 sps:$4 sm:$0xff]  }
 0x226   :  { %v2821_v31 = vpop.f32.mrf.mxu1  ;;  %v7104_v45 = vpop.f32.mrf.mxu0 }
 0x227   :  { %v2822_v50 = vadd.f32 %v2821_v31, %v6889_v51  ;;  %v3741_v9 = vmax.f32 %v2820_v53, 0.0  ;;  %v6398_v51 = vld [vmem:[#allocation2 + $0x324] ss:$28 sps:$4 sm:$0xff]  }
 0x228   :  { %v2823_v27 = vpop.f32.mrf.mxu1  ;;  %v7108_v30 = vpop.f32.mrf.mxu0 }
 0x229   :  { %8171 = vst [vmem:[#allocation43_spill] sm:$0xff] %v7108_v30  ;;  %v3744_v37 = vmax.f32 %v2822_v50, 0.0  ;;  %v2824_v22 = vadd.f32 %v2823_v27, %v6893_v46 }
 0x22a   :  { %v2827_v39 = vpop.f32.mrf.mxu1  ;;  %v7111_v17 = vpop.f32.mrf.mxu0  ;;  %3292 = vmatmul.mubr.bf16.gmra.mxu1 %v6395_v15  ;;  %3485 = vmatmul.mubr.bf16.gmra.mxu0 %v6396_v43 }
 0x22b   :  { %v7113_v18 = vpack.c.bf16 %v3744_v37, %v3740_v60  ;;  %v3745_v5 = vmax.f32 %v2824_v22, 0.0  ;;  %3301 = vmatprep.mubr.bf16.mxu1 %v6397_v13  ;;  %3494 = vmatprep.mubr.bf16.mxu0 %v6398_v51  ;;  %v2828_v46 = vadd.f32 %v2827_v39, %v6898_v38  ;;  %v6399_v38 = vld [vmem:[#allocation2 + $0x318] ss:$28 sps:$4 sm:$0xff]   ;;  %v6400_v39 = vld [vmem:[#allocation2 + $0x320] ss:$28 sps:$4 sm:$0xff]  }
 0x22c   :  { %v2829_v31 = vpop.f32.mrf.mxu1  ;;  %v7115_v55 = vpop.f32.mrf.mxu0 }
 0x22d   :  { %8172 = vst [vmem:[#allocation44_spill] sm:$0xff] %v7115_v55  ;;  %v7118_v50 = vpack.c.bf16 %v3745_v5, %v3741_v9  ;;  %v2830_v15 = vadd.f32 %v2829_v31, %v6902_v28  ;;  %v3748_v22 = vmax.f32 %v2828_v46, 0.0  ;;  %v6401_v31 = vld [vmem:[#allocation2 + $0x354] ss:$28 sps:$4 sm:$0xff]  }
 0x22e   :  { %v2831_v27 = vpop.f32.mrf.mxu1  ;;  %v7120_v30 = vpop.f32.mrf.mxu0 }
 0x22f   :  { %8173 = vst [vmem:[#allocation45_spill] sm:$0xff] %v7120_v30  ;;  %v2832_v53 = vadd.f32 %v2831_v27, %v6906_v63  ;;  %v3749_v9 = vmax.f32 %v2830_v15, 0.0  ;;  %v6402_v63 = vld [vmem:[#allocation2 + $0x35c] ss:$28 sps:$4 sm:$0xff]   ;;  %v8177_v15 = vld [vmem:[#allocation36_spill] sm:$0xff] }
 0x230   :  { %v2833_v60 = vpop.f32.mrf.mxu1  ;;  %v7124_v37 = vpop.f32.mrf.mxu0 }
 0x231   :  { %8174 = vst [vmem:[#allocation46_spill] sm:$0xff] %v7124_v37  ;;  %v3752_v43 = vmax.f32 %v2832_v53, 0.0  ;;  %v2834_v13 = vadd.f32 %v2833_v60, %v6910_v56 }
 0x232   :  { %v2837_v51 = vpop.f32.mrf.mxu1  ;;  %v7127_v55 = vpop.f32.mrf.mxu0  ;;  %3302 = vmatmul.mubr.bf16.gmra.mxu1 %v6399_v38  ;;  %3495 = vmatmul.mubr.bf16.gmra.mxu0 %v6400_v39 }
 0x233   :  { %8175 = vst [vmem:[#allocation47_spill] sm:$0xff] %v7127_v55  ;;  %v7129_v5 = vpack.c.bf16 %v3752_v43, %v3748_v22  ;;  %v3753_v28 = vmax.f32 %v2834_v13, 0.0  ;;  %3311 = vmatprep.mubr.bf16.mxu1 %v6401_v31  ;;  %3504 = vmatprep.mubr.bf16.mxu0 %v6402_v63  ;;  %v2838_v56 = vadd.f32 %v2837_v51, %v6915_v6  ;;  %v8179_v63 = vld [vmem:[#allocation37_spill] sm:$0xff]  ;;  %v6404_v51 = vld [vmem:[#allocation2 + $0x358] ss:$28 sps:$4 sm:$0xff]  }
 0x234   :  { %v2839_v27 = vpop.f32.mrf.mxu1  ;;  %v7131_v46 = vpop.f32.mrf.mxu0  ;;  %v6403_v6 = vld [vmem:[#allocation2 + $0x350] ss:$28 sps:$4 sm:$0xff]  }
 0x235   :  { %8176 = vst [vmem:[#allocation48_spill] sm:$0xff] %v7131_v46  ;;  %v7134_v53 = vpack.c.bf16 %v3753_v28, %v3749_v9  ;;  %v2840_v38 = vadd.f32 %v2839_v27, %v6919_v54  ;;  %v3756_v39 = vmax.f32 %v2838_v56, 0.0  ;;  %v8181_v27 = vmov 0  }
 0x236   :  { %v2841_v60 = vpop.f32.mrf.mxu1  ;;  %v7136_v37 = vpop.f32.mrf.mxu0 }
 0x237   :  { %v2842_v22 = vadd.f32 %v2841_v60, %v8177_v15  ;;  %v3757_v9 = vmax.f32 %v2840_v38, 0.0 }
 0x238   :  { %v2843_v43 = vpop.f32.mrf.mxu1  ;;  %v7140_v13 = vpop.f32.mrf.mxu0 }
 0x239   :  { %8178 = vst [vmem:[#allocation36_spill] sm:$0xff] %v7140_v13  ;;  %v3760_v31 = vmax.f32 %v2842_v22, 0.0  ;;  %v2844_v55 = vadd.f32 %v2843_v43, %v8179_v63 }
 0x23a   :  { %v2847_v30 = vpop.f32.mrf.mxu1  ;;  %v7143_v46 = vpop.f32.mrf.mxu0  ;;  %3312 = vmatmul.mubr.bf16.gmra.mxu1 %v6403_v6  ;;  %3505 = vmatmul.mubr.bf16.gmra.mxu0 %v6404_v51 }
 0x23b   :  { %8180 = vst [vmem:[#allocation37_spill] sm:$0xff] %v7143_v46  ;;  %v7145_v28 = vpack.c.bf16 %v3760_v31, %v3756_v39  ;;  %v3761_v54 = vmax.f32 %v2844_v55, 0.0  ;;  %4328 = vmatprep.mubr.bf16.mxu0 %v7054_v52  ;;  %3547 = vmatprep.mubr.bf16.mxu1 %v8181_v27  ;;  %v2848_v15 = vadd.f32 %v2847_v30, %v6931_v20  ;;  %v6245_v52 = vld [vmem:[#allocation8 + $0x170] ss:$8 sps:$4 sm:$0xff]  }
 0x23c   :  { %v2849_v60 = vpop.f32.mrf.mxu1  ;;  %v7149_v56 = vpop.f32.mrf.mxu0  ;;  %v6405_v30 = vld [vmem:[#allocation2 + $0x18] ss:$28 sps:$4 sm:$0xff]  }
 0x23d   :  { %8182 = vst [vmem:[#allocation49_spill] sm:$0xff] %v7149_v56  ;;  %v7152_v22 = vpack.c.bf16 %v3761_v54, %v3757_v9  ;;  %v2850_v6 = vadd.f32 %v2849_v60, %v6933_v47  ;;  %v3764_v31 = vmax.f32 %v2848_v15, 0.0  ;;  %v6250_v56 = vld [vmem:[#allocation8 + $0x164] ss:$8 sps:$4 sm:$0xff]  }
 0x23e   :  { %v2851_v43 = vpop.f32.mrf.mxu1  ;;  %v7154_v63 = vpop.f32.mrf.mxu0 }
 0x23f   :  { %v2852_v38 = vadd.f32 %v2851_v43, %v6935_v7  ;;  %v3765_v9 = vmax.f32 %v2850_v6, 0.0 }
 0x240   :  { %v2853_v39 = vpop.f32.mrf.mxu1  ;;  %v7158_v55 = vpop.f32.mrf.mxu0 }
 0x241   :  { %8183 = vst [vmem:[#allocation50_spill] sm:$0xff] %v7158_v55  ;;  %v3768_v51 = vmax.f32 %v2852_v38, 0.0  ;;  %v2854_v13 = vadd.f32 %v2853_v39, %v6937_v48  ;;  %v6248_v48 = vld [vmem:[#allocation8 + $0x160] ss:$8 sps:$4 sm:$0xff]   ;;  %v6253_v38 = vld [vmem:[#allocation8 + $0x154] ss:$8 sps:$4 sm:$0xff]  }
 0x242   :  { %v2857_v46 = vpop.f32.mrf.mxu1  ;;  %v7161_v20 = vpop.f32.mrf.mxu0  ;;  %3548 = vmatmul.mubr.bf16.vlgmr.msra.gmra.mxu1 %v6405_v30  ;;  %4329 = vmatmul.mubr.bf16.vlgmr.msra.gmra.mxu0 %v7049_v58  ;;  %v6275_v55 = vld [vmem:[#allocation8 + $0x1d0] ss:$8 sps:$4 sm:$0xff]  }
 0x243   :  { %v7164_v47 = vpack.c.bf16 %v3768_v51, %v3764_v31  ;;  %v3769_v7 = vmax.f32 %v2854_v13, 0.0  ;;  %4338 = vmatprep.mubr.bf16.mxu0 %v7070_v14  ;;  %3557 = vmatprep.mubr.bf16.mxu1 %v8181_v27  ;;  %v2858_v15 = vadd.f32 %v2857_v46, %v6940_v24  ;;  %v6251_v51 = vld [vmem:[#allocation8 + $0x150] ss:$8 sps:$4 sm:$0xff]   ;;  %v6256_v46 = vld [vmem:[#allocation8 + $0x144] ss:$8 sps:$4 sm:$0xff]  }
 0x244   :  { %v2859_v54 = vpop.f32.mrf.mxu1  ;;  %v7168_v60 = vpop.f32.mrf.mxu0  ;;  %4490 = vmatpush1.bf16.msra.mxu1 %v6245_v52 }
 0x245   :  { %v7171_v43 = vpack.c.bf16 %v3769_v7, %v3765_v9  ;;  %4491 = vmatprep.subr.bf16.mxu1 %v6250_v56  ;;  %v2860_v13 = vadd.f32 %v2859_v54, %v6943_v3  ;;  %v3772_v52 = vmax.f32 %v2858_v15, 0.0  ;;  %v6406_v7 = vld [vmem:[#allocation2 + $0x50] ss:$28 sps:$4 sm:$0xff]  }
 0x246   :  { %v2861_v58 = vpop.f32.mrf.mxu1  ;;  %v7173_v6 = vpop.f32.mrf.mxu0 }
 0x247   :  { %v2862_v14 = vadd.f32 %v2861_v58, %v6946_v61  ;;  %v3773_v3 = vmax.f32 %v2860_v13, 0.0 }
 0x248   :  { %v2863_v39 = vpop.f32.mrf.mxu1  ;;  %v7177_v31 = vpop.f32.mrf.mxu0  ;;  %4492 = vmatpush1.bf16.msra.mxu1 %v6248_v48 }
 0x249   :  { %8184 = vst [vmem:[#allocation51_spill] sm:$0xff] %v7177_v31  ;;  %v3776_v30 = vmax.f32 %v2862_v14, 0.0  ;;  %v2864_v24 = vadd.f32 %v2863_v39, %v6949_v33  ;;  %4493 = vmatprep.subr.bf16.mxu1 %v6253_v38  ;;  %v6254_v33 = vld [vmem:[#allocation8 + $0x140] ss:$8 sps:$4 sm:$0xff]   ;;  %v6259_v14 = vld [vmem:[#allocation8 + $0x134] ss:$8 sps:$4 sm:$0xff]  }
 0x24a   :  { %v2867_v56 = vpop.f32.mrf.mxu1  ;;  %v7180_v9 = vpop.f32.mrf.mxu0  ;;  %3558 = vmatmul.mubr.bf16.gmra.mxu1 %v6406_v7  ;;  %4339 = vmatmul.mubr.bf16.gmra.mxu0 %v7065_v21  ;;  %v8190_v31 = vld [vmem:[#allocation19_spill] sm:$0xff] }
 0x24b   :  { %v7183_v61 = vpack.c.bf16 %v3776_v30, %v3772_v52  ;;  %v3777_v54 = vmax.f32 %v2864_v24, 0.0  ;;  %4348 = vmatprep.mubr.bf16.mxu0 %v7086_v44  ;;  %3567 = vmatprep.mubr.bf16.mxu1 %v8181_v27  ;;  %v2868_v38 = vadd.f32 %v2867_v56, %v6952_v59  ;;  %v6257_v24 = vld [vmem:[#allocation8 + $0x130] ss:$8 sps:$4 sm:$0xff]   ;;  %v6262_v56 = vld [vmem:[#allocation8 + $0x124] ss:$8 sps:$4 sm:$0xff]  }
 0x24c   :  { %v2869_v48 = vpop.f32.mrf.mxu1  ;;  %v7187_v15 = vpop.f32.mrf.mxu0  ;;  %4494 = vmatpush1.bf16.msra.mxu1 %v6251_v51 }
 0x24d   :  { %v7190_v58 = vpack.c.bf16 %v3777_v54, %v3773_v3  ;;  %4495 = vmatprep.subr.bf16.mxu1 %v6256_v46  ;;  %v2870_v39 = vadd.f32 %v2869_v48, %v6955_v26  ;;  %v3780_v51 = vmax.f32 %v2868_v38, 0.0  ;;  %v6407_v54 = vld [vmem:[#allocation2 + $0x88] ss:$28 sps:$4 sm:$0xff]  }
 0x24e   :  { %v2871_v21 = vpop.f32.mrf.mxu1  ;;  %v7192_v13 = vpop.f32.mrf.mxu0 }
 0x24f   :  { %v2872_v44 = vadd.f32 %v2871_v21, %v6958_v0  ;;  %v3781_v26 = vmax.f32 %v2870_v39, 0.0 }
 0x250   :  { %v2873_v52 = vpop.f32.mrf.mxu1  ;;  %v7196_v30 = vpop.f32.mrf.mxu0  ;;  %4496 = vmatpush1.bf16.msra.mxu1 %v6254_v33 }
 0x251   :  { %8185 = vst [vmem:[#allocation52_spill] sm:$0xff] %v7196_v30  ;;  %v3784_v7 = vmax.f32 %v2872_v44, 0.0  ;;  %v2874_v59 = vadd.f32 %v2873_v52, %v6961_v11  ;;  %4497 = vmatprep.subr.bf16.mxu1 %v6259_v14  ;;  %v6260_v11 = vld [vmem:[#allocation8 + $0x120] ss:$8 sps:$4 sm:$0xff]   ;;  %v6265_v44 = vld [vmem:[#allocation8 + $0x114] ss:$8 sps:$4 sm:$0xff]  }
 0x252   :  { %v2877_v46 = vpop.f32.mrf.mxu1  ;;  %v7199_v3 = vpop.f32.mrf.mxu0  ;;  %3568 = vmatmul.mubr.bf16.gmra.mxu1 %v6407_v54  ;;  %4349 = vmatmul.mubr.bf16.gmra.mxu0 %v7081_v57 }
 0x253   :  { %v7202_v0 = vpack.c.bf16 %v3784_v7, %v3780_v51  ;;  %v3785_v48 = vmax.f32 %v2874_v59, 0.0  ;;  %4358 = vmatprep.mubr.bf16.mxu0 %v7102_v34  ;;  %3577 = vmatprep.mubr.bf16.mxu1 %v8181_v27  ;;  %v2878_v14 = vadd.f32 %v2877_v46, %v6964_v16  ;;  %v6263_v59 = vld [vmem:[#allocation8 + $0x110] ss:$8 sps:$4 sm:$0xff]   ;;  %v6268_v46 = vld [vmem:[#allocation8 + $0x104] ss:$8 sps:$4 sm:$0xff]  }
 0x254   :  { %v2879_v33 = vpop.f32.mrf.mxu1  ;;  %v7206_v38 = vpop.f32.mrf.mxu0  ;;  %4498 = vmatpush1.bf16.msra.mxu1 %v6257_v24 }
 0x255   :  { %v7209_v21 = vpack.c.bf16 %v3785_v48, %v3781_v26  ;;  %4499 = vmatprep.subr.bf16.mxu1 %v6262_v56  ;;  %v2880_v52 = vadd.f32 %v2879_v33, %v6967_v49  ;;  %v3788_v24 = vmax.f32 %v2878_v14, 0.0  ;;  %v6408_v48 = vld [vmem:[#allocation2 + $0xc0] ss:$28 sps:$4 sm:$0xff]  }
 0x256   :  { %v2881_v57 = vpop.f32.mrf.mxu1  ;;  %v7211_v39 = vpop.f32.mrf.mxu0 }
 0x257   :  { %v2882_v34 = vadd.f32 %v2881_v57, %v6970_v29  ;;  %v3789_v49 = vmax.f32 %v2880_v52, 0.0 }
 0x258   :  { %v2883_v51 = vpop.f32.mrf.mxu1  ;;  %v7215_v7 = vpop.f32.mrf.mxu0  ;;  %4500 = vmatpush1.bf16.msra.mxu1 %v6260_v11 }
 0x259   :  { %8186 = vst [vmem:[#allocation53_spill] sm:$0xff] %v7215_v7  ;;  %v3792_v54 = vmax.f32 %v2882_v34, 0.0  ;;  %v2884_v16 = vadd.f32 %v2883_v51, %v6973_v42  ;;  %4501 = vmatprep.subr.bf16.mxu1 %v6265_v44  ;;  %v6266_v42 = vld [vmem:[#allocation8 + $0x100] ss:$8 sps:$4 sm:$0xff]   ;;  %v6271_v34 = vld [vmem:[#allocation8 + $0x1f4] ss:$8 sps:$4 sm:$0xff]  }
 0x25a   :  { %v2887_v56 = vpop.f32.mrf.mxu1  ;;  %v7218_v26 = vpop.f32.mrf.mxu0  ;;  %3578 = vmatmul.mubr.bf16.gmra.mxu1 %v6408_v48  ;;  %4359 = vmatmul.mubr.bf16.gmra.mxu0 %v7097_v1  ;;  %v8187_v51 = vld [vmem:[#allocation17_spill] sm:$0xff]  ;;  %v6269_v7 = vld [vmem:[#allocation8 + $0x1f0] ss:$8 sps:$4 sm:$0xff]  }
 0x25b   :  { %v7221_v29 = vpack.c.bf16 %v3792_v54, %v3788_v24  ;;  %v3793_v33 = vmax.f32 %v2884_v16, 0.0  ;;  %4368 = vmatprep.mubr.bf16.mxu0 %v7118_v50  ;;  %3587 = vmatprep.mubr.bf16.mxu1 %v8181_v27  ;;  %v2888_v44 = vadd.f32 %v2887_v56, %v6976_v41  ;;  %v8188_v54 = vld [vmem:[#allocation18_spill] sm:$0xff]  ;;  %v6274_v56 = vld [vmem:[#allocation8 + $0x1e4] ss:$8 sps:$4 sm:$0xff]  }
 0x25c   :  { %v2889_v11 = vpop.f32.mrf.mxu1  ;;  %v7225_v14 = vpop.f32.mrf.mxu0  ;;  %4502 = vmatpush1.bf16.msra.mxu1 %v6263_v59 }
 0x25d   :  { %v7228_v57 = vpack.c.bf16 %v3793_v33, %v3789_v49  ;;  %4503 = vmatprep.subr.bf16.mxu1 %v6268_v46  ;;  %v2890_v24 = vadd.f32 %v2889_v11, %v8187_v51  ;;  %v3796_v59 = vmax.f32 %v2888_v44, 0.0  ;;  %v6409_v33 = vld [vmem:[#allocation2 + $0xf8] ss:$28 sps:$4 sm:$0xff]  }
 0x25e   :  { %v2891_v1 = vpop.f32.mrf.mxu1  ;;  %v7230_v52 = vpop.f32.mrf.mxu0 }
 0x25f   :  { %v2892_v50 = vadd.f32 %v2891_v1, %v8188_v54  ;;  %v3797_v11 = vmax.f32 %v2890_v24, 0.0 }
 0x260   :  { %v2893_v16 = vpop.f32.mrf.mxu1  ;;  %v7234_v48 = vpop.f32.mrf.mxu0  ;;  %4504 = vmatpush1.bf16.msra.mxu1 %v6266_v42 }
 0x261   :  { %8189 = vst [vmem:[#allocation17_spill] sm:$0xff] %v7234_v48  ;;  %v3800_v30 = vmax.f32 %v2892_v50, 0.0  ;;  %v2894_v41 = vadd.f32 %v2893_v16, %v8190_v31  ;;  %4505 = vmatprep.subr.bf16.mxu1 %v6271_v34  ;;  %v6272_v31 = vld [vmem:[#allocation8 + $0x1e0] ss:$8 sps:$4 sm:$0xff]   ;;  %v6277_v16 = vld [vmem:[#allocation8 + $0x1d4] ss:$8 sps:$4 sm:$0xff]  }
 0x262   :  { %v2897_v46 = vpop.f32.mrf.mxu1  ;;  %v7237_v49 = vpop.f32.mrf.mxu0  ;;  %3588 = vmatmul.mubr.bf16.gmra.mxu1 %v6409_v33  ;;  %4369 = vmatmul.mubr.bf16.gmra.mxu0 %v7113_v18  ;;  %v8193_v34 = vld [vmem:[#allocation20_spill] sm:$0xff] }
 0x263   :  { %8191 = vst [vmem:[#allocation18_spill] sm:$0xff] %v7237_v49  ;;  %v7240_v1 = vpack.c.bf16 %v3800_v30, %v3796_v59  ;;  %v3801_v51 = vmax.f32 %v2894_v41, 0.0  ;;  %4378 = vmatprep.mubr.bf16.mxu0 %v7134_v53  ;;  %3597 = vmatprep.mubr.bf16.mxu1 %v8181_v27  ;;  %v2898_v54 = vadd.f32 %v2897_v46, %v8193_v34  ;;  %v8195_v30 = vld [vmem:[#allocation21_spill] sm:$0xff]  ;;  %v8196_v41 = vld [vmem:[#allocation22_spill] sm:$0xff]  ;;  %v8198_v49 = vld [vmem:[#allocation23_spill] sm:$0xff] }
 0x264   :  { %v2899_v42 = vpop.f32.mrf.mxu1  ;;  %v7244_v44 = vpop.f32.mrf.mxu0  ;;  %4506 = vmatpush2.bf16.msra.mxu1 %v6269_v7 }
 0x265   :  { %8192 = vst [vmem:[#allocation19_spill] sm:$0xff] %v7244_v44  ;;  %v7247_v50 = vpack.c.bf16 %v3801_v51, %v3797_v11  ;;  %4507 = vmatprep.subr.bf16.mxu1 %v6274_v56  ;;  %v2900_v59 = vadd.f32 %v2899_v42, %v8195_v30  ;;  %v3804_v7 = vmax.f32 %v2898_v54, 0.0  ;;  %v6410_v51 = vld [vmem:[#allocation2 + $0x130] ss:$28 sps:$4 sm:$0xff]  }
 0x266   :  { %v2901_v18 = vpop.f32.mrf.mxu1  ;;  %v7249_v24 = vpop.f32.mrf.mxu0 }
 0x267   :  { %8194 = vst [vmem:[#allocation20_spill] sm:$0xff] %v7249_v24  ;;  %v2902_v53 = vadd.f32 %v2901_v18, %v8196_v41  ;;  %v3805_v42 = vmax.f32 %v2900_v59, 0.0 }
 0x268   :  { %v2903_v33 = vpop.f32.mrf.mxu1  ;;  %v7253_v48 = vpop.f32.mrf.mxu0  ;;  %4508 = vmatpush2.bf16.msra.mxu1 %v6272_v31  ;;  %v6280_v31 = vld [vmem:[#allocation8 + $0x1c4] ss:$8 sps:$4 sm:$0xff]  }
 0x269   :  { %8197 = vst [vmem:[#allocation21_spill] sm:$0xff] %v7253_v48  ;;  %v3808_v44 = vmax.f32 %v2902_v53, 0.0  ;;  %v2904_v46 = vadd.f32 %v2903_v33, %v8198_v49  ;;  %4509 = vmatprep.subr.bf16.mxu1 %v6277_v16  ;;  %v6278_v49 = vld [vmem:[#allocation8 + $0x1c0] ss:$8 sps:$4 sm:$0xff]  }
 0x26a   :  { %v2907_v11 = vpop.f32.mrf.mxu1  ;;  %v7256_v56 = vpop.f32.mrf.mxu0  ;;  %3598 = vmatmul.mubr.bf16.gmra.mxu1 %v6410_v51  ;;  %4379 = vmatmul.mubr.bf16.gmra.mxu0 %v7129_v5  ;;  %v8201_v16 = vld [vmem:[#allocation24_spill] sm:$0xff] }
 0x26b   :  { %8199 = vst [vmem:[#allocation22_spill] sm:$0xff] %v7256_v56  ;;  %v7259_v34 = vpack.c.bf16 %v3808_v44, %v3804_v7  ;;  %v3809_v18 = vmax.f32 %v2904_v46, 0.0  ;;  %4388 = vmatprep.mubr.bf16.mxu0 %v7152_v22  ;;  %3607 = vmatprep.mubr.bf16.mxu1 %v8181_v27  ;;  %v2908_v41 = vadd.f32 %v2907_v11, %v8201_v16  ;;  %v8203_v44 = vld [vmem:[#allocation25_spill] sm:$0xff]  ;;  %v8204_v7 = vld [vmem:[#allocation26_spill] sm:$0xff] }
 0x26c   :  { %v2909_v54 = vpop.f32.mrf.mxu1  ;;  %v7263_v30 = vpop.f32.mrf.mxu0  ;;  %4510 = vmatpush2.bf16.msra.mxu1 %v6275_v55  ;;  %v8206_v55 = vld [vmem:[#allocation27_spill] sm:$0xff] }
 0x26d   :  { %8200 = vst [vmem:[#allocation23_spill] sm:$0xff] %v7263_v30  ;;  %v7266_v53 = vpack.c.bf16 %v3809_v18, %v3805_v42  ;;  %4511 = vmatprep.subr.bf16.mxu1 %v6280_v31  ;;  %v2910_v33 = vadd.f32 %v2909_v54, %v8203_v44  ;;  %v3812_v48 = vmax.f32 %v2908_v41, 0.0  ;;  %v6411_v42 = vld [vmem:[#allocation2 + $0x168] ss:$28 sps:$4 sm:$0xff]   ;;  %v6283_v16 = vld [vmem:[#allocation8 + $0x1b4] ss:$8 sps:$4 sm:$0xff]  }
 0x26e   :  { %v2911_v5 = vpop.f32.mrf.mxu1  ;;  %v7268_v59 = vpop.f32.mrf.mxu0  ;;  %v8209_v44 = vld [vmem:[#allocation28_spill] sm:$0xff] }
 0x26f   :  { %8202 = vst [vmem:[#allocation24_spill] sm:$0xff] %v7268_v59  ;;  %v2912_v22 = vadd.f32 %v2911_v5, %v8204_v7  ;;  %v3813_v18 = vmax.f32 %v2910_v33, 0.0  ;;  %v8212_v33 = vld [vmem:[#allocation30_spill] sm:$0xff]  ;;  %v8214_v59 = vld [vmem:[#allocation31_spill] sm:$0xff] }
 0x270   :  { %v2913_v46 = vpop.f32.mrf.mxu1  ;;  %v7272_v51 = vpop.f32.mrf.mxu0  ;;  %4512 = vmatpush2.bf16.msra.mxu1 %v6278_v49  ;;  %v6281_v49 = vld [vmem:[#allocation8 + $0x1b0] ss:$8 sps:$4 sm:$0xff]  }
 0x271   :  { %8205 = vst [vmem:[#allocation25_spill] sm:$0xff] %v7272_v51  ;;  %v3816_v30 = vmax.f32 %v2912_v22, 0.0  ;;  %v2914_v56 = vadd.f32 %v2913_v46, %v8206_v55  ;;  %4513 = vmatprep.subr.bf16.mxu1 %v6283_v16 }
 0x272   :  { %v2917_v24 = vpop.f32.mrf.mxu1  ;;  %v7275_v11 = vpop.f32.mrf.mxu0  ;;  %3608 = vmatmul.mubr.bf16.gmra.mxu1 %v6411_v42  ;;  %4389 = vmatmul.mubr.bf16.gmra.mxu0 %v7145_v28 }
 0x273   :  { %8207 = vst [vmem:[#allocation26_spill] sm:$0xff] %v7275_v11  ;;  %v7278_v31 = vpack.c.bf16 %v3816_v30, %v3812_v48  ;;  %v3817_v54 = vmax.f32 %v2914_v56, 0.0  ;;  %4398 = vmatprep.mubr.bf16.mxu0 %v7171_v43  ;;  %3617 = vmatprep.mubr.bf16.mxu1 %v8181_v27  ;;  %v2918_v7 = vadd.f32 %v2917_v24, %v8209_v44  ;;  %v8210_v48 = vld [vmem:[#allocation16_spill] sm:$0xff]  ;;  %v8211_v30 = vld [vmem:[#allocation29_spill] sm:$0xff]  ;;  %v6412_v44 = vld [vmem:[#allocation2 + $0x1a0] ss:$28 sps:$4 sm:$0xff]  }
 0x274   :  { %v2919_v41 = vpop.f32.mrf.mxu1  ;;  %v7282_v5 = vpop.f32.mrf.mxu0  ;;  %4514 = vmatpush2.bf16.msra.mxu1 %v6281_v49  ;;  %v458_v56 = vsub.s32 2, %v8210_v48  ;;  %v6413_v49 = vld [vmem:[#allocation7] sm:$0xf] }
 0x275   :  { %8208 = vst [vmem:[#allocation27_spill] sm:$0xff] %v7282_v5  ;;  %v7285_v22 = vpack.c.bf16 %v3817_v54, %v3813_v18  ;;  %v2920_v43 = vadd.f32 %v2919_v41, %v8211_v30  ;;  %v3820_v11 = vmax.f32 %v2918_v7, 0.0  ;;  %v462_v18 = vsub.s32 3, %v8210_v48  ;;  %v6286_v7 = vld [vmem:[#allocation8 + $0x1a4] ss:$8 sps:$4 sm:$0xff]  }
 0x276   :  { %v2921_v46 = vpop.f32.mrf.mxu1  ;;  %v7287_v28 = vpop.f32.mrf.mxu0  ;;  %v7299_v41 = vrot.slane %v6413_v49, %v458_v56  ;;  %4515 = vmatprep.subr.bf16.mxu1 %v6286_v7 }
 0x277   :  { %v2922_v55 = vadd.f32 %v2921_v46, %v8212_v33  ;;  %v3821_v46 = vmax.f32 %v2920_v43, 0.0 }
 0x278   :  { %v2923_v42 = vpop.f32.mrf.mxu1  ;;  %v7292_v51 = vpop.f32.mrf.mxu0 }
 0x279   :  { %8213 = vst [vmem:[#allocation28_spill] sm:$0xff] %v7292_v51  ;;  %v3824_v5 = vmax.f32 %v2922_v55, 0.0  ;;  %v2924_v24 = vadd.f32 %v2923_v42, %v8214_v59  ;;  %v6284_v59 = vld [vmem:[#allocation8 + $0x1a0] ss:$8 sps:$4 sm:$0xff]  }
 0x27a   :  { %v2927_v54 = vpop.f32.mrf.mxu1  ;;  %v7296_v16 = vpop.f32.mrf.mxu0  ;;  %3618 = vmatmul.mubr.bf16.gmra.mxu1 %v6412_v44  ;;  %4399 = vmatmul.mubr.bf16.gmra.mxu0 %v7164_v47  ;;  %v7310_v47 = vrot.slane %v6413_v49, %v462_v18 }
 0x27b   :  { %v7301_v30 = vpack.c.bf16 %v3824_v5, %v3820_v11  ;;  %v3825_v33 = vmax.f32 %v2924_v24, 0.0  ;;  %4408 = vmatprep.mubr.bf16.mxu0 %v7190_v58  ;;  %3627 = vmatprep.mubr.bf16.mxu1 %v8181_v27  ;;  %v2928_v44 = vadd.f32 %v2927_v54, %v7024_v23  ;;  %v2971_v58 = vadd.f32 %v7033_v25, %v7299_v41 }
 0x27c   :  { %v2929_v55 = vpop.f32.mrf.mxu1  ;;  %v7305_v42 = vpop.f32.mrf.mxu0  ;;  %4516 = vmatpush2.bf16.msra.mxu1 %v6284_v59  ;;  %v2973_v18 = vadd.f32 %v7037_v12, %v7310_v47  ;;  %v6414_v59 = vld [vmem:[#allocation2 + $0x1d8] ss:$28 sps:$4 sm:$0xff]   ;;  %v8216_v12 = vld [vmem:[#allocation32_spill] sm:$0xff] }
 0x27d   :  { %v7308_v48 = vpack.c.bf16 %v3825_v33, %v3821_v46  ;;  %v2930_v5 = vadd.f32 %v2929_v55, %v7027_v8  ;;  %v3828_v23 = vmax.f32 %v2928_v44, 0.0  ;;  %v6287_v55 = vld [vmem:[#allocation8 + $0x190] ss:$8 sps:$4 sm:$0xff]  }
 0x27e   :  { %v2931_v56 = vpop.f32.mrf.mxu1  ;;  %v7312_v11 = vpop.f32.mrf.mxu0 }
 0x27f   :  { %v2932_v43 = vadd.f32 %v2931_v56, %v7030_v40  ;;  %v3829_v25 = vmax.f32 %v2930_v5, 0.0 }
 0x280   :  { %v2933_v24 = vpop.f32.mrf.mxu1  ;;  %v7318_v51 = vpop.f32.mrf.mxu0 }
 0x281   :  { %8215 = vst [vmem:[#allocation29_spill] sm:$0xff] %v7318_v51  ;;  %v3832_v54 = vmax.f32 %v2932_v43, 0.0  ;;  %v2934_v46 = vadd.f32 %v2933_v24, %v7035_v35  ;;  %v6289_v35 = vld [vmem:[#allocation8 + $0x194] ss:$8 sps:$4 sm:$0xff]   ;;  %v2975_v43 = vadd.f32 %v8216_v12, %v7299_v41 }
 0x282   :  { %v3163_v49 = vpop.f32.mrf.mxu1  ;;  %v3356_v33 = vpop.f32.mrf.mxu0  ;;  %3628 = vmatmul.mubr.bf16.gmra.mxu1 %v6414_v59  ;;  %4409 = vmatmul.mubr.bf16.gmra.mxu0 %v7183_v61 }
 0x283   :  { %v7324_v8 = vpack.c.bf16 %v3832_v54, %v3828_v23  ;;  %v3833_v40 = vmax.f32 %v2934_v46, 0.0  ;;  %v3164_v7 = vadd.f32 %v3163_v49, %v2971_v58  ;;  %4418 = vmatprep.mubr.bf16.mxu0 %v7209_v21  ;;  %3637 = vmatprep.mubr.bf16.mxu1 %v8181_v27  ;;  %v2977_v21 = vadd.f32 %v7044_v62, %v7310_v47  ;;  %v8217_v58 = vld [vmem:[#allocation33_spill] sm:$0xff]  ;;  %v8218_v62 = vld [vmem:[#allocation34_spill] sm:$0xff] }
 0x284   :  { %v3165_v44 = vpop.f32.mrf.mxu1  ;;  %v3358_v56 = vpop.f32.mrf.mxu0  ;;  %4517 = vmatprep.subr.bf16.mxu1 %v6289_v35  ;;  %v2981_v54 = vadd.f32 %v8217_v58, %v7299_v41  ;;  %v2983_v35 = vadd.f32 %v8218_v62, %v7310_v47 }
 0x285   :  { %v7330_v24 = vadd.f32 %v3356_v33, %v3164_v7  ;;  %v3166_v59 = vadd.f32 %v3165_v44, %v2973_v18  ;;  %v7332_v61 = vpack.c.bf16 %v3833_v40, %v3829_v25  ;;  %4518 = vmatpush2.bf16.msra.mxu1 %v6287_v55  ;;  %v6415_v7 = vld [vmem:[#allocation2 + $0x210] ss:$28 sps:$4 sm:$0xff]  }
 0x286   :  { %v3167_v5 = vpop.f32.mrf.mxu1  ;;  %v3360_v23 = vpop.f32.mrf.mxu0  ;;  %v6292_v55 = vld [vmem:[#allocation8 + $0x184] ss:$8 sps:$4 sm:$0xff]  }
 0x287   :  { %v7338_v46 = vadd.f32 %v3358_v56, %v3166_v59  ;;  %v3168_v49 = vadd.f32 %v3167_v5, %v2975_v43  ;;  %v6290_v43 = vld [vmem:[#allocation8 + $0x180] ss:$8 sps:$4 sm:$0xff]   ;;  %4519 = vmatprep.subr.bf16.mxu1 %v6292_v55  ;;  %v2985_v5 = vadd.f32 %v7056_v4, %v7299_v41 }
 0x288   :  { %v3169_v51 = vpop.f32.mrf.mxu1  ;;  %v3362_v12 = vpop.f32.mrf.mxu0 }
 0x289   :  { %v7340_v33 = vadd.f32 %v3360_v23, %v3168_v49  ;;  %v3170_v18 = vadd.f32 %v3169_v51, %v2977_v21  ;;  %4520 = vmatpush2.bf16.msra.mxu1 %v6290_v43  ;;  %v8219_v49 = vld [vmem:[#allocation35_spill] sm:$0xff] }
 0x28a   :  { %v3173_v25 = vpop.f32.mrf.mxu1  ;;  %v3366_v40 = vpop.f32.mrf.mxu0  ;;  %3638 = vmatmul.mubr.bf16.gmra.mxu1 %v6415_v7  ;;  %4419 = vmatmul.mubr.bf16.gmra.mxu0 %v7202_v0  ;;  %v8221_v43 = vld [vmem:[#allocation39_spill] sm:$0xff] }
 0x28b   :  { %v7345_v44 = vadd.f32 %v3362_v12, %v3170_v18  ;;  %v3174_v56 = vadd.f32 %v3173_v25, %v2981_v54  ;;  %4428 = vmatprep.mubr.bf16.mxu0 %v7228_v57  ;;  %3647 = vmatprep.mubr.bf16.mxu1 %v8181_v27  ;;  %v2987_v54 = vadd.f32 %v8219_v49, %v7310_v47  ;;  %v8220_v57 = vld [vmem:[#allocation38_spill] sm:$0xff] }
 0x28c   :  { %v3175_v59 = vpop.f32.mrf.mxu1  ;;  %v3368_v51 = vpop.f32.mrf.mxu0  ;;  %v2991_v12 = vadd.f32 %v8220_v57, %v7299_v41 }
 0x28d   :  { %v7351_v23 = vadd.f32 %v3366_v40, %v3174_v56  ;;  %v3176_v0 = vadd.f32 %v3175_v59, %v2983_v35  ;;  %v6416_v35 = vld [vmem:[#allocation2 + $0x248] ss:$28 sps:$4 sm:$0xff]   ;;  %v2993_v59 = vadd.f32 %v8221_v43, %v7310_v47  ;;  %v6417_v43 = vld [vmem:[#allocation2 + $0x280] ss:$28 sps:$4 sm:$0xff]  }
 0x28e   :  { %v3177_v21 = vpop.f32.mrf.mxu1  ;;  %v3370_v58 = vpop.f32.mrf.mxu0 }
 0x28f   :  { %v7357_v18 = vadd.f32 %v3368_v51, %v3176_v0  ;;  %v3178_v25 = vadd.f32 %v3177_v21, %v2985_v5  ;;  %v2995_v0 = vadd.f32 %v7072_v36, %v7299_v41 }
 0x290   :  { %v3179_v7 = vpop.f32.mrf.mxu1  ;;  %v3372_v55 = vpop.f32.mrf.mxu0 }
 0x291   :  { %v7359_v62 = vadd.f32 %v3370_v58, %v3178_v25  ;;  %v3180_v4 = vadd.f32 %v3179_v7, %v2987_v54  ;;  %v2997_v25 = vadd.f32 %v7076_v19, %v7310_v47 }
 0x292   :  { %v3183_v40 = vpop.f32.mrf.mxu1  ;;  %v3376_v56 = vpop.f32.mrf.mxu0  ;;  %3648 = vmatmul.mubr.bf16.gmra.mxu1 %v6416_v35  ;;  %4429 = vmatmul.mubr.bf16.gmra.mxu0 %v7221_v29 }
 0x293   :  { %v7364_v49 = vadd.f32 %v3372_v55, %v3180_v4  ;;  %v3184_v57 = vadd.f32 %v3183_v40, %v2991_v12  ;;  %4438 = vmatprep.mubr.bf16.mxu0 %v7247_v50  ;;  %3657 = vmatprep.mubr.bf16.mxu1 %v8181_v27  ;;  %v3001_v12 = vadd.f32 %v7079_v2, %v7299_v41 }
 0x294   :  { %v3185_v51 = vpop.f32.mrf.mxu1  ;;  %v3378_v5 = vpop.f32.mrf.mxu0 }
 0x295   :  { %v7370_v21 = vadd.f32 %v3376_v56, %v3184_v57  ;;  %v3186_v58 = vadd.f32 %v3185_v51, %v2993_v59  ;;  %v8222_v59 = vld [vmem:[#allocation40_spill] sm:$0xff] }
 0x296   :  { %v3187_v54 = vpop.f32.mrf.mxu1  ;;  %v3380_v29 = vpop.f32.mrf.mxu0  ;;  %v3003_v19 = vadd.f32 %v8222_v59, %v7310_v47  ;;  %v6418_v59 = vld [vmem:[#allocation2 + $0x2b8] ss:$28 sps:$4 sm:$0xff]  }
 0x297   :  { %v7376_v7 = vadd.f32 %v3378_v5, %v3186_v58  ;;  %v3188_v50 = vadd.f32 %v3187_v54, %v2995_v0  ;;  %v3005_v0 = vadd.f32 %v7088_v32, %v7299_v41 }
 0x298   :  { %v3189_v55 = vpop.f32.mrf.mxu1  ;;  %v3382_v4 = vpop.f32.mrf.mxu0 }
 0x299   :  { %v7378_v40 = vadd.f32 %v3380_v29, %v3188_v50  ;;  %v3190_v35 = vadd.f32 %v3189_v55, %v2997_v25  ;;  %v3007_v25 = vadd.f32 %v7092_v10, %v7310_v47  ;;  %v8223_v50 = vld [vmem:[#allocation41_spill] sm:$0xff]  ;;  %v8224_v10 = vld [vmem:[#allocation42_spill] sm:$0xff] }
 0x29a   :  { %v3193_v36 = vpop.f32.mrf.mxu1  ;;  %v3386_v56 = vpop.f32.mrf.mxu0  ;;  %3658 = vmatmul.mubr.bf16.gmra.mxu1 %v6417_v43  ;;  %4439 = vmatmul.mubr.bf16.gmra.mxu0 %v7240_v1 }
 0x29b   :  { %v7383_v57 = vadd.f32 %v3382_v4, %v3190_v35  ;;  %v3194_v2 = vadd.f32 %v3193_v36, %v3001_v12  ;;  %4448 = vmatprep.mubr.bf16.mxu0 %v7266_v53  ;;  %3667 = vmatprep.mubr.bf16.mxu1 %v8181_v27  ;;  %v3011_v12 = vadd.f32 %v8223_v50, %v7299_v41 }
 0x29c   :  { %v3195_v51 = vpop.f32.mrf.mxu1  ;;  %v3388_v5 = vpop.f32.mrf.mxu0 }
 0x29d   :  { %v7389_v58 = vadd.f32 %v3386_v56, %v3194_v2  ;;  %v3196_v54 = vadd.f32 %v3195_v51, %v3003_v19  ;;  %v3013_v19 = vadd.f32 %v8224_v10, %v7310_v47  ;;  %v8228_v10 = vld [vmem:[#allocation45_spill] sm:$0xff] }
 0x29e   :  { %v3197_v29 = vpop.f32.mrf.mxu1  ;;  %v3390_v1 = vpop.f32.mrf.mxu0 }
 0x29f   :  { %v7395_v55 = vadd.f32 %v3388_v5, %v3196_v54  ;;  %v3198_v53 = vadd.f32 %v3197_v29, %v3005_v0  ;;  %v3015_v54 = vadd.f32 %v7104_v45, %v7299_v41  ;;  %v8226_v45 = vld [vmem:[#allocation44_spill] sm:$0xff] }
 0x2a0   :  { %v3199_v4 = vpop.f32.mrf.mxu1  ;;  %v3392_v35 = vpop.f32.mrf.mxu0 }
 0x2a1   :  { %v7397_v36 = vadd.f32 %v3390_v1, %v3198_v53  ;;  %v3200_v43 = vadd.f32 %v3199_v4, %v3007_v25  ;;  %v3021_v25 = vadd.f32 %v7111_v17, %v7299_v41 }
 0x2a2   :  { %v3203_v32 = vpop.f32.mrf.mxu1  ;;  %v7399_v56 = vpop.f32.mrf.mxu0  ;;  %3668 = vmatmul.mubr.bf16.gmra.mxu1 %v6418_v59  ;;  %4449 = vmatmul.mubr.bf16.gmra.mxu0 %v7259_v34 }
 0x2a3   :  { %v7404_v2 = vadd.f32 %v3392_v35, %v3200_v43  ;;  %v7406_v51 = vadd.f32 %v3203_v32, %v3011_v12  ;;  %4458 = vmatprep.mubr.bf16.mxu0 %v7285_v22  ;;  %3677 = vmatprep.mubr.bf16.mxu1 %v8181_v27  ;;  %v6419_v35 = vld [vmem:[#allocation2 + $0x2f0] ss:$28 sps:$4 sm:$0xff]   ;;  %v3023_v43 = vadd.f32 %v8226_v45, %v7310_v47 }
 0x2a4   :  { %v3205_v5 = vpop.f32.mrf.mxu1  ;;  %v7410_v0 = vpop.f32.mrf.mxu0 }
 0x2a5   :  { %v7414_v29 = vadd.f32 %v3205_v5, %v3013_v19  ;;  %v3025_v19 = vadd.f32 %v8228_v10, %v7299_v41 }
 0x2a6   :  { %v3207_v34 = vpop.f32.mrf.mxu1  ;;  %v7416_v1 = vpop.f32.mrf.mxu0 }
 0x2a7   :  { %v7420_v50 = vadd.f32 %v3207_v34, %v3015_v54 }
 0x2a8   :  { %v7422_v12 = vpop.f32.mrf.mxu1  ;;  %v7424_v22 = vpop.f32.mrf.mxu0 }
 0x2aa   :  { %v3213_v53 = vpop.f32.mrf.mxu1  ;;  %v7426_v4 = vpop.f32.mrf.mxu0  ;;  %3678 = vmatmul.mubr.bf16.gmra.mxu1 %v6419_v35  ;;  %4459 = vmatmul.mubr.bf16.gmra.mxu0 %v7278_v31  ;;  %v8229_v31 = vld [vmem:[#allocation47_spill] sm:$0xff] }
 0x2ab   :  { %8225 = vst [vmem:[#allocation30_spill] sm:$0xff] %v7426_v4  ;;  %v7431_v32 = vadd.f32 %v3213_v53, %v3021_v25  ;;  %4468 = vmatprep.mubr.bf16.mxu0 %v7308_v48  ;;  %3687 = vmatprep.mubr.bf16.mxu1 %v8181_v27  ;;  %v3031_v35 = vadd.f32 %v8229_v31, %v7299_v41 }
 0x2ac   :  { %v3215_v17 = vpop.f32.mrf.mxu1  ;;  %v7435_v59 = vpop.f32.mrf.mxu0  ;;  %v3035_v31 = vadd.f32 %v7136_v37, %v7299_v41  ;;  %v8239_v37 = vld [vmem:[#allocation49_spill] sm:$0xff] }
 0x2ad   :  { %8227 = vst [vmem:[#allocation31_spill] sm:$0xff] %v7435_v59  ;;  %v7439_v5 = vadd.f32 %v3215_v17, %v3023_v43  ;;  %v6420_v59 = vld [vmem:[#allocation2 + $0x328] ss:$28 sps:$4 sm:$0xff]  }
 0x2ae   :  { %v3217_v54 = vpop.f32.mrf.mxu1  ;;  %v7441_v34 = vpop.f32.mrf.mxu0  ;;  %v8232_v43 = vld [vmem:[#allocation48_spill] sm:$0xff] }
 0x2af   :  { %v7445_v25 = vadd.f32 %v3217_v54, %v3025_v19  ;;  %v3033_v17 = vadd.f32 %v8232_v43, %v7310_v47 }
 0x2b0   :  { %v7447_v53 = vpop.f32.mrf.mxu1  ;;  %v7449_v48 = vpop.f32.mrf.mxu0 }
 0x2b1   :  { %8230 = vst [vmem:[#allocation32_spill] sm:$0xff] %v7449_v48 }
 0x2b2   :  { %v3223_v45 = vpop.f32.mrf.mxu1  ;;  %v7451_v4 = vpop.f32.mrf.mxu0  ;;  %3688 = vmatmul.mubr.bf16.gmra.mxu1 %v6420_v59  ;;  %4469 = vmatmul.mubr.bf16.gmra.mxu0 %v7301_v30  ;;  %v8236_v30 = vld [vmem:[#allocation37_spill] sm:$0xff] }
 0x2b3   :  { %8231 = vst [vmem:[#allocation33_spill] sm:$0xff] %v7451_v4  ;;  %v7456_v10 = vadd.f32 %v3223_v45, %v3031_v35  ;;  %4478 = vmatprep.mubr.bf16.mxu0 %v7332_v61  ;;  %3697 = vmatprep.mubr.bf16.mxu1 %v8181_v27  ;;  %v3041_v43 = vadd.f32 %v8236_v30, %v7299_v41 }
 0x2b4   :  { %v3225_v19 = vpop.f32.mrf.mxu1  ;;  %v7460_v54 = vpop.f32.mrf.mxu0  ;;  %v3045_v30 = vadd.f32 %v7154_v63, %v7299_v41 }
 0x2b5   :  { %8233 = vst [vmem:[#allocation34_spill] sm:$0xff] %v7456_v10  ;;  %8234 = vst [vmem:[#allocation35_spill] sm:$0xff] %v7460_v54  ;;  %v7464_v4 = vadd.f32 %v3225_v19, %v3033_v17  ;;  %v6421_v10 = vld [vmem:[#allocation2 + $0x360] ss:$28 sps:$4 sm:$0xff]   ;;  %v3043_v17 = vadd.f32 %v8239_v37, %v7310_v47 }
 0x2b6   :  { %v3227_v59 = vpop.f32.mrf.mxu1  ;;  %v7466_v48 = vpop.f32.mrf.mxu0 }
 0x2b7   :  { %8235 = vst [vmem:[#allocation38_spill] sm:$0xff] %v7466_v48  ;;  %v7470_v35 = vadd.f32 %v3227_v59, %v3035_v31 }
 0x2b8   :  { %v7472_v45 = vpop.f32.mrf.mxu1  ;;  %v7474_v61 = vpop.f32.mrf.mxu0 }
 0x2b9   :  { %8237 = vst [vmem:[#allocation39_spill] sm:$0xff] %v7470_v35  ;;  %8238 = vst [vmem:[#allocation40_spill] sm:$0xff] %v7474_v61  ;;  %v3051_v61 = vadd.f32 %v7161_v20, %v7299_v41 }
 0x2ba   :  { %v3233_v27 = vpop.f32.mrf.mxu1  ;;  %3698 = vmatmul.mubr.bf16.gmra.mxu1 %v6421_v10  ;;  %4479 = vmatmul.mubr.bf16.gmra.mxu0 %v7324_v8  ;;  %v7485_v59 = vpop.f32.mrf.mxu0 }
 0x2bb   :  { %v7479_v19 = vadd.f32 %v3233_v27, %v3041_v43  ;;  %v3053_v27 = vadd.f32 %v7168_v60, %v7310_v47 }
 0x2bc   :  { %v3235_v48 = vpop.f32.mrf.mxu1  ;;  %v7493_v54 = vpop.f32.mrf.mxu0 }
 0x2bd   :  { %v7483_v31 = vadd.f32 %v3235_v48, %v3043_v17  ;;  %8242 = vst [vmem:[#allocation44_spill] sm:$0xff] %v7493_v54  ;;  %v3055_v48 = vadd.f32 %v7173_v6, %v7299_v41 }
 0x2be   :  { %v3237_v35 = vpop.f32.mrf.mxu1 }
 0x2bf   :  { %8240 = vst [vmem:[#allocation41_spill] sm:$0xff] %v7483_v31  ;;  %v7489_v10 = vadd.f32 %v3237_v35, %v3045_v30  ;;  %v7503_v31 = vpop.f32.mrf.mxu0  ;;  %v3061_v35 = vadd.f32 %v7180_v9, %v7299_v41 }
 0x2c0   :  { %v7491_v8 = vpop.f32.mrf.mxu1 }
 0x2c1   :  { %8241 = vst [vmem:[#allocation42_spill] sm:$0xff] %v7489_v10  ;;  %v7511_v54 = vpop.f32.mrf.mxu0 }
 0x2c2   :  { %v3243_v43 = vpop.f32.mrf.mxu1 }
 0x2c3   :  { %v7497_v37 = vadd.f32 %v3243_v43, %v3051_v61  ;;  %v3063_v61 = vadd.f32 %v7187_v15, %v7310_v47 }
 0x2c4   :  { %v3245_v63 = vpop.f32.mrf.mxu1 }
 0x2c5   :  { %v7501_v17 = vadd.f32 %v3245_v63, %v3053_v27  ;;  %v3065_v27 = vadd.f32 %v7192_v13, %v7299_v41 }
 0x2c6   :  { %v3247_v20 = vpop.f32.mrf.mxu1 }
 0x2c7   :  { %8243 = vst [vmem:[#allocation45_spill] sm:$0xff] %v7501_v17  ;;  %v7507_v30 = vadd.f32 %v3247_v20, %v3055_v48  ;;  %v7521_v17 = vpop.f32.mrf.mxu0  ;;  %v3071_v48 = vadd.f32 %v7199_v3, %v7299_v41 }
 0x2c8   :  { %v7509_v10 = vpop.f32.mrf.mxu1 }
 0x2c9   :  { %8244 = vst [vmem:[#allocation47_spill] sm:$0xff] %v7507_v30  ;;  %8245 = vst [vmem:[#allocation48_spill] sm:$0xff] %v7509_v10  ;;  %v7529_v10 = vpop.f32.mrf.mxu0 }
 0x2ca   :  { %v3253_v60 = vpop.f32.mrf.mxu1 }
 0x2cb   :  { %v7515_v43 = vadd.f32 %v3253_v60, %v3061_v35  ;;  %v3073_v35 = vadd.f32 %v7206_v38, %v7310_v47 }
 0x2cc   :  { %v3255_v6 = vpop.f32.mrf.mxu1 }
 0x2cd   :  { %8246 = vst [vmem:[#allocation37_spill] sm:$0xff] %v7515_v43  ;;  %v7519_v63 = vadd.f32 %v3255_v6, %v3063_v61  ;;  %v3075_v61 = vadd.f32 %v7211_v39, %v7299_v41 }
 0x2ce   :  { %v3257_v9 = vpop.f32.mrf.mxu1 }
 0x2cf   :  { %8247 = vst [vmem:[#allocation49_spill] sm:$0xff] %v7519_v63  ;;  %v7525_v20 = vadd.f32 %v3257_v9, %v3065_v27  ;;  %v7539_v63 = vpop.f32.mrf.mxu0  ;;  %v3081_v27 = vadd.f32 %v7218_v26, %v7299_v41 }
 0x2d0   :  { %v7527_v30 = vpop.f32.mrf.mxu1 }
 0x2d1   :  { %8248 = vst [vmem:[#allocation54_spill] sm:$0xff] %v7525_v20  ;;  %8249 = vst [vmem:[#allocation55_spill] sm:$0xff] %v7527_v30  ;;  %v7547_v30 = vpop.f32.mrf.mxu0 }
 0x2d2   :  { %v3263_v15 = vpop.f32.mrf.mxu1 }
 0x2d3   :  { %v7533_v60 = vadd.f32 %v3263_v15, %v3071_v48  ;;  %v3083_v48 = vadd.f32 %v7225_v14, %v7310_v47 }
 0x2d4   :  { %v3265_v13 = vpop.f32.mrf.mxu1 }
 0x2d5   :  { %8250 = vst [vmem:[#allocation56_spill] sm:$0xff] %v7533_v60  ;;  %v7537_v6 = vadd.f32 %v3265_v13, %v3073_v35  ;;  %v3085_v35 = vadd.f32 %v7230_v52, %v7299_v41  ;;  %v6293_v52 = vld [vmem:[#allocation10 + $0x78] sm:$0xff]  }
 0x2d6   :  { %v3267_v3 = vpop.f32.mrf.mxu1  ;;  %5542 = vmatprep.subr.bf16.mxu0 %v6293_v52 }
 0x2d7   :  { %8251 = vst [vmem:[#allocation57_spill] sm:$0xff] %v7537_v6  ;;  %v7543_v9 = vadd.f32 %v3267_v3, %v3075_v61  ;;  %v7557_v6 = vpop.f32.mrf.mxu0  ;;  %v8257_v61 = vld [vmem:[#allocation18_spill] sm:$0xff] }
 0x2d8   :  { %v7545_v20 = vpop.f32.mrf.mxu1  ;;  %8256 = vst [vmem:[#allocation62_spill] sm:$0xff] %v7557_v6  ;;  %v3091_v3 = vadd.f32 %v8257_v61, %v7299_v41  ;;  %v8265_v61 = vld [vmem:[#allocation22_spill] sm:$0xff] }
 0x2d9   :  { %8252 = vst [vmem:[#allocation58_spill] sm:$0xff] %v7543_v9  ;;  %8253 = vst [vmem:[#allocation59_spill] sm:$0xff] %v7545_v20  ;;  %v7565_v60 = vpop.f32.mrf.mxu0 }
 0x2da   :  { %v3273_v38 = vpop.f32.mrf.mxu1 }
 0x2db   :  { %v7551_v15 = vadd.f32 %v3273_v38, %v3081_v27  ;;  %v8260_v27 = vld [vmem:[#allocation19_spill] sm:$0xff] }
 0x2dc   :  { %v3275_v39 = vpop.f32.mrf.mxu1  ;;  %v3093_v38 = vadd.f32 %v8260_v27, %v7310_v47 }
 0x2dd   :  { %8254 = vst [vmem:[#allocation60_spill] sm:$0xff] %v7551_v15  ;;  %v7555_v13 = vadd.f32 %v3275_v39, %v3083_v48  ;;  %v6294_v48 = vld [vmem:[#allocation10 + $0x38] sm:$0xff]  }
 0x2de   :  { %v3277_v26 = vpop.f32.mrf.mxu1  ;;  %5543 = vmatpush3.bf16.msra.mxu0 %v6294_v48 }
 0x2df   :  { %8255 = vst [vmem:[#allocation61_spill] sm:$0xff] %v7555_v13  ;;  %v7561_v9 = vadd.f32 %v3277_v26, %v3085_v35  ;;  %v8262_v13 = vld [vmem:[#allocation20_spill] sm:$0xff]  ;;  %v7575_v35 = vpop.f32.mrf.mxu0 }
 0x2e0   :  { %v7563_v20 = vpop.f32.mrf.mxu1  ;;  %v3095_v6 = vadd.f32 %v8262_v13, %v7299_v41  ;;  %8264 = vst [vmem:[#allocation64_spill] sm:$0xff] %v7575_v35 }
 0x2e1   :  { %8258 = vst [vmem:[#allocation18_spill] sm:$0xff] %v7561_v9  ;;  %8259 = vst [vmem:[#allocation63_spill] sm:$0xff] %v7563_v20  ;;  %v3101_v9 = vadd.f32 %v8265_v61, %v7299_v41 }
 0x2e2   :  { %v3283_v14 = vpop.f32.mrf.mxu1 }
 0x2e3   :  { %v7569_v15 = vadd.f32 %v3283_v14, %v3091_v3  ;;  %v7583_v14 = vpop.f32.mrf.mxu0 }
 0x2e4   :  { %v3285_v39 = vpop.f32.mrf.mxu1  ;;  %8268 = vst [vmem:[#allocation66_spill] sm:$0xff] %v7583_v14 }
 0x2e5   :  { %8261 = vst [vmem:[#allocation19_spill] sm:$0xff] %v7569_v15  ;;  %v7573_v43 = vadd.f32 %v3285_v39, %v3093_v38  ;;  %v8269_v15 = vld [vmem:[#allocation23_spill] sm:$0xff]  ;;  %v8271_v39 = vld [vmem:[#allocation24_spill] sm:$0xff]  ;;  %v7593_v35 = vpop.f32.mrf.mxu0 }
 0x2e6   :  { %v3287_v26 = vpop.f32.mrf.mxu1  ;;  %v3103_v13 = vadd.f32 %v8269_v15, %v7310_v47  ;;  %8273 = vst [vmem:[#allocation67_spill] sm:$0xff] %v7593_v35  ;;  %v8277_v15 = vld [vmem:[#allocation27_spill] sm:$0xff] }
 0x2e7   :  { %8263 = vst [vmem:[#allocation20_spill] sm:$0xff] %v7573_v43  ;;  %v7579_v20 = vadd.f32 %v3287_v26, %v3095_v6  ;;  %v3105_v43 = vadd.f32 %v8271_v39, %v7299_v41  ;;  %v8274_v26 = vld [vmem:[#allocation26_spill] sm:$0xff]  ;;  %v7601_v14 = vpop.f32.mrf.mxu0 }
 0x2e8   :  { %v7581_v3 = vpop.f32.mrf.mxu1  ;;  %v3111_v61 = vadd.f32 %v8274_v26, %v7299_v41  ;;  %v3121_v26 = vadd.f32 %v7296_v16, %v7299_v41 }
 0x2e9   :  { %8266 = vst [vmem:[#allocation22_spill] sm:$0xff] %v7579_v20  ;;  %8267 = vst [vmem:[#allocation65_spill] sm:$0xff] %v7581_v3 }
 0x2ea   :  { %v3293_v27 = vpop.f32.mrf.mxu1 }
 0x2eb   :  { %v7587_v38 = vadd.f32 %v3293_v27, %v3101_v9  ;;  %v3113_v27 = vadd.f32 %v8277_v15, %v7310_v47 }
 0x2ec   :  { %v3295_v52 = vpop.f32.mrf.mxu1 }
 0x2ed   :  { %8270 = vst [vmem:[#allocation23_spill] sm:$0xff] %v7587_v38  ;;  %v7591_v48 = vadd.f32 %v3295_v52, %v3103_v13  ;;  %v6295_v13 = vld [vmem:[#allocation10 + $0x70] sm:$0xff]  }
 0x2ee   :  { %v3297_v6 = vpop.f32.mrf.mxu1  ;;  %v6296_v52 = vld [vmem:[#allocation10 + $0x30] sm:$0xff]   ;;  %5544 = vmatprep.subr.bf16.mxu0 %v6295_v13 }
 0x2ef   :  { %8272 = vst [vmem:[#allocation24_spill] sm:$0xff] %v7591_v48  ;;  %v7597_v20 = vadd.f32 %v3297_v6, %v3105_v43  ;;  %v3115_v48 = vadd.f32 %v7287_v28, %v7299_v41  ;;  %v7611_v43 = vpop.f32.mrf.mxu0  ;;  %5545 = vmatpush3.bf16.msra.mxu0 %v6296_v52  ;;  %v3123_v28 = vadd.f32 %v7305_v42, %v7310_v47  ;;  %v6298_v42 = vld [vmem:[#allocation10 + $0x28] sm:$0xff]  }
 0x2f0   :  { %v7599_v3 = vpop.f32.mrf.mxu1 }
 0x2f1   :  { %8275 = vst [vmem:[#allocation26_spill] sm:$0xff] %v7597_v20  ;;  %8276 = vst [vmem:[#allocation68_spill] sm:$0xff] %v7599_v3 }
 0x2f2   :  { %v3303_v9 = vpop.f32.mrf.mxu1 }
 0x2f3   :  { %v7605_v38 = vadd.f32 %v3303_v9, %v3111_v61  ;;  %v7619_v9 = vpop.f32.mrf.mxu0 }
 0x2f4   :  { %v3305_v39 = vpop.f32.mrf.mxu1 }
 0x2f5   :  { %8278 = vst [vmem:[#allocation27_spill] sm:$0xff] %v7605_v38  ;;  %v7609_v35 = vadd.f32 %v3305_v39, %v3113_v27  ;;  %v3125_v39 = vadd.f32 %v7312_v11, %v7299_v41  ;;  %v6297_v38 = vld [vmem:[#allocation10 + $0x68] sm:$0xff]  }
 0x2f6   :  { %v3307_v6 = vpop.f32.mrf.mxu1  ;;  %5546 = vmatprep.subr.bf16.mxu0 %v6297_v38 }
 0x2f7   :  { %8279 = vst [vmem:[#allocation69_spill] sm:$0xff] %v7609_v35  ;;  %v7615_v20 = vadd.f32 %v3307_v6, %v3115_v48  ;;  %v7629_v35 = vpop.f32.mrf.mxu0  ;;  %5547 = vmatpush3.bf16.msra.mxu0 %v6298_v42  ;;  %v6302_v42 = vld [vmem:[#allocation10 + $0x18] sm:$0xff]  }
 0x2f8   :  { %v7617_v61 = vpop.f32.mrf.mxu1  ;;  %8284 = vst [vmem:[#allocation74_spill] sm:$0xff] %v7629_v35 }
 0x2f9   :  { %8280 = vst [vmem:[#allocation70_spill] sm:$0xff] %v7615_v20  ;;  %8281 = vst [vmem:[#allocation71_spill] sm:$0xff] %v7617_v61  ;;  %v7635_v20 = vpop.f32.mrf.mxu0 }
 0x2fa   :  { %v3313_v15 = vpop.f32.mrf.mxu1  ;;  %8287 = vst [vmem:[#allocation77_spill] sm:$0xff] %v7635_v20 }
 0x2fb   :  { %v7623_v27 = vadd.f32 %v3313_v15, %v3121_v26 }
 0x2fc   :  { %v3315_v13 = vpop.f32.mrf.mxu1 }
 0x2fd   :  { %8282 = vst [vmem:[#allocation72_spill] sm:$0xff] %v7623_v27  ;;  %v7627_v52 = vadd.f32 %v3315_v13, %v3123_v28  ;;  %v7638_v27 = vpop.f32.mrf.mxu0 }
 0x2fe   :  { %v3317_v16 = vpop.f32.mrf.mxu1  ;;  %8288 = vst [vmem:[#allocation78_spill] sm:$0xff] %v7638_v27 }
 0x2ff   :  { %8283 = vst [vmem:[#allocation73_spill] sm:$0xff] %v7627_v52  ;;  %v7631_v48 = vadd.f32 %v3317_v16, %v3125_v39  ;;  %v6299_v39 = vld [vmem:[#allocation10 + $0x60] sm:$0xff]   ;;  %v7643_v20 = vpop.f32.mrf.mxu0 }
 0x300   :  { %v7633_v6 = vpop.f32.mrf.mxu1  ;;  %v6300_v16 = vld [vmem:[#allocation10 + $0x20] sm:$0xff]   ;;  %5548 = vmatprep.subr.bf16.mxu0 %v6299_v39 }
 0x301   :  { %8285 = vst [vmem:[#allocation75_spill] sm:$0xff] %v7631_v48  ;;  %8286 = vst [vmem:[#allocation76_spill] sm:$0xff] %v7633_v6  ;;  %v6301_v48 = vld [vmem:[#allocation10 + $0x58] sm:$0xff]   ;;  %5549 = vmatpush3.bf16.msra.mxu0 %v6300_v16  ;;  %v7646_v35 = vpop.f32.mrf.mxu0 }
 0x302   :  { %v3549_v61 = vpop.f32.mrf.mxu1  ;;  %5550 = vmatprep.subr.bf16.mxu0 %v6301_v48 }
 0x303   :  { %v3550_v15 = vadd.f32 %v3549_v61, %v7330_v24 }
 0x304   :  { %v3551_v26 = vpop.f32.mrf.mxu1 }
 0x305   :  { %v3552_v11 = vadd.f32 %v3551_v26, %v7338_v46  ;;  %v3710_v52 = vmax.f32 %v3550_v15, 0.0  ;;  %5551 = vmatpush3.bf16.msra.mxu0 %v6302_v42 }
 0x306   :  { %v3553_v41 = vpop.f32.mrf.mxu1 }
 0x307   :  { %v3554_v28 = vadd.f32 %v3553_v41, %v7340_v33  ;;  %v3711_v38 = vmax.f32 %v3552_v11, 0.0  ;;  %v6303_v33 = vld [vmem:[#allocation10 + $0x50] sm:$0xff]  }
 0x308   :  { %v3555_v13 = vpop.f32.mrf.mxu1  ;;  %v6304_v11 = vld [vmem:[#allocation10 + $0x10] sm:$0xff]   ;;  %5552 = vmatprep.subr.bf16.mxu0 %v6303_v33 }
 0x309   :  { %v3714_v6 = vmax.f32 %v3554_v28, 0.0  ;;  %v3556_v3 = vadd.f32 %v3555_v13, %v7345_v44  ;;  %5553 = vmatpush3.bf16.msra.mxu0 %v6304_v11 }
 0x30a   :  { %v3559_v24 = vpop.f32.mrf.mxu1 }
 0x30b   :  { %v3838_v61 = vpack.c.bf16 %v3714_v6, %v3710_v52  ;;  %v3715_v27 = vmax.f32 %v3556_v3, 0.0  ;;  %v3560_v26 = vadd.f32 %v3559_v24, %v7351_v23  ;;  %v6305_v3 = vld [vmem:[#allocation10 + $0x48] sm:$0xff]   ;;  %v7651_v23 = vpop.f32.mrf.mxu0 }
 0x30c   :  { %v3561_v46 = vpop.f32.mrf.mxu1  ;;  %5554 = vmatprep.subr.bf16.mxu0 %v6305_v3 }
 0x30d   :  { %v3839_v41 = vpack.c.bf16 %v3715_v27, %v3711_v38  ;;  %v3562_v44 = vadd.f32 %v3561_v46, %v7357_v18  ;;  %v3718_v6 = vmax.f32 %v3560_v26, 0.0  ;;  %v6306_v18 = vld [vmem:[#allocation10 + $0x8] sm:$0xff]   ;;  %v6307_v38 = vld [vmem:[#allocation10 + $0x40] sm:$0xff]   ;;  %v7654_v46 = vpop.f32.mrf.mxu0 }
 0x30e   :  { %v3563_v15 = vpop.f32.mrf.mxu1  ;;  %5555 = vmatpush3.bf16.msra.mxu0 %v6306_v18  ;;  %v8289_v18 = vld [vmem:[#allocation43_spill] sm:$0xff] }
 0x30f   :  { %v3564_v28 = vadd.f32 %v3563_v15, %v7359_v62  ;;  %4521 = vmatprep.mubr.bf16.mxu1 %v3839_v41  ;;  %v3719_v39 = vmax.f32 %v3562_v44, 0.0  ;;  %v6308_v41 = vld [vmem:[#allocation10] sm:$0xff]   ;;  %5556 = vmatprep.subr.bf16.mxu0 %v6307_v38 }
 0x310   :  { %v3565_v52 = vpop.f32.mrf.mxu1  ;;  %4522 = vmatmul.mubr.bf16.vlgmr.msra.gmra.mxu1 %v3838_v61 }
 0x311   :  { %v3722_v48 = vmax.f32 %v3564_v28, 0.0  ;;  %v3566_v13 = vadd.f32 %v3565_v52, %v7364_v49  ;;  %v7659_v52 = vpop.f32.mrf.mxu0 }
 0x312   :  { %v3569_v27 = vpop.f32.mrf.mxu1  ;;  %5557 = vmatpush3.bf16.msra.mxu0 %v6308_v41 }
 0x313   :  { %v3842_v16 = vpack.c.bf16 %v3722_v48, %v3718_v6  ;;  %v3723_v24 = vmax.f32 %v3566_v13, 0.0  ;;  %v3570_v42 = vadd.f32 %v3569_v27, %v7370_v21  ;;  %v7662_v27 = vpop.f32.mrf.mxu0 }
 0x314   :  { %v3571_v62 = vpop.f32.mrf.mxu1 }
 0x315   :  { %v3843_v61 = vpack.c.bf16 %v3723_v24, %v3719_v39  ;;  %v3572_v26 = vadd.f32 %v3571_v62, %v7376_v7  ;;  %v3726_v44 = vmax.f32 %v3570_v42, 0.0  ;;  %v3017_v62 = vadd.f32 %v8289_v18, %v7310_v47 }
 0x316   :  { %v3573_v33 = vpop.f32.mrf.mxu1 }
 0x317   :  { %v3574_v49 = vadd.f32 %v3573_v33, %v7378_v40  ;;  %4531 = vmatprep.mubr.bf16.mxu1 %v3843_v61  ;;  %v3727_v3 = vmax.f32 %v3572_v26, 0.0  ;;  %v7671_v33 = vpop.f32.mrf.mxu0 }
 0x318   :  { %v3575_v15 = vpop.f32.mrf.mxu1  ;;  %4532 = vmatmul.mubr.bf16.gmra.mxu1 %v3842_v16 }
 0x319   :  { %v3730_v28 = vmax.f32 %v3574_v49, 0.0  ;;  %v3576_v11 = vadd.f32 %v3575_v15, %v7383_v57 }
 0x31a   :  { %v3579_v21 = vpop.f32.mrf.mxu1 }
 0x31b   :  { %v3846_v6 = vpack.c.bf16 %v3730_v28, %v3726_v44  ;;  %v3731_v48 = vmax.f32 %v3576_v11, 0.0  ;;  %v3580_v40 = vadd.f32 %v3579_v21, %v7389_v58  ;;  %v3397_v58 = vadd.f32 %v7399_v56, %v7406_v51  ;;  %v7678_v21 = vpop.f32.mrf.mxu0 }
 0x31c   :  { %v3581_v7 = vpop.f32.mrf.mxu1  ;;  %v3399_v44 = vadd.f32 %v7410_v0, %v7414_v29  ;;  %v3401_v28 = vadd.f32 %v7416_v1, %v7420_v50  ;;  %v8291_v1 = vld [vmem:[#allocation30_spill] sm:$0xff] }
 0x31d   :  { %v3847_v13 = vpack.c.bf16 %v3731_v48, %v3727_v3  ;;  %v3582_v16 = vadd.f32 %v3581_v7, %v7395_v55  ;;  %v3734_v38 = vmax.f32 %v3580_v40, 0.0  ;;  %v3210_v55 = vadd.f32 %v7422_v12, %v3017_v62  ;;  %v8290_v48 = vld [vmem:[#allocation46_spill] sm:$0xff]  ;;  %v8292_v62 = vld [vmem:[#allocation31_spill] sm:$0xff] }
 0x31e   :  { %v3583_v39 = vpop.f32.mrf.mxu1  ;;  %v3027_v7 = vadd.f32 %v8290_v48, %v7310_v47  ;;  %v3407_v50 = vadd.f32 %v8291_v1, %v7431_v32  ;;  %v8299_v1 = vld [vmem:[#allocation38_spill] sm:$0xff] }
 0x31f   :  { %v3584_v24 = vadd.f32 %v3583_v39, %v7397_v36  ;;  %4541 = vmatprep.mubr.bf16.mxu1 %v3847_v13  ;;  %v3735_v49 = vmax.f32 %v3582_v16, 0.0  ;;  %v3403_v51 = vadd.f32 %v7424_v22, %v3210_v55  ;;  %v7685_v13 = vpop.f32.mrf.mxu0  ;;  %v8293_v55 = vld [vmem:[#allocation32_spill] sm:$0xff] }
 0x320   :  { %v3585_v57 = vpop.f32.mrf.mxu1  ;;  %4542 = vmatmul.mubr.bf16.gmra.mxu1 %v3846_v6  ;;  %v3220_v16 = vadd.f32 %v7447_v53, %v3027_v7 }
 0x321   :  { %v3738_v42 = vmax.f32 %v3584_v24, 0.0  ;;  %v3586_v61 = vadd.f32 %v3585_v57, %v7404_v2 }
 0x322   :  { %v3589_v26 = vpop.f32.mrf.mxu1 }
 0x323   :  { %v3850_v36 = vpack.c.bf16 %v3738_v42, %v3734_v38  ;;  %v3739_v41 = vmax.f32 %v3586_v61, 0.0  ;;  %v3590_v11 = vadd.f32 %v3589_v26, %v3397_v58  ;;  %v3409_v38 = vadd.f32 %v8292_v62, %v7439_v5  ;;  %v7692_v26 = vpop.f32.mrf.mxu0 }
 0x324   :  { %v3591_v15 = vpop.f32.mrf.mxu1  ;;  %v3411_v42 = vadd.f32 %v7441_v34, %v7445_v25  ;;  %v8296_v34 = vld [vmem:[#allocation33_spill] sm:$0xff] }
 0x325   :  { %v3851_v2 = vpack.c.bf16 %v3739_v41, %v3735_v49  ;;  %v3592_v3 = vadd.f32 %v3591_v15, %v3399_v44  ;;  %v3742_v40 = vmax.f32 %v3590_v11, 0.0  ;;  %v3413_v49 = vadd.f32 %v8293_v55, %v3220_v16  ;;  %v8294_v15 = vld [vmem:[#allocation36_spill] sm:$0xff] }
 0x326   :  { %v3593_v56 = vpop.f32.mrf.mxu1  ;;  %v3037_v44 = vadd.f32 %v8294_v15, %v7310_v47  ;;  %v3427_v55 = vadd.f32 %v7485_v59, %v7479_v19 }
 0x327   :  { %v3594_v6 = vadd.f32 %v3593_v56, %v3401_v28  ;;  %4551 = vmatprep.mubr.bf16.mxu1 %v3851_v2  ;;  %v3743_v22 = vmax.f32 %v3592_v3, 0.0  ;;  %v8295_v2 = vld [vmem:[#allocation34_spill] sm:$0xff]  ;;  %v7699_v56 = vpop.f32.mrf.mxu0 }
 0x328   :  { %v3595_v12 = vpop.f32.mrf.mxu1  ;;  %4552 = vmatmul.mubr.bf16.gmra.mxu1 %v3850_v36  ;;  %v3417_v25 = vadd.f32 %v8296_v34, %v8295_v2  ;;  %v3230_v3 = vadd.f32 %v7472_v45, %v3037_v44  ;;  %v8304_v34 = vld [vmem:[#allocation42_spill] sm:$0xff] }
 0x329   :  { %v3746_v0 = vmax.f32 %v3594_v6, 0.0  ;;  %v3596_v29 = vadd.f32 %v3595_v12, %v3403_v51 }
 0x32a   :  { %v3599_v39 = vpop.f32.mrf.mxu1 }
 0x32b   :  { %v3854_v24 = vpack.c.bf16 %v3746_v0, %v3742_v40  ;;  %v3747_v57 = vmax.f32 %v3596_v29, 0.0  ;;  %v3600_v58 = vadd.f32 %v3599_v39, %v3407_v50  ;;  %v8297_v40 = vld [vmem:[#allocation35_spill] sm:$0xff] }
 0x32c   :  { %v3601_v18 = vpop.f32.mrf.mxu1  ;;  %v3419_v0 = vadd.f32 %v8297_v40, %v7464_v4  ;;  %v8298_v29 = vld [vmem:[#allocation39_spill] sm:$0xff] }
 0x32d   :  { %v3855_v61 = vpack.c.bf16 %v3747_v57, %v3743_v22  ;;  %v3602_v36 = vadd.f32 %v3601_v18, %v3409_v38  ;;  %v3750_v28 = vmax.f32 %v3600_v58, 0.0  ;;  %v3421_v50 = vadd.f32 %v8299_v1, %v8298_v29  ;;  %v7706_v22 = vpop.f32.mrf.mxu0  ;;  %v8300_v57 = vld [vmem:[#allocation40_spill] sm:$0xff] }
 0x32e   :  { %v3603_v32 = vpop.f32.mrf.mxu1  ;;  %v3423_v18 = vadd.f32 %v8300_v57, %v3230_v3 }
 0x32f   :  { %v3604_v41 = vadd.f32 %v3603_v32, %v3411_v42  ;;  %4561 = vmatprep.mubr.bf16.mxu1 %v3855_v61  ;;  %v3751_v6 = vmax.f32 %v3602_v36, 0.0  ;;  %v8301_v42 = vld [vmem:[#allocation50_spill] sm:$0xff] }
 0x330   :  { %v3605_v53 = vpop.f32.mrf.mxu1  ;;  %4562 = vmatmul.mubr.bf16.gmra.mxu1 %v3854_v24  ;;  %v3047_v61 = vadd.f32 %v8301_v42, %v7310_v47  ;;  %v8308_v42 = vld [vmem:[#allocation47_spill] sm:$0xff] }
 0x331   :  { %v3754_v5 = vmax.f32 %v3604_v41, 0.0  ;;  %v3606_v11 = vadd.f32 %v3605_v53, %v3413_v49  ;;  %v7713_v49 = vpop.f32.mrf.mxu0 }
 0x332   :  { %v3609_v51 = vpop.f32.mrf.mxu1  ;;  %v3240_v41 = vadd.f32 %v7491_v8, %v3047_v61  ;;  %v3441_v61 = vadd.f32 %v7539_v63, %v8308_v42  ;;  %v8311_v63 = vld [vmem:[#allocation62_spill] sm:$0xff]  ;;  %v8318_v42 = vld [vmem:[#allocation56_spill] sm:$0xff] }
 0x333   :  { %v3858_v12 = vpack.c.bf16 %v3754_v5, %v3750_v28  ;;  %v3755_v48 = vmax.f32 %v3606_v11, 0.0  ;;  %v3610_v16 = vadd.f32 %v3609_v51, %v3417_v25  ;;  %v8302_v5 = vld [vmem:[#allocation41_spill] sm:$0xff]  ;;  %v8303_v11 = vld [vmem:[#allocation44_spill] sm:$0xff]  ;;  %v3431_v25 = vadd.f32 %v7503_v31, %v8304_v34 }
 0x334   :  { %v3611_v7 = vpop.f32.mrf.mxu1  ;;  %v3429_v2 = vadd.f32 %v8303_v11, %v8302_v5  ;;  %v3433_v59 = vadd.f32 %v7511_v54, %v3240_v41  ;;  %v3437_v31 = vadd.f32 %v7521_v17, %v7497_v37  ;;  %v8310_v5 = vld [vmem:[#allocation37_spill] sm:$0xff] }
 0x335   :  { %v3859_v39 = vpack.c.bf16 %v3755_v48, %v3751_v6  ;;  %v3612_v62 = vadd.f32 %v3611_v7, %v3419_v0  ;;  %v3758_v58 = vmax.f32 %v3610_v16, 0.0  ;;  %v7720_v6 = vpop.f32.mrf.mxu0  ;;  %v8305_v7 = vld [vmem:[#allocation51_spill] sm:$0xff]  ;;  %v8306_v16 = vld [vmem:[#allocation48_spill] sm:$0xff]  ;;  %v3447_v11 = vadd.f32 %v8311_v63, %v8310_v5 }
 0x336   :  { %v3613_v24 = vpop.f32.mrf.mxu1  ;;  %v3057_v40 = vadd.f32 %v8305_v7, %v7310_v47  ;;  %v8315_v7 = vld [vmem:[#allocation64_spill] sm:$0xff] }
 0x337   :  { %v3614_v38 = vadd.f32 %v3613_v24, %v3421_v50  ;;  %4571 = vmatprep.mubr.bf16.mxu1 %v3859_v39  ;;  %v3759_v53 = vmax.f32 %v3612_v62, 0.0  ;;  %v7727_v50 = vpop.f32.mrf.mxu0 }
 0x338   :  { %v3615_v45 = vpop.f32.mrf.mxu1  ;;  %4572 = vmatmul.mubr.bf16.gmra.mxu1 %v3858_v12  ;;  %v3250_v24 = vadd.f32 %v8306_v16, %v3057_v40 }
 0x339   :  { %v3762_v4 = vmax.f32 %v3614_v38, 0.0  ;;  %v3616_v32 = vadd.f32 %v3615_v45, %v3423_v18  ;;  %v8307_v38 = vld [vmem:[#allocation45_spill] sm:$0xff] }
 0x33a   :  { %v3619_v36 = vpop.f32.mrf.mxu1  ;;  %v3439_v45 = vadd.f32 %v7529_v10, %v8307_v38  ;;  %v3443_v17 = vadd.f32 %v7547_v30, %v3250_v24 }
 0x33b   :  { %v3862_v15 = vpack.c.bf16 %v3762_v4, %v3758_v58  ;;  %v3763_v44 = vmax.f32 %v3616_v32, 0.0  ;;  %v3620_v3 = vadd.f32 %v3619_v36, %v3427_v55  ;;  %v7734_v32 = vpop.f32.mrf.mxu0 }
 0x33c   :  { %v3621_v28 = vpop.f32.mrf.mxu1 }
 0x33d   :  { %v3863_v51 = vpack.c.bf16 %v3763_v44, %v3759_v53  ;;  %v3622_v12 = vadd.f32 %v3621_v28, %v3429_v2  ;;  %v3766_v0 = vmax.f32 %v3620_v3, 0.0  ;;  %v8309_v53 = vld [vmem:[#allocation52_spill] sm:$0xff]  ;;  %v7741_v2 = vpop.f32.mrf.mxu0 }
 0x33e   :  { %v3623_v19 = vpop.f32.mrf.mxu1 }
 0x33f   :  { %v3624_v48 = vadd.f32 %v3623_v19, %v3431_v25  ;;  %4581 = vmatprep.mubr.bf16.mxu1 %v3863_v51  ;;  %v3767_v54 = vmax.f32 %v3622_v12, 0.0  ;;  %v8312_v25 = vld [vmem:[#allocation55_spill] sm:$0xff]  ;;  %v8313_v12 = vld [vmem:[#allocation49_spill] sm:$0xff] }
 0x340   :  { %v3625_v8 = vpop.f32.mrf.mxu1  ;;  %4582 = vmatmul.mubr.bf16.gmra.mxu1 %v3862_v15  ;;  %v3067_v15 = vadd.f32 %v8309_v53, %v7310_v47 }
 0x341   :  { %v3770_v29 = vmax.f32 %v3624_v48, 0.0  ;;  %v3626_v1 = vadd.f32 %v3625_v8, %v3433_v59  ;;  %v3449_v48 = vadd.f32 %v7565_v60, %v8313_v12  ;;  %v8314_v8 = vld [vmem:[#allocation54_spill] sm:$0xff] }
 0x342   :  { %v3629_v39 = vpop.f32.mrf.mxu1  ;;  %v3260_v51 = vadd.f32 %v8312_v25, %v3067_v15  ;;  %v3451_v40 = vadd.f32 %v8315_v7, %v8314_v8  ;;  %v8324_v7 = vld [vmem:[#allocation60_spill] sm:$0xff] }
 0x343   :  { %v3866_v57 = vpack.c.bf16 %v3770_v29, %v3766_v0  ;;  %v3771_v18 = vmax.f32 %v3626_v1, 0.0  ;;  %v3630_v4 = vadd.f32 %v3629_v39, %v3437_v31  ;;  %v7748_v1 = vpop.f32.mrf.mxu0  ;;  %v8316_v39 = vld [vmem:[#allocation66_spill] sm:$0xff] }
 0x344   :  { %v3631_v62 = vpop.f32.mrf.mxu1  ;;  %v3453_v16 = vadd.f32 %v8316_v39, %v3260_v51 }
 0x345   :  { %v3867_v58 = vpack.c.bf16 %v3771_v18, %v3767_v54  ;;  %v3632_v55 = vadd.f32 %v3631_v62, %v3439_v45  ;;  %v3774_v44 = vmax.f32 %v3630_v4, 0.0  ;;  %v8317_v18 = vld [vmem:[#allocation53_spill] sm:$0xff]  ;;  %v7755_v4 = vpop.f32.mrf.mxu0 }
 0x346   :  { %v3633_v37 = vpop.f32.mrf.mxu1  ;;  %v3077_v62 = vadd.f32 %v8317_v18, %v7310_v47  ;;  %v8328_v18 = vld [vmem:[#allocation77_spill] sm:$0xff] }
 0x347   :  { %v3634_v36 = vadd.f32 %v3633_v37, %v3441_v61  ;;  %4591 = vmatprep.mubr.bf16.mxu1 %v3867_v58  ;;  %v3775_v30 = vmax.f32 %v3632_v55, 0.0  ;;  %v8319_v61 = vld [vmem:[#allocation67_spill] sm:$0xff] }
 0x348   :  { %v3635_v41 = vpop.f32.mrf.mxu1  ;;  %4592 = vmatmul.mubr.bf16.gmra.mxu1 %v3866_v57  ;;  %v3457_v58 = vadd.f32 %v8319_v61, %v8318_v42 }
 0x349   :  { %v3778_v10 = vmax.f32 %v3634_v36, 0.0  ;;  %v3636_v28 = vadd.f32 %v3635_v41, %v3443_v17  ;;  %v8320_v17 = vld [vmem:[#allocation59_spill] sm:$0xff] }
 0x34a   :  { %v3639_v34 = vpop.f32.mrf.mxu1  ;;  %v3270_v55 = vadd.f32 %v8320_v17, %v3077_v62 }
 0x34b   :  { %v3870_v3 = vpack.c.bf16 %v3778_v10, %v3774_v44  ;;  %v3779_v19 = vmax.f32 %v3636_v28, 0.0  ;;  %v3640_v29 = vadd.f32 %v3639_v34, %v3447_v11  ;;  %v8321_v44 = vld [vmem:[#allocation57_spill] sm:$0xff]  ;;  %v8322_v28 = vld [vmem:[#allocation58_spill] sm:$0xff]  ;;  %v7762_v34 = vpop.f32.mrf.mxu0 }
 0x34c   :  { %v3641_v59 = vpop.f32.mrf.mxu1  ;;  %v3459_v10 = vadd.f32 %v7601_v14, %v8321_v44  ;;  %v3461_v5 = vadd.f32 %v7611_v43, %v8322_v28  ;;  %v3463_v51 = vadd.f32 %v7619_v9, %v3270_v55  ;;  %v8325_v43 = vld [vmem:[#allocation74_spill] sm:$0xff] }
 0x34d   :  { %v3871_v0 = vpack.c.bf16 %v3779_v19, %v3775_v30  ;;  %v3642_v24 = vadd.f32 %v3641_v59, %v3449_v48  ;;  %v3782_v38 = vmax.f32 %v3640_v29, 0.0  ;;  %v8323_v59 = vld [vmem:[#allocation17_spill] sm:$0xff] }
 0x34e   :  { %v3643_v31 = vpop.f32.mrf.mxu1  ;;  %v3087_v12 = vadd.f32 %v8323_v59, %v7310_v47 }
 0x34f   :  { %v3644_v54 = vadd.f32 %v3643_v31, %v3451_v40  ;;  %4601 = vmatprep.mubr.bf16.mxu1 %v3871_v0  ;;  %v3783_v36 = vmax.f32 %v3642_v24, 0.0  ;;  %v3467_v40 = vadd.f32 %v8325_v43, %v8324_v7  ;;  %v7769_v0 = vpop.f32.mrf.mxu0  ;;  %v8326_v31 = vld [vmem:[#allocation63_spill] sm:$0xff] }
 0x350   :  { %v3645_v57 = vpop.f32.mrf.mxu1  ;;  %4602 = vmatmul.mubr.bf16.gmra.mxu1 %v3870_v3  ;;  %v3280_v39 = vadd.f32 %v8326_v31, %v3087_v12  ;;  %v8334_v12 = vld [vmem:[#allocation20_spill] sm:$0xff] }
 0x351   :  { %v3786_v60 = vmax.f32 %v3644_v54, 0.0  ;;  %v3646_v45 = vadd.f32 %v3645_v57, %v3453_v16  ;;  %v8327_v57 = vld [vmem:[#allocation61_spill] sm:$0xff] }
 0x352   :  { %v3649_v37 = vpop.f32.mrf.mxu1  ;;  %v3469_v62 = vadd.f32 %v8328_v18, %v8327_v57  ;;  %v3473_v17 = vadd.f32 %v7643_v20, %v3280_v39  ;;  %v8337_v18 = vld [vmem:[#allocation23_spill] sm:$0xff] }
 0x353   :  { %v3874_v41 = vpack.c.bf16 %v3786_v60, %v3782_v38  ;;  %v3787_v53 = vmax.f32 %v3646_v45, 0.0  ;;  %v3650_v11 = vadd.f32 %v3649_v37, %v3457_v58  ;;  %v8329_v38 = vld [vmem:[#allocation18_spill] sm:$0xff]  ;;  %v7776_v58 = vpop.f32.mrf.mxu0 }
 0x354   :  { %v3651_v15 = vpop.f32.mrf.mxu1  ;;  %v8330_v60 = vld [vmem:[#allocation78_spill] sm:$0xff] }
 0x355   :  { %v3875_v63 = vpack.c.bf16 %v3787_v53, %v3783_v36  ;;  %v3652_v30 = vadd.f32 %v3651_v15, %v3459_v10  ;;  %v3790_v48 = vmax.f32 %v3650_v11, 0.0  ;;  %v3471_v45 = vadd.f32 %v8330_v60, %v8329_v38  ;;  %v8331_v53 = vld [vmem:[#allocation21_spill] sm:$0xff]  ;;  %v7783_v11 = vpop.f32.mrf.mxu0  ;;  %v8338_v60 = vld [vmem:[#allocation68_spill] sm:$0xff] }
 0x356   :  { %v3653_v25 = vpop.f32.mrf.mxu1  ;;  %v3097_v15 = vadd.f32 %v8331_v53, %v7310_v47 }
 0x357   :  { %v3654_v3 = vadd.f32 %v3653_v25, %v3461_v5  ;;  %4611 = vmatprep.mubr.bf16.mxu1 %v3875_v63  ;;  %v3791_v9 = vmax.f32 %v3652_v30, 0.0  ;;  %v8332_v5 = vld [vmem:[#allocation19_spill] sm:$0xff] }
 0x358   :  { %v3655_v19 = vpop.f32.mrf.mxu1  ;;  %4612 = vmatmul.mubr.bf16.gmra.mxu1 %v3874_v41  ;;  %v3477_v63 = vadd.f32 %v7646_v35, %v8332_v5 }
 0x359   :  { %v3794_v14 = vmax.f32 %v3654_v3, 0.0  ;;  %v3656_v8 = vadd.f32 %v3655_v19, %v3463_v51  ;;  %v8333_v51 = vld [vmem:[#allocation65_spill] sm:$0xff] }
 0x35a   :  { %v3659_v29 = vpop.f32.mrf.mxu1  ;;  %v3290_v30 = vadd.f32 %v8333_v51, %v3097_v15 }
 0x35b   :  { %v3878_v16 = vpack.c.bf16 %v3794_v14, %v3790_v48  ;;  %v3795_v24 = vmax.f32 %v3656_v8, 0.0  ;;  %v3660_v61 = vadd.f32 %v3659_v29, %v3467_v40  ;;  %v3479_v48 = vadd.f32 %v7651_v23, %v8334_v12  ;;  %v8335_v14 = vld [vmem:[#allocation22_spill] sm:$0xff]  ;;  %v7790_v40 = vpop.f32.mrf.mxu0  ;;  %v8343_v12 = vld [vmem:[#allocation71_spill] sm:$0xff] }
 0x35c   :  { %v3661_v54 = vpop.f32.mrf.mxu1  ;;  %v3481_v8 = vadd.f32 %v7654_v46, %v8335_v14  ;;  %v3483_v29 = vadd.f32 %v7659_v52, %v3290_v30  ;;  %v3487_v46 = vadd.f32 %v7662_v27, %v8337_v18  ;;  %v8346_v18 = vld [vmem:[#allocation29_spill] sm:$0xff] }
 0x35d   :  { %v3879_v42 = vpack.c.bf16 %v3795_v24, %v3791_v9  ;;  %v3662_v55 = vadd.f32 %v3661_v54, %v3469_v62  ;;  %v3798_v44 = vmax.f32 %v3660_v61, 0.0  ;;  %v7797_v62 = vpop.f32.mrf.mxu0 }
 0x35e   :  { %v3663_v37 = vpop.f32.mrf.mxu1 }
 0x35f   :  { %v3664_v36 = vadd.f32 %v3663_v37, %v3471_v45  ;;  %4621 = vmatprep.mubr.bf16.mxu1 %v3879_v42  ;;  %v3799_v20 = vmax.f32 %v3662_v55, 0.0 }
 0x360   :  { %v3665_v41 = vpop.f32.mrf.mxu1  ;;  %4622 = vmatmul.mubr.bf16.gmra.mxu1 %v3878_v16  ;;  %v8336_v16 = vld [vmem:[#allocation25_spill] sm:$0xff] }
 0x361   :  { %v3802_v10 = vmax.f32 %v3664_v36, 0.0  ;;  %v3666_v28 = vadd.f32 %v3665_v41, %v3473_v17  ;;  %v3107_v24 = vadd.f32 %v8336_v16, %v7310_v47  ;;  %v8339_v17 = vld [vmem:[#allocation24_spill] sm:$0xff]  ;;  %v8340_v36 = vld [vmem:[#allocation26_spill] sm:$0xff] }
 0x362   :  { %v3669_v25 = vpop.f32.mrf.mxu1  ;;  %v3489_v55 = vadd.f32 %v7671_v33, %v8339_v17  ;;  %v3491_v41 = vadd.f32 %v7678_v21, %v8340_v36 }
 0x363   :  { %v3882_v3 = vpack.c.bf16 %v3802_v10, %v3798_v44  ;;  %v3803_v19 = vmax.f32 %v3666_v28, 0.0  ;;  %v3670_v43 = vadd.f32 %v3669_v25, %v3477_v63  ;;  %v3300_v45 = vadd.f32 %v8338_v60, %v3107_v24  ;;  %v7804_v44 = vpop.f32.mrf.mxu0  ;;  %v8341_v25 = vld [vmem:[#allocation28_spill] sm:$0xff] }
 0x364   :  { %v3671_v59 = vpop.f32.mrf.mxu1  ;;  %v3117_v51 = vadd.f32 %v8341_v25, %v7310_v47 }
 0x365   :  { %v3883_v7 = vpack.c.bf16 %v3803_v19, %v3799_v20  ;;  %v3672_v31 = vadd.f32 %v3671_v59, %v3479_v48  ;;  %v3806_v54 = vmax.f32 %v3670_v43, 0.0  ;;  %v3493_v10 = vadd.f32 %v7685_v13, %v3300_v45  ;;  %v7811_v19 = vpop.f32.mrf.mxu0  ;;  %v8344_v43 = vld [vmem:[#allocation69_spill] sm:$0xff]  ;;  %v8347_v45 = vld [vmem:[#allocation72_spill] sm:$0xff] }
 0x366   :  { %v3673_v35 = vpop.f32.mrf.mxu1  ;;  %v3310_v48 = vadd.f32 %v8343_v12, %v3117_v51 }
 0x367   :  { %v3674_v39 = vadd.f32 %v3673_v35, %v3481_v8  ;;  %4631 = vmatprep.mubr.bf16.mxu1 %v3883_v7  ;;  %v3807_v52 = vmax.f32 %v3672_v31, 0.0  ;;  %v3499_v35 = vadd.f32 %v7699_v56, %v8344_v43  ;;  %v7818_v16 = vpop.f32.mrf.mxu0 }
 0x368   :  { %v3675_v9 = vpop.f32.mrf.mxu1  ;;  %4632 = vmatmul.mubr.bf16.gmra.mxu1 %v3882_v3  ;;  %v8342_v3 = vld [vmem:[#allocation27_spill] sm:$0xff]  ;;  %v3503_v24 = vadd.f32 %v7713_v49, %v3310_v48 }
 0x369   :  { %v3810_v23 = vmax.f32 %v3674_v39, 0.0  ;;  %v3676_v57 = vadd.f32 %v3675_v9, %v3483_v29  ;;  %v3497_v21 = vadd.f32 %v7692_v26, %v8342_v3  ;;  %v8345_v29 = vld [vmem:[#allocation70_spill] sm:$0xff] }
 0x36a   :  { %v3679_v38 = vpop.f32.mrf.mxu1  ;;  %v3501_v31 = vadd.f32 %v7706_v22, %v8345_v29  ;;  %v3507_v22 = vadd.f32 %v7720_v6, %v8347_v45 }
 0x36b   :  { %v3886_v42 = vpack.c.bf16 %v3810_v23, %v3806_v54  ;;  %v3811_v61 = vmax.f32 %v3676_v57, 0.0  ;;  %v3680_v15 = vadd.f32 %v3679_v38, %v3487_v46  ;;  %v3127_v46 = vadd.f32 %v8346_v18, %v7310_v47  ;;  %v3964_v18 = vld [vmem:[%s8093_s4] sm:$0x3] }
 0x36c   :  { %v3681_v37 = vpop.f32.mrf.mxu1 }
 0x36d   :  { %v3887_v53 = vpack.c.bf16 %v3811_v61, %v3807_v52  ;;  %v3682_v28 = vadd.f32 %v3681_v37, %v3489_v55  ;;  %v3814_v30 = vmax.f32 %v3680_v15, 0.0  ;;  %v7825_v52 = vpop.f32.mrf.mxu0  ;;  %v8348_v61 = vld [vmem:[#allocation76_spill] sm:$0xff]  ;;  %v8350_v15 = vld [vmem:[#allocation75_spill] sm:$0xff] }
 0x36e   :  { %v3683_v27 = vpop.f32.mrf.mxu1  ;;  %v3320_v37 = vadd.f32 %v8348_v61, %v3127_v46  ;;  %v3511_v47 = vadd.f32 %v7734_v32, %v8350_v15 }
 0x36f   :  { %v3684_v5 = vadd.f32 %v3683_v27, %v3491_v41  ;;  %4641 = vmatprep.mubr.bf16.mxu1 %v3887_v53  ;;  %v3815_v13 = vmax.f32 %v3682_v28, 0.0  ;;  %v8349_v41 = vld [vmem:[#allocation73_spill] sm:$0xff]  ;;  %v7832_v28 = vpop.f32.mrf.mxu0 }
 0x370   :  { %v3685_v63 = vpop.f32.mrf.mxu1  ;;  %4642 = vmatmul.mubr.bf16.gmra.mxu1 %v3886_v42  ;;  %v3509_v53 = vadd.f32 %v7727_v50, %v8349_v41 }
 0x371   :  { %v3818_v33 = vmax.f32 %v3684_v5, 0.0  ;;  %v3686_v20 = vadd.f32 %v3685_v63, %v3493_v10  ;;  %v3513_v5 = vadd.f32 %v7741_v2, %v3320_v37  ;;  %v7835_v3 = vpop.f32.mrf.mxu0 }
 0x372   :  { %v3689_v59 = vpop.f32.mrf.mxu1 }
 0x373   :  { %v3890_v14 = vpack.c.bf16 %v3818_v33, %v3814_v30  ;;  %v3819_v8 = vmax.f32 %v3686_v20, 0.0  ;;  %v3690_v9 = vadd.f32 %v3689_v59, %v3497_v21  ;;  %v7837_v12 = vpop.f32.mrf.mxu0 }
 0x374   :  { %v3691_v7 = vpop.f32.mrf.mxu1 }
 0x375   :  { %v3891_v39 = vpack.c.bf16 %v3819_v8, %v3815_v13  ;;  %v3692_v54 = vadd.f32 %v3691_v7, %v3499_v35  ;;  %v3822_v38 = vmax.f32 %v3690_v9, 0.0  ;;  %v7839_v48 = vpop.f32.mrf.mxu0 }
 0x376   :  { %v3693_v26 = vpop.f32.mrf.mxu1 }
 0x377   :  { %v3694_v23 = vadd.f32 %v3693_v26, %v3501_v31  ;;  %4651 = vmatprep.mubr.bf16.mxu1 %v3891_v39  ;;  %v3823_v49 = vmax.f32 %v3692_v54, 0.0  ;;  %v7841_v2 = vpop.f32.mrf.mxu0 }
 0x378   :  { %v3695_v57 = vpop.f32.mrf.mxu1  ;;  %4652 = vmatmul.mubr.bf16.gmra.mxu1 %v3890_v14 }
 0x379   :  { %v3826_v56 = vmax.f32 %v3694_v23, 0.0  ;;  %v3696_v60 = vadd.f32 %v3695_v57, %v3503_v24  ;;  %v7843_v13 = vpop.f32.mrf.mxu0 }
 0x37a   :  { %v3699_v42 = vpop.f32.mrf.mxu1 }
 0x37b   :  { %v3894_v17 = vpack.c.bf16 %v3826_v56, %v3822_v38  ;;  %v3827_v55 = vmax.f32 %v3696_v60, 0.0  ;;  %v3700_v10 = vadd.f32 %v3699_v42, %v3507_v22  ;;  %v7845_v14 = vpop.f32.mrf.mxu0  ;;  %v8351_v38 = vld [vmem:[#allocation16_spill] sm:$0xff] }
 0x37c   :  { %v3701_v36 = vpop.f32.mrf.mxu1  ;;  %v8352_v56 = vsub.s32 1, %v8351_v38  ;;  %v8353_v45 = vsub.s32 0, %v8351_v38 }
 0x37d   :  { %v3895_v27 = vpack.c.bf16 %v3827_v55, %v3823_v49  ;;  %v3702_v63 = vadd.f32 %v3701_v36, %v3509_v53  ;;  %v3830_v30 = vmax.f32 %v3700_v10, 0.0  ;;  %v7847_v8 = vpop.f32.mrf.mxu0 }
 0x37e   :  { %v3703_v6 = vpop.f32.mrf.mxu1  ;;  %v7880_v60 = vrot.slane %v3964_v18, %v8352_v56  ;;  %v7884_v22 = vrot.slane %v3964_v18, %v8353_v45 }
 0x37f   :  { %v3704_v25 = vadd.f32 %v3703_v6, %v3511_v47  ;;  %4661 = vmatprep.mubr.bf16.mxu1 %v3895_v27  ;;  %v3831_v50 = vmax.f32 %v3702_v63, 0.0  ;;  %v7849_v7 = vpop.f32.mrf.mxu0 }
 0x380   :  { %v3705_v51 = vpop.f32.mrf.mxu1  ;;  %4662 = vmatmul.mubr.bf16.gmra.mxu1 %v3894_v17  ;;  %v4333_v49 = vadd.f32 %v7755_v4, %v7880_v60  ;;  %v4335_v17 = vadd.f32 %v7762_v34, %v7884_v22  ;;  %v4331_v55 = vadd.f32 %v7748_v1, %v7884_v22  ;;  %v4337_v41 = vadd.f32 %v7769_v0, %v7880_v60 }
 0x381   :  { %v3834_v33 = vmax.f32 %v3704_v25, 0.0  ;;  %v3706_v20 = vadd.f32 %v3705_v51, %v3513_v5  ;;  %v7851_v43 = vpop.f32.mrf.mxu0  ;;  %v4343_v1 = vadd.f32 %v7783_v11, %v7880_v60  ;;  %v4345_v0 = vadd.f32 %v7790_v40, %v7884_v22 }
 0x383   :  { %v3898_v21 = vpack.c.bf16 %v3834_v33, %v3830_v30  ;;  %v3835_v32 = vmax.f32 %v3706_v20, 0.0  ;;  %v7853_v35 = vpop.f32.mrf.mxu0  ;;  %v4341_v20 = vadd.f32 %v7776_v58, %v7884_v22 }
 0x385   :  { %v3899_v59 = vpack.c.bf16 %v3835_v32, %v3831_v50  ;;  %v7855_v29 = vpop.f32.mrf.mxu0  ;;  %v4347_v32 = vadd.f32 %v7797_v62, %v7880_v60  ;;  %v4353_v62 = vadd.f32 %v7811_v19, %v7880_v60 }
 0x387   :  { %4671 = vmatprep.mubr.bf16.mxu1 %v3899_v59  ;;  %v7857_v31 = vpop.f32.mrf.mxu0 }
 0x388   :  { %4672 = vmatmul.mubr.bf16.gmra.mxu1 %v3898_v21 }
 0x389   :  { %v7859_v39 = vpop.f32.mrf.mxu0 }
 0x38b   :  { %v7861_v9 = vpop.f32.mrf.mxu0 }
 0x38d   :  { %v7863_v26 = vpop.f32.mrf.mxu0 }
 0x38f   :  { %v7865_v24 = vpop.f32.mrf.mxu0 }
 0x391   :  { %v7867_v54 = vpop.f32.mrf.mxu0 }
 0x393   :  { %v7869_v23 = vpop.f32.mrf.mxu0 }
 0x395   :  { %v7871_v57 = vpop.f32.mrf.mxu0 }
 0x397   :  { %v7876_v46 = vpop.f32.mrf.mxu0 }
 0x399   :  { %v7886_v61 = vpop.f32.mrf.mxu0 }
 0x39b   :  { %v7896_v47 = vpop.f32.mrf.mxu0 }
 0x39d   :  { %v7898_v51 = vpop.f32.mrf.mxu0 }
 0x39f   :  { %v7908_v38 = vpop.f32.mrf.mxu0 }
 0x3d0   :  { %v4523_v42 = vpop.f32.mrf.mxu1 }
 0x3d1   :  { %v4524_v27 = vadd.f32 %v4523_v42, %v4331_v55 }
 0x3d2   :  { %v4525_v37 = vpop.f32.mrf.mxu1 }
 0x3d3   :  { %v4526_v53 = vadd.f32 %v4525_v37, %v4333_v49  ;;  %v4682_v34 = vmax.f32 %v4524_v27, 0.0 }
 0x3d4   :  { %v4527_v36 = vpop.f32.mrf.mxu1 }
 0x3d5   :  { %v4528_v15 = vadd.f32 %v4527_v36, %v4335_v17  ;;  %v4683_v4 = vmax.f32 %v4526_v53, 0.0  ;;  %v7910_v17 = vpop.f32.mrf.mxu0  ;;  %v4355_v36 = vadd.f32 %v7818_v16, %v7884_v22  ;;  %v4351_v53 = vadd.f32 %v7804_v44, %v7884_v22 }
 0x3d6   :  { %v4529_v10 = vpop.f32.mrf.mxu1 }
 0x3d7   :  { %v4530_v6 = vadd.f32 %v4529_v10, %v4337_v41  ;;  %v4684_v5 = vmax.f32 %v4528_v15, 0.0  ;;  %v4357_v10 = vadd.f32 %v7825_v52, %v7880_v60  ;;  %v4363_v52 = vadd.f32 %v7835_v3, %v7880_v60 }
 0x3d8   :  { %v4533_v63 = vpop.f32.mrf.mxu1 }
 0x3d9   :  { %v4685_v25 = vmax.f32 %v4530_v6, 0.0  ;;  %v4746_v50 = vpack.c.bf16 %v4684_v5, %v4682_v34  ;;  %v4534_v56 = vadd.f32 %v4533_v63, %v4341_v20  ;;  %v7920_v63 = vpop.f32.mrf.mxu0  ;;  %v4365_v20 = vadd.f32 %v7837_v12, %v7884_v22 }
 0x3da   :  { %v4535_v30 = vpop.f32.mrf.mxu1 }
 0x3db   :  { %v4747_v33 = vpack.c.bf16 %v4685_v25, %v4683_v4  ;;  %v4536_v59 = vadd.f32 %v4535_v30, %v4343_v1  ;;  %v4686_v58 = vmax.f32 %v4534_v56, 0.0 }
 0x3dc   :  { %v4537_v21 = vpop.f32.mrf.mxu1 }
 0x3dd   :  { %v4538_v18 = vadd.f32 %v4537_v21, %v4345_v0  ;;  %4945 = vmatprep.mubr.bf16.mxu0 %v4747_v33  ;;  %v4687_v37 = vmax.f32 %v4536_v59, 0.0  ;;  %v7922_v0 = vpop.f32.mrf.mxu0  ;;  %v4361_v21 = vadd.f32 %v7832_v28, %v7884_v22 }
 0x3de   :  { %v4539_v45 = vpop.f32.mrf.mxu1  ;;  %4946 = vmatmul.mubr.bf16.vlgmr.msra.gmra.mxu0 %v4746_v50 }
 0x3df   :  { %v4540_v11 = vadd.f32 %v4539_v45, %v4347_v32  ;;  %v4688_v42 = vmax.f32 %v4538_v18, 0.0  ;;  %v4367_v18 = vadd.f32 %v7839_v48, %v7880_v60  ;;  %v4373_v48 = vadd.f32 %v7843_v13, %v7880_v60 }
 0x3e0   :  { %v4543_v40 = vpop.f32.mrf.mxu1 }
 0x3e1   :  { %v4689_v49 = vmax.f32 %v4540_v11, 0.0  ;;  %v4748_v15 = vpack.c.bf16 %v4688_v42, %v4686_v58  ;;  %v4544_v4 = vadd.f32 %v4543_v40, %v4351_v53  ;;  %v7932_v11 = vpop.f32.mrf.mxu0  ;;  %v4371_v53 = vadd.f32 %v7841_v2, %v7884_v22 }
 0x3e2   :  { %v4545_v55 = vpop.f32.mrf.mxu1 }
 0x3e3   :  { %v4749_v41 = vpack.c.bf16 %v4689_v49, %v4687_v37  ;;  %v4546_v6 = vadd.f32 %v4545_v55, %v4353_v62  ;;  %v4690_v44 = vmax.f32 %v4544_v4, 0.0  ;;  %v7934_v55 = vpop.f32.mrf.mxu0 }
 0x3e4   :  { %v4547_v27 = vpop.f32.mrf.mxu1 }
 0x3e5   :  { %v4548_v5 = vadd.f32 %v4547_v27, %v4355_v36  ;;  %4953 = vmatprep.mubr.bf16.mxu0 %v4749_v41  ;;  %v4691_v30 = vmax.f32 %v4546_v6, 0.0  ;;  %v4375_v36 = vadd.f32 %v7845_v14, %v7884_v22  ;;  %v7944_v4 = vpop.f32.mrf.mxu0 }
 0x3e6   :  { %v4549_v25 = vpop.f32.mrf.mxu1  ;;  %4954 = vmatmul.mubr.bf16.gmra.mxu0 %v4748_v15 }
 0x3e7   :  { %v4550_v19 = vadd.f32 %v4549_v25, %v4357_v10  ;;  %v4692_v34 = vmax.f32 %v4548_v5, 0.0  ;;  %v4377_v10 = vadd.f32 %v7847_v8, %v7880_v60  ;;  %v4383_v8 = vadd.f32 %v7851_v43, %v7880_v60 }
 0x3e8   :  { %v4553_v16 = vpop.f32.mrf.mxu1 }
 0x3e9   :  { %v4693_v1 = vmax.f32 %v4550_v19, 0.0  ;;  %v4750_v32 = vpack.c.bf16 %v4692_v34, %v4690_v44  ;;  %v4554_v42 = vadd.f32 %v4553_v16, %v4361_v21 }
 0x3ea   :  { %v4555_v33 = vpop.f32.mrf.mxu1 }
 0x3eb   :  { %v4751_v50 = vpack.c.bf16 %v4693_v1, %v4691_v30  ;;  %v4556_v56 = vadd.f32 %v4555_v33, %v4363_v52  ;;  %v4694_v28 = vmax.f32 %v4554_v42, 0.0  ;;  %v7946_v1 = vpop.f32.mrf.mxu0  ;;  %v4385_v33 = vadd.f32 %v7853_v35, %v7884_v22 }
 0x3ec   :  { %v4557_v59 = vpop.f32.mrf.mxu1 }
 0x3ed   :  { %v4558_v45 = vadd.f32 %v4557_v59, %v4365_v20  ;;  %4961 = vmatprep.mubr.bf16.mxu0 %v4751_v50  ;;  %v4695_v49 = vmax.f32 %v4556_v56, 0.0  ;;  %v4381_v20 = vadd.f32 %v7849_v7, %v7884_v22  ;;  %v7956_v56 = vpop.f32.mrf.mxu0 }
 0x3ee   :  { %v4559_v40 = vpop.f32.mrf.mxu1  ;;  %4962 = vmatmul.mubr.bf16.gmra.mxu0 %v4750_v32  ;;  %v4387_v32 = vadd.f32 %v7855_v29, %v7880_v60  ;;  %v4393_v29 = vadd.f32 %v7859_v39, %v7880_v60 }
 0x3ef   :  { %v4560_v3 = vadd.f32 %v4559_v40, %v4367_v18  ;;  %v4696_v37 = vmax.f32 %v4558_v45, 0.0 }
 0x3f0   :  { %v4563_v12 = vpop.f32.mrf.mxu1 }
 0x3f1   :  { %v4697_v58 = vmax.f32 %v4560_v3, 0.0  ;;  %v4752_v15 = vpack.c.bf16 %v4696_v37, %v4694_v28  ;;  %v4564_v25 = vadd.f32 %v4563_v12, %v4371_v53  ;;  %v7958_v12 = vpop.f32.mrf.mxu0 }
 0x3f2   :  { %v4565_v62 = vpop.f32.mrf.mxu1 }
 0x3f3   :  { %v4753_v41 = vpack.c.bf16 %v4697_v58, %v4695_v49  ;;  %v4566_v6 = vadd.f32 %v4565_v62, %v4373_v48  ;;  %v4698_v2 = vmax.f32 %v4564_v25, 0.0  ;;  %v4395_v58 = vadd.f32 %v7861_v9, %v7884_v22 }
 0x3f4   :  { %v4567_v27 = vpop.f32.mrf.mxu1  ;;  %v4391_v62 = vadd.f32 %v7857_v31, %v7884_v22 }
 0x3f5   :  { %v4568_v5 = vadd.f32 %v4567_v27, %v4375_v36  ;;  %4969 = vmatprep.mubr.bf16.mxu0 %v4753_v41  ;;  %v4699_v16 = vmax.f32 %v4566_v6, 0.0  ;;  %v4397_v41 = vadd.f32 %v7863_v26, %v7880_v60  ;;  %v7968_v27 = vpop.f32.mrf.mxu0  ;;  %v4403_v26 = vadd.f32 %v7867_v54, %v7880_v60 }
 0x3f6   :  { %v4569_v19 = vpop.f32.mrf.mxu1  ;;  %4970 = vmatmul.mubr.bf16.gmra.mxu0 %v4752_v15 }
 0x3f7   :  { %v4570_v13 = vadd.f32 %v4569_v19, %v4377_v10  ;;  %v4700_v34 = vmax.f32 %v4568_v5, 0.0 }
 0x3f8   :  { %v4573_v14 = vpop.f32.mrf.mxu1 }
 0x3f9   :  { %v4701_v30 = vmax.f32 %v4570_v13, 0.0  ;;  %v4754_v50 = vpack.c.bf16 %v4700_v34, %v4698_v2  ;;  %v4574_v45 = vadd.f32 %v4573_v14, %v4381_v20  ;;  %v7970_v13 = vpop.f32.mrf.mxu0  ;;  %v4405_v14 = vadd.f32 %v7869_v23, %v7884_v22 }
 0x3fa   :  { %v4575_v44 = vpop.f32.mrf.mxu1 }
 0x3fb   :  { %v4755_v52 = vpack.c.bf16 %v4701_v30, %v4699_v16  ;;  %v4576_v59 = vadd.f32 %v4575_v44, %v4383_v8  ;;  %v4702_v7 = vmax.f32 %v4574_v45, 0.0  ;;  %v4401_v30 = vadd.f32 %v7865_v24, %v7884_v22  ;;  %v7980_v20 = vpop.f32.mrf.mxu0 }
 0x3fc   :  { %v4577_v21 = vpop.f32.mrf.mxu1  ;;  %v4407_v8 = vadd.f32 %v7871_v57, %v7880_v60  ;;  %v4413_v57 = vadd.f32 %v7886_v61, %v7880_v60 }
 0x3fd   :  { %v4578_v18 = vadd.f32 %v4577_v21, %v4385_v33  ;;  %4977 = vmatprep.mubr.bf16.mxu0 %v4755_v52  ;;  %v4703_v3 = vmax.f32 %v4576_v59, 0.0  ;;  %v7982_v45 = vpop.f32.mrf.mxu0 }
 0x3fe   :  { %v4579_v42 = vpop.f32.mrf.mxu1  ;;  %4978 = vmatmul.mubr.bf16.gmra.mxu0 %v4754_v50 }
 0x3ff   :  { %v4580_v43 = vadd.f32 %v4579_v42, %v4387_v32  ;;  %v4704_v40 = vmax.f32 %v4578_v18, 0.0 }
 0x400   :  { %v4583_v35 = vpop.f32.mrf.mxu1 }
 0x401   :  { %v4705_v37 = vmax.f32 %v4580_v43, 0.0  ;;  %v4756_v48 = vpack.c.bf16 %v4704_v40, %v4702_v7  ;;  %v4584_v10 = vadd.f32 %v4583_v35, %v4391_v62  ;;  %v4415_v43 = vadd.f32 %v7896_v47, %v7884_v22 }
 0x402   :  { %v4585_v49 = vpop.f32.mrf.mxu1  ;;  %v4411_v35 = vadd.f32 %v7876_v46, %v7884_v22  ;;  %v4417_v7 = vadd.f32 %v7898_v51, %v7880_v60  ;;  %v4423_v51 = vadd.f32 %v7910_v17, %v7880_v60 }
 0x403   :  { %v4757_v28 = vpack.c.bf16 %v4705_v37, %v4703_v3  ;;  %v4586_v53 = vadd.f32 %v4585_v49, %v4393_v29  ;;  %v4706_v31 = vmax.f32 %v4584_v10, 0.0  ;;  %v4425_v10 = vadd.f32 %v7920_v63, %v7884_v22 }
 0x404   :  { %v4587_v36 = vpop.f32.mrf.mxu1 }
 0x405   :  { %v4588_v15 = vadd.f32 %v4587_v36, %v4395_v58  ;;  %4985 = vmatprep.mubr.bf16.mxu0 %v4757_v28  ;;  %v4707_v25 = vmax.f32 %v4586_v53, 0.0  ;;  %v7992_v58 = vpop.f32.mrf.mxu0 }
 0x406   :  { %v4589_v6 = vpop.f32.mrf.mxu1  ;;  %4986 = vmatmul.mubr.bf16.gmra.mxu0 %v4756_v48 }
 0x407   :  { %v4590_v39 = vadd.f32 %v4589_v6, %v4397_v41  ;;  %v4708_v5 = vmax.f32 %v4588_v15, 0.0  ;;  %v7994_v53 = vpop.f32.mrf.mxu0 }
 0x408   :  { %v4593_v9 = vpop.f32.mrf.mxu1 }
 0x409   :  { %v4709_v19 = vmax.f32 %v4590_v39, 0.0  ;;  %v4758_v2 = vpack.c.bf16 %v4708_v5, %v4706_v31  ;;  %v4594_v50 = vadd.f32 %v4593_v9, %v4401_v30  ;;  %v4421_v39 = vadd.f32 %v7908_v38, %v7884_v22 }
 0x40a   :  { %v4595_v34 = vpop.f32.mrf.mxu1 }
 0x40b   :  { %v4759_v16 = vpack.c.bf16 %v4709_v19, %v4707_v25  ;;  %v4596_v33 = vadd.f32 %v4595_v34, %v4403_v26  ;;  %v4710_v24 = vmax.f32 %v4594_v50, 0.0  ;;  %v4427_v25 = vadd.f32 %v7922_v0, %v7880_v60  ;;  %v8004_v34 = vpop.f32.mrf.mxu0 }
 0x40c   :  { %v4597_v44 = vpop.f32.mrf.mxu1  ;;  %v4433_v0 = vadd.f32 %v7934_v55, %v7880_v60  ;;  %v4431_v50 = vadd.f32 %v7932_v11, %v7884_v22 }
 0x40d   :  { %v4598_v52 = vadd.f32 %v4597_v44, %v4405_v14  ;;  %4993 = vmatprep.mubr.bf16.mxu0 %v4759_v16  ;;  %v4711_v59 = vmax.f32 %v4596_v33, 0.0  ;;  %v8006_v44 = vpop.f32.mrf.mxu0  ;;  %v4435_v33 = vadd.f32 %v7944_v4, %v7884_v22 }
 0x40e   :  { %v4599_v21 = vpop.f32.mrf.mxu1  ;;  %4994 = vmatmul.mubr.bf16.gmra.mxu0 %v4758_v2 }
 0x40f   :  { %v4600_v54 = vadd.f32 %v4599_v21, %v4407_v8  ;;  %v4712_v32 = vmax.f32 %v4598_v52, 0.0 }
 0x410   :  { %v4603_v23 = vpop.f32.mrf.mxu1 }
 0x411   :  { %v4713_v18 = vmax.f32 %v4600_v54, 0.0  ;;  %v4760_v3 = vpack.c.bf16 %v4712_v32, %v4710_v24  ;;  %v4604_v28 = vadd.f32 %v4603_v23, %v4411_v35  ;;  %v4437_v32 = vadd.f32 %v7946_v1, %v7880_v60 }
 0x412   :  { %v4605_v42 = vpop.f32.mrf.mxu1  ;;  %v4445_v1 = vadd.f32 %v7968_v27, %v7884_v22 }
 0x413   :  { %v4761_v40 = vpack.c.bf16 %v4713_v18, %v4711_v59  ;;  %v4606_v49 = vadd.f32 %v4605_v42, %v4413_v57  ;;  %v4714_v46 = vmax.f32 %v4604_v28, 0.0  ;;  %v4464_v18 = vpop.f32.mrf.mxu0 }
 0x414   :  { %v4607_v37 = vpop.f32.mrf.mxu1 }
 0x415   :  { %v4608_v29 = vadd.f32 %v4607_v37, %v4415_v43  ;;  %5001 = vmatprep.mubr.bf16.mxu0 %v4761_v40  ;;  %v4715_v36 = vmax.f32 %v4606_v49, 0.0  ;;  %v4466_v35 = vpop.f32.mrf.mxu0  ;;  %v4443_v37 = vadd.f32 %v7958_v12, %v7880_v60  ;;  %v4441_v49 = vadd.f32 %v7956_v56, %v7884_v22 }
 0x416   :  { %v4609_v62 = vpop.f32.mrf.mxu1  ;;  %5002 = vmatmul.mubr.bf16.gmra.mxu0 %v4760_v3 }
 0x417   :  { %v4610_v61 = vadd.f32 %v4609_v62, %v4417_v7  ;;  %v4716_v48 = vmax.f32 %v4608_v29, 0.0  ;;  %v4447_v62 = vadd.f32 %v7970_v13, %v7880_v60  ;;  %v4455_v13 = vadd.f32 %v7992_v58, %v7884_v22 }
 0x418   :  { %v4613_v47 = vpop.f32.mrf.mxu1 }
 0x419   :  { %v4717_v41 = vmax.f32 %v4610_v61, 0.0  ;;  %v4762_v5 = vpack.c.bf16 %v4716_v48, %v4714_v46  ;;  %v4614_v26 = vadd.f32 %v4613_v47, %v4421_v39  ;;  %v4470_v47 = vpop.f32.mrf.mxu0  ;;  %v4453_v39 = vadd.f32 %v7982_v45, %v7880_v60 }
 0x41a   :  { %v4615_v15 = vpop.f32.mrf.mxu1 }
 0x41b   :  { %v4763_v6 = vpack.c.bf16 %v4717_v41, %v4715_v36  ;;  %v4616_v19 = vadd.f32 %v4615_v15, %v4423_v51  ;;  %v4718_v38 = vmax.f32 %v4614_v26, 0.0 }
 0x41c   :  { %v4617_v9 = vpop.f32.mrf.mxu1 }
 0x41d   :  { %v4618_v31 = vadd.f32 %v4617_v9, %v4425_v10  ;;  %5009 = vmatprep.mubr.bf16.mxu0 %v4763_v6  ;;  %v4719_v30 = vmax.f32 %v4616_v19, 0.0  ;;  %v4472_v10 = vpop.f32.mrf.mxu0  ;;  %v4451_v9 = vadd.f32 %v7980_v20, %v7884_v22 }
 0x41e   :  { %v4619_v14 = vpop.f32.mrf.mxu1  ;;  %5010 = vmatmul.mubr.bf16.gmra.mxu0 %v4762_v5 }
 0x41f   :  { %v4620_v17 = vadd.f32 %v4619_v14, %v4427_v25  ;;  %v4720_v16 = vmax.f32 %v4618_v31, 0.0  ;;  %v4457_v31 = vadd.f32 %v7994_v53, %v7880_v60  ;;  %v4465_v53 = vadd.f32 %v4464_v18, %v7884_v22 }
 0x420   :  { %v4623_v63 = vpop.f32.mrf.mxu1 }
 0x421   :  { %v4721_v2 = vmax.f32 %v4620_v17, 0.0  ;;  %v4764_v21 = vpack.c.bf16 %v4720_v16, %v4718_v38  ;;  %v4624_v24 = vadd.f32 %v4623_v63, %v4431_v50  ;;  %v4474_v17 = vpop.f32.mrf.mxu0  ;;  %v4461_v50 = vadd.f32 %v8004_v34, %v7884_v22 }
 0x422   :  { %v4625_v8 = vpop.f32.mrf.mxu1  ;;  %v4473_v34 = vadd.f32 %v4472_v10, %v7880_v60 }
 0x423   :  { %v4765_v52 = vpack.c.bf16 %v4721_v2, %v4719_v30  ;;  %v4626_v23 = vadd.f32 %v4625_v8, %v4433_v0  ;;  %v4722_v3 = vmax.f32 %v4624_v24, 0.0  ;;  %v4476_v8 = vpop.f32.mrf.mxu0 }
 0x424   :  { %v4627_v54 = vpop.f32.mrf.mxu1 }
 0x425   :  { %v4628_v59 = vadd.f32 %v4627_v54, %v4435_v33  ;;  %5017 = vmatprep.mubr.bf16.mxu0 %v4765_v52  ;;  %v4723_v4 = vmax.f32 %v4626_v23, 0.0  ;;  %v4463_v33 = vadd.f32 %v8006_v44, %v7880_v60  ;;  %v4480_v24 = vpop.f32.mrf.mxu0 }
 0x426   :  { %v4629_v42 = vpop.f32.mrf.mxu1  ;;  %5018 = vmatmul.mubr.bf16.gmra.mxu0 %v4764_v21 }
 0x427   :  { %v4630_v55 = vadd.f32 %v4629_v42, %v4437_v32  ;;  %v4724_v57 = vmax.f32 %v4628_v59, 0.0  ;;  %v4467_v32 = vadd.f32 %v4466_v35, %v7880_v60 }
 0x428   :  { %v4633_v43 = vpop.f32.mrf.mxu1 }
 0x429   :  { %v4725_v40 = vmax.f32 %v4630_v55, 0.0  ;;  %v4766_v29 = vpack.c.bf16 %v4724_v57, %v4722_v3  ;;  %v4634_v36 = vadd.f32 %v4633_v43, %v4441_v49 }
 0x42a   :  { %v4635_v11 = vpop.f32.mrf.mxu1 }
 0x42b   :  { %v4767_v7 = vpack.c.bf16 %v4725_v40, %v4723_v4  ;;  %v4636_v61 = vadd.f32 %v4635_v11, %v4443_v37  ;;  %v4726_v6 = vmax.f32 %v4634_v36, 0.0  ;;  %v4482_v40 = vpop.f32.mrf.mxu0  ;;  %v4475_v37 = vadd.f32 %v4474_v17, %v7884_v22 }
 0x42c   :  { %v4637_v28 = vpop.f32.mrf.mxu1 }
 0x42d   :  { %v4638_v48 = vadd.f32 %v4637_v28, %v4445_v1  ;;  %5025 = vmatprep.mubr.bf16.mxu0 %v4767_v7  ;;  %v4727_v27 = vmax.f32 %v4636_v61, 0.0  ;;  %v4471_v1 = vadd.f32 %v4470_v47, %v7884_v22  ;;  %v4484_v61 = vpop.f32.mrf.mxu0  ;;  %v4483_v47 = vadd.f32 %v4482_v40, %v7880_v60 }
 0x42e   :  { %v4639_v41 = vpop.f32.mrf.mxu1  ;;  %5026 = vmatmul.mubr.bf16.gmra.mxu0 %v4766_v29  ;;  %v4477_v29 = vadd.f32 %v4476_v8, %v7880_v60 }
 0x42f   :  { %v4640_v12 = vadd.f32 %v4639_v41, %v4447_v62  ;;  %v4728_v46 = vmax.f32 %v4638_v48, 0.0 }
 0x430   :  { %v4643_v15 = vpop.f32.mrf.mxu1 }
 0x431   :  { %v4729_v51 = vmax.f32 %v4640_v12, 0.0  ;;  %v4768_v25 = vpack.c.bf16 %v4728_v46, %v4726_v6  ;;  %v4644_v16 = vadd.f32 %v4643_v15, %v4451_v9 }
 0x432   :  { %v4645_v56 = vpop.f32.mrf.mxu1 }
 0x433   :  { %v4769_v5 = vpack.c.bf16 %v4729_v51, %v4727_v27  ;;  %v4646_v26 = vadd.f32 %v4645_v56, %v4453_v39  ;;  %v4730_v0 = vmax.f32 %v4644_v16, 0.0  ;;  %v4486_v51 = vpop.f32.mrf.mxu0  ;;  %v4485_v56 = vadd.f32 %v4484_v61, %v7884_v22 }
 0x434   :  { %v4647_v19 = vpop.f32.mrf.mxu1 }
 0x435   :  { %v4648_v14 = vadd.f32 %v4647_v19, %v4455_v13  ;;  %5033 = vmatprep.mubr.bf16.mxu0 %v4769_v5  ;;  %v4731_v58 = vmax.f32 %v4646_v26, 0.0  ;;  %v4481_v13 = vadd.f32 %v4480_v24, %v7884_v22 }
 0x436   :  { %v4649_v63 = vpop.f32.mrf.mxu1  ;;  %5034 = vmatmul.mubr.bf16.gmra.mxu0 %v4768_v25  ;;  %v4487_v25 = vadd.f32 %v4486_v51, %v7880_v60  ;;  %v8049_v60 = vld [vmem:[%s8095_s6] ss:$0 sm:$0xff]  ;;  %s6564_s6 = smov [#allocation11]  }
 0x437   :  { %v4650_v45 = vadd.f32 %v4649_v63, %v4457_v31  ;;  %v4732_v30 = vmax.f32 %v4648_v14, 0.0  ;;  %s5111_s9 = sshll.u32 %s6564_s6, 4  ;;  %s5112_s9 = int_to_ptr.vmem [resolvable:$true] %s5111_s9 }
 0x438   :  { %v4653_v2 = vpop.f32.mrf.mxu1  ;;  %s6522_s10 = scalar_lea.vmem %s5112_s9, 4096  ;;  %p6527_p12 = scmp.lt.s32.totalorder %s5112_s9, %s5112_s9 }
 0x439   :  { %v4733_v38 = vmax.f32 %v4650_v45, 0.0  ;;  %v4770_v21 = vpack.c.bf16 %v4732_v30, %v4730_v0  ;;  %v4654_v42 = vadd.f32 %v4653_v2, %v4461_v50  ;;  %p6523_p11 = scmp.ne.s32.totalorder %s5112_s9, %s6522_s10  ;;  %p6528_p13 = scmp.lt.s32.totalorder %s6522_s10, %s6522_s10 }
 0x43a   :  { %v4655_v20 = vpop.f32.mrf.mxu1 }
 0x43b   :  { %v4771_v52 = vpack.c.bf16 %v4733_v38, %v4731_v58  ;;  %v4656_v23 = vadd.f32 %v4655_v20, %v4463_v33  ;;  %v4734_v3 = vmax.f32 %v4654_v42, 0.0  ;;  %p6529_p0 = por %p6528_p13, %p6527_p12 }
 0x43c   :  { %v4657_v54 = vpop.f32.mrf.mxu1 }
 0x43d   :  { %v4658_v59 = vadd.f32 %v4657_v54, %v4465_v53  ;;  %5041 = vmatprep.mubr.bf16.mxu0 %v4771_v52  ;;  %v4735_v4 = vmax.f32 %v4656_v23, 0.0  ;;  %p6530_p1 = pnand %p6529_p0, %p6523_p11 }
 0x43e   :  { %v4659_v55 = vpop.f32.mrf.mxu1  ;;  %5042 = vmatmul.mubr.bf16.gmra.mxu0 %v4770_v21 }
 0x43f   :  { %v4660_v57 = vadd.f32 %v4659_v55, %v4467_v32  ;;  %v4736_v43 = vmax.f32 %v4658_v59, 0.0 }
 0x440   :  { %v4663_v44 = vpop.f32.mrf.mxu1 }
 0x441   :  { %v4737_v18 = vmax.f32 %v4660_v57, 0.0  ;;  %v4772_v7 = vpack.c.bf16 %v4736_v43, %v4734_v3  ;;  %v4664_v48 = vadd.f32 %v4663_v44, %v4471_v1 }
 0x442   :  { %v4665_v11 = vpop.f32.mrf.mxu1 }
 0x443   :  { %v4773_v35 = vpack.c.bf16 %v4737_v18, %v4735_v4  ;;  %v4666_v28 = vadd.f32 %v4665_v11, %v4473_v34  ;;  %v4738_v10 = vmax.f32 %v4664_v48, 0.0 }
 0x444   :  { %v4667_v49 = vpop.f32.mrf.mxu1 }
 0x445   :  { %v4668_v62 = vadd.f32 %v4667_v49, %v4475_v37  ;;  %5049 = vmatprep.mubr.bf16.mxu0 %v4773_v35  ;;  %v4739_v15 = vmax.f32 %v4666_v28, 0.0 }
 0x446   :  { %v4669_v36 = vpop.f32.mrf.mxu1  ;;  %5050 = vmatmul.mubr.bf16.gmra.mxu0 %v4772_v7 }
 0x447   :  { %v4670_v41 = vadd.f32 %v4669_v36, %v4477_v29  ;;  %v4740_v12 = vmax.f32 %v4668_v62, 0.0 }
 0x448   :  { %v4673_v46 = vpop.f32.mrf.mxu1 }
 0x449   :  { %v4741_v27 = vmax.f32 %v4670_v41, 0.0  ;;  %v4774_v5 = vpack.c.bf16 %v4740_v12, %v4738_v10  ;;  %v4674_v26 = vadd.f32 %v4673_v46, %v4481_v13 }
 0x44a   :  { %v4675_v6 = vpop.f32.mrf.mxu1 }
 0x44b   :  { %v4775_v39 = vpack.c.bf16 %v4741_v27, %v4739_v15  ;;  %v4676_v19 = vadd.f32 %v4675_v6, %v4483_v47  ;;  %v4742_v30 = vmax.f32 %v4674_v26, 0.0 }
 0x44c   :  { %v4677_v9 = vpop.f32.mrf.mxu1 }
 0x44d   :  { %v4678_v31 = vadd.f32 %v4677_v9, %v4485_v56  ;;  %5057 = vmatprep.mubr.bf16.mxu0 %v4775_v39  ;;  %v4743_v63 = vmax.f32 %v4676_v19, 0.0 }
 0x44e   :  { %v4679_v14 = vpop.f32.mrf.mxu1  ;;  %5058 = vmatmul.mubr.bf16.gmra.mxu0 %v4774_v5 }
 0x44f   :  { %v4680_v17 = vadd.f32 %v4679_v14, %v4487_v25  ;;  %v4744_v16 = vmax.f32 %v4678_v31, 0.0 }
 0x451   :  { %v4745_v45 = vmax.f32 %v4680_v17, 0.0  ;;  %v4776_v58 = vpack.c.bf16 %v4744_v16, %v4742_v30 }
 0x453   :  { %v4777_v2 = vpack.c.bf16 %v4745_v45, %v4743_v63 }
 0x455   :  { %5065 = vmatprep.mubr.bf16.mxu0 %v4777_v2 }
 0x456   :  { %5066 = vmatmul.mubr.bf16.gmra.mxu0 %v4776_v58 }
 0x49e   :  { %v5558_v22 = vpop.f32.mrf.mxu0 }
 0x4a0   :  { %v5559_v38 = vpop.f32.mrf.mxu0 }
 0x4a1   :  { %v5560_v8 = vadd.f32 %v5559_v38, %v5558_v22 }
 0x4a2   :  { %v5561_v0 = vpop.f32.mrf.mxu0 }
 0x4a3   :  { %v4948_v20 = vadd.f32 %v5560_v8, %v8049_v60 }
 0x4a4   :  { %v5562_v33 = vpop.f32.mrf.mxu0 }
 0x4a5   :  { %5074 = vst [vmem:[#allocation11] sm:$0xff] %v4948_v20  ;;  %v5563_v53 = vadd.f32 %v5562_v33, %v5561_v0 }
 0x4a6   :  { %v5564_v52 = vpop.f32.mrf.mxu0 }
 0x4a7   :  { %v4951_v50 = vadd.f32 %v5563_v53, %v8049_v60 }
 0x4a8   :  { %v5565_v21 = vpop.f32.mrf.mxu0 }
 0x4a9   :  { %5075 = vst [vmem:[#allocation11 + $0x8] sm:$0xff] %v4951_v50  ;;  %v5566_v54 = vadd.f32 %v5565_v21, %v5564_v52 }
 0x4aa   :  { %v5567_v32 = vpop.f32.mrf.mxu0 }
 0x4ab   :  { %v4956_v23 = vadd.f32 %v5566_v54, %v8049_v60 }
 0x4ac   :  { %v5568_v59 = vpop.f32.mrf.mxu0 }
 0x4ad   :  { %5076 = vst [vmem:[#allocation11 + $0x10] sm:$0xff] %v4956_v23  ;;  %v5569_v24 = vadd.f32 %v5568_v59, %v5567_v32 }
 0x4ae   :  { %v5570_v42 = vpop.f32.mrf.mxu0 }
 0x4af   :  { %v4959_v55 = vadd.f32 %v5569_v24, %v8049_v60 }
 0x4b0   :  { %v5571_v57 = vpop.f32.mrf.mxu0 }
 0x4b1   :  { %5077 = vst [vmem:[#allocation11 + $0x18] sm:$0xff] %v4959_v55  ;;  %v5572_v43 = vadd.f32 %v5571_v57, %v5570_v42 }
 0x4b2   :  { %v5573_v44 = vpop.f32.mrf.mxu0 }
 0x4b3   :  { %v4964_v4 = vadd.f32 %v5572_v43, %v8049_v60 }
 0x4b4   :  { %v5574_v18 = vpop.f32.mrf.mxu0 }
 0x4b5   :  { %5078 = vst [vmem:[#allocation11 + $0x20] sm:$0xff] %v4964_v4  ;;  %v5575_v40 = vadd.f32 %v5574_v18, %v5573_v44 }
 0x4b6   :  { %v5576_v3 = vpop.f32.mrf.mxu0 }
 0x4b7   :  { %v4967_v11 = vadd.f32 %v5575_v40, %v8049_v60 }
 0x4b8   :  { %v5577_v34 = vpop.f32.mrf.mxu0 }
 0x4b9   :  { %5079 = vst [vmem:[#allocation11 + $0x28] sm:$0xff] %v4967_v11  ;;  %v5578_v37 = vadd.f32 %v5577_v34, %v5576_v3 }
 0x4ba   :  { %v5579_v35 = vpop.f32.mrf.mxu0 }
 0x4bb   :  { %v4972_v1 = vadd.f32 %v5578_v37, %v8049_v60 }
 0x4bc   :  { %v5580_v7 = vpop.f32.mrf.mxu0 }
 0x4bd   :  { %5080 = vst [vmem:[#allocation11 + $0x30] sm:$0xff] %v4972_v1  ;;  %v5581_v49 = vadd.f32 %v5580_v7, %v5579_v35 }
 0x4be   :  { %v5582_v29 = vpop.f32.mrf.mxu0 }
 0x4bf   :  { %v4975_v28 = vadd.f32 %v5581_v49, %v8049_v60 }
 0x4c0   :  { %v5583_v62 = vpop.f32.mrf.mxu0 }
 0x4c1   :  { %5081 = vst [vmem:[#allocation11 + $0x38] sm:$0xff] %v4975_v28  ;;  %v5584_v61 = vadd.f32 %v5583_v62, %v5582_v29 }
 0x4c2   :  { %v5585_v48 = vpop.f32.mrf.mxu0 }
 0x4c3   :  { %v4980_v36 = vadd.f32 %v5584_v61, %v8049_v60 }
 0x4c4   :  { %v5586_v41 = vpop.f32.mrf.mxu0 }
 0x4c5   :  { %5082 = vst [vmem:[#allocation11 + $0x40] sm:$0xff] %v4980_v36  ;;  %v5587_v12 = vadd.f32 %v5586_v41, %v5585_v48 }
 0x4c6   :  { %v5588_v46 = vpop.f32.mrf.mxu0 }
 0x4c7   :  { %v4983_v15 = vadd.f32 %v5587_v12, %v8049_v60 }
 0x4c8   :  { %v5589_v27 = vpop.f32.mrf.mxu0 }
 0x4c9   :  { %5083 = vst [vmem:[#allocation11 + $0x48] sm:$0xff] %v4983_v15  ;;  %v5590_v51 = vadd.f32 %v5589_v27, %v5588_v46 }
 0x4ca   :  { %v5591_v10 = vpop.f32.mrf.mxu0 }
 0x4cb   :  { %v4988_v6 = vadd.f32 %v5590_v51, %v8049_v60 }
 0x4cc   :  { %v5592_v47 = vpop.f32.mrf.mxu0 }
 0x4cd   :  { %5084 = vst [vmem:[#allocation11 + $0x50] sm:$0xff] %v4988_v6  ;;  %v5593_v56 = vadd.f32 %v5592_v47, %v5591_v10 }
 0x4ce   :  { %v5594_v39 = vpop.f32.mrf.mxu0 }
 0x4cf   :  { %v4991_v13 = vadd.f32 %v5593_v56, %v8049_v60 }
 0x4d0   :  { %v5595_v5 = vpop.f32.mrf.mxu0 }
 0x4d1   :  { %5085 = vst [vmem:[#allocation11 + $0x58] sm:$0xff] %v4991_v13  ;;  %v5596_v9 = vadd.f32 %v5595_v5, %v5594_v39 }
 0x4d2   :  { %v5597_v25 = vpop.f32.mrf.mxu0 }
 0x4d3   :  { %v4996_v19 = vadd.f32 %v5596_v9, %v8049_v60 }
 0x4d4   :  { %v5598_v31 = vpop.f32.mrf.mxu0 }
 0x4d5   :  { %5086 = vst [vmem:[#allocation11 + $0x60] sm:$0xff] %v4996_v19  ;;  %v5599_v26 = vadd.f32 %v5598_v31, %v5597_v25 }
 0x4d6   :  { %v5600_v14 = vpop.f32.mrf.mxu0 }
 0x4d7   :  { %v4999_v17 = vadd.f32 %v5599_v26, %v8049_v60 }
 0x4d8   :  { %v5601_v16 = vpop.f32.mrf.mxu0 }
 0x4d9   :  { %5087 = vst [vmem:[#allocation11 + $0x68] sm:$0xff] %v4999_v17  ;;  %v5602_v63 = vadd.f32 %v5601_v16, %v5600_v14 }
 0x4da   :  { %v5603_v45 = vpop.f32.mrf.mxu0 }
 0x4db   :  { %v5004_v30 = vadd.f32 %v5602_v63, %v8049_v60 }
 0x4dc   :  { %v5604_v2 = vpop.f32.mrf.mxu0 }
 0x4dd   :  { %5088 = vst [vmem:[#allocation11 + $0x70] sm:$0xff] %v5004_v30  ;;  %v5605_v58 = vadd.f32 %v5604_v2, %v5603_v45 }
 0x4de   :  { %v5606_v22 = vpop.f32.mrf.mxu0 }
 0x4df   :  { %v5007_v38 = vadd.f32 %v5605_v58, %v8049_v60 }
 0x4e0   :  { %v5607_v8 = vpop.f32.mrf.mxu0 }
 0x4e1   :  { %5089 = vst [vmem:[#allocation11 + $0x78] sm:$0xff] %v5007_v38  ;;  %v5608_v0 = vadd.f32 %v5607_v8, %v5606_v22 }
 0x4e2   :  { %v5609_v20 = vpop.f32.mrf.mxu0 }
 0x4e3   :  { %v5012_v33 = vadd.f32 %v5608_v0, %v8049_v60 }
 0x4e4   :  { %v5610_v53 = vpop.f32.mrf.mxu0 }
 0x4e5   :  { %5090 = vst [vmem:[#allocation11 + $0x80] sm:$0xff] %v5012_v33  ;;  %v5611_v52 = vadd.f32 %v5610_v53, %v5609_v20 }
 0x4e6   :  { %v5612_v50 = vpop.f32.mrf.mxu0 }
 0x4e7   :  { %v5015_v21 = vadd.f32 %v5611_v52, %v8049_v60 }
 0x4e8   :  { %v5613_v54 = vpop.f32.mrf.mxu0 }
 0x4e9   :  { %5091 = vst [vmem:[#allocation11 + $0x88] sm:$0xff] %v5015_v21  ;;  %v5614_v32 = vadd.f32 %v5613_v54, %v5612_v50 }
 0x4ea   :  { %v5615_v23 = vpop.f32.mrf.mxu0 }
 0x4eb   :  { %v5020_v59 = vadd.f32 %v5614_v32, %v8049_v60 }
 0x4ec   :  { %v5616_v24 = vpop.f32.mrf.mxu0 }
 0x4ed   :  { %5092 = vst [vmem:[#allocation11 + $0x90] sm:$0xff] %v5020_v59  ;;  %v5617_v42 = vadd.f32 %v5616_v24, %v5615_v23 }
 0x4ee   :  { %v5618_v55 = vpop.f32.mrf.mxu0 }
 0x4ef   :  { %v5023_v57 = vadd.f32 %v5617_v42, %v8049_v60 }
 0x4f0   :  { %v5619_v43 = vpop.f32.mrf.mxu0 }
 0x4f1   :  { %5093 = vst [vmem:[#allocation11 + $0x98] sm:$0xff] %v5023_v57  ;;  %v5620_v44 = vadd.f32 %v5619_v43, %v5618_v55 }
 0x4f2   :  { %v5621_v4 = vpop.f32.mrf.mxu0 }
 0x4f3   :  { %v5028_v18 = vadd.f32 %v5620_v44, %v8049_v60 }
 0x4f4   :  { %v5622_v40 = vpop.f32.mrf.mxu0 }
 0x4f5   :  { %5094 = vst [vmem:[#allocation11 + $0xa0] sm:$0xff] %v5028_v18  ;;  %v5623_v3 = vadd.f32 %v5622_v40, %v5621_v4 }
 0x4f6   :  { %v5624_v11 = vpop.f32.mrf.mxu0 }
 0x4f7   :  { %v5031_v34 = vadd.f32 %v5623_v3, %v8049_v60 }
 0x4f8   :  { %v5625_v37 = vpop.f32.mrf.mxu0 }
 0x4f9   :  { %5095 = vst [vmem:[#allocation11 + $0xa8] sm:$0xff] %v5031_v34  ;;  %v5626_v35 = vadd.f32 %v5625_v37, %v5624_v11 }
 0x4fa   :  { %v5627_v1 = vpop.f32.mrf.mxu0 }
 0x4fb   :  { %v5036_v7 = vadd.f32 %v5626_v35, %v8049_v60 }
 0x4fc   :  { %v5628_v49 = vpop.f32.mrf.mxu0 }
 0x4fd   :  { %5096 = vst [vmem:[#allocation11 + $0xb0] sm:$0xff] %v5036_v7  ;;  %v5629_v29 = vadd.f32 %v5628_v49, %v5627_v1 }
 0x4fe   :  { %v5630_v28 = vpop.f32.mrf.mxu0 }
 0x4ff   :  { %v5039_v62 = vadd.f32 %v5629_v29, %v8049_v60 }
 0x500   :  { %v5631_v61 = vpop.f32.mrf.mxu0 }
 0x501   :  { %5097 = vst [vmem:[#allocation11 + $0xb8] sm:$0xff] %v5039_v62  ;;  %v5632_v48 = vadd.f32 %v5631_v61, %v5630_v28 }
 0x502   :  { %v5633_v36 = vpop.f32.mrf.mxu0 }
 0x503   :  { %v5044_v41 = vadd.f32 %v5632_v48, %v8049_v60 }
 0x504   :  { %v5634_v12 = vpop.f32.mrf.mxu0 }
 0x505   :  { %5098 = vst [vmem:[#allocation11 + $0xc0] sm:$0xff] %v5044_v41  ;;  %v5635_v46 = vadd.f32 %v5634_v12, %v5633_v36 }
 0x506   :  { %v5636_v15 = vpop.f32.mrf.mxu0 }
 0x507   :  { %v5047_v27 = vadd.f32 %v5635_v46, %v8049_v60 }
 0x508   :  { %v5637_v51 = vpop.f32.mrf.mxu0 }
 0x509   :  { %5099 = vst [vmem:[#allocation11 + $0xc8] sm:$0xff] %v5047_v27  ;;  %v5638_v10 = vadd.f32 %v5637_v51, %v5636_v15 }
 0x50a   :  { %v5639_v6 = vpop.f32.mrf.mxu0 }
 0x50b   :  { %v5052_v47 = vadd.f32 %v5638_v10, %v8049_v60 }
 0x50c   :  { %v5640_v56 = vpop.f32.mrf.mxu0 }
 0x50d   :  { %5100 = vst [vmem:[#allocation11 + $0xd0] sm:$0xff] %v5052_v47  ;;  %v5641_v39 = vadd.f32 %v5640_v56, %v5639_v6 }
 0x50e   :  { %v5642_v13 = vpop.f32.mrf.mxu0 }
 0x50f   :  { %v5055_v5 = vadd.f32 %v5641_v39, %v8049_v60 }
 0x510   :  { %v5643_v9 = vpop.f32.mrf.mxu0 }
 0x511   :  { %5101 = vst [vmem:[#allocation11 + $0xd8] sm:$0xff] %v5055_v5  ;;  %v5644_v25 = vadd.f32 %v5643_v9, %v5642_v13 }
 0x512   :  { %v5645_v19 = vpop.f32.mrf.mxu0 }
 0x513   :  { %v5060_v31 = vadd.f32 %v5644_v25, %v8049_v60 }
 0x514   :  { %v5646_v26 = vpop.f32.mrf.mxu0 }
 0x515   :  { %5102 = vst [vmem:[#allocation11 + $0xe0] sm:$0xff] %v5060_v31  ;;  %v5647_v14 = vadd.f32 %v5646_v26, %v5645_v19 }
 0x516   :  { %v5648_v17 = vpop.f32.mrf.mxu0 }
 0x517   :  { %v5063_v16 = vadd.f32 %v5647_v14, %v8049_v60 }
 0x518   :  { %v5649_v63 = vpop.f32.mrf.mxu0 }
 0x519   :  { %5103 = vst [vmem:[#allocation11 + $0xe8] sm:$0xff] %v5063_v16  ;;  %v5650_v45 = vadd.f32 %v5649_v63, %v5648_v17 }
 0x51a   :  { %v5651_v30 = vpop.f32.mrf.mxu0 }
 0x51b   :  { %v5068_v2 = vadd.f32 %v5650_v45, %v8049_v60 }
 0x51c   :  { %v5652_v58 = vpop.f32.mrf.mxu0 }
 0x51d   :  { %5104 = vst [vmem:[#allocation11 + $0xf0] sm:$0xff] %v5068_v2  ;;  %v5653_v22 = vadd.f32 %v5652_v58, %v5651_v30 }
 0x51f   :  { %v5071_v38 = vadd.f32 %v5653_v22, %v8049_v60 }
 0x521   :  { %5105 = vst [vmem:[#allocation11 + $0xf8] sm:$0xff] %v5071_v38 }
 0x522   :  { %6533 = shalt.err (!%p6530_p1)
}
 0x523   :  { %5117 = dma.vmem_to_hbm [thread:$0]  %s5112_s9, 4096, %s8096_s7, [#allocation4], %s6554_s11, %s6554_s11, %s6555_s12  }
 0x524   :  { %6548 = dma.done.wait [#allocation4], 4096  }
 0x525   :  { %6549 = vsyncadd [#allocation4], 4294963200 }
 0x526   :  { %5121 = vsyncpa [#allocation3], 1 }
 0x527   :  { %5122 = vsyncpa [#allocation6], 1 }
 0x528   :  { %5123 = vsyncpa [#allocation9], 1 }
 0x529   :  { %5124 = vsyncpa [#allocation4], 1 }

</bundles_post_ra>
